<compile_context>
chip_gen: v6e
topology: v6e:2x2x1
jax: 0.10.0
libtpu: 0.0.40
codegen_flags: <defaults>
</compile_context>

<pallas_src>
import functools

import jax
import jax.numpy as jnp
from jax.experimental import pallas as pl
from jax.experimental.pallas import tpu as pltpu


LANE = 128


def _round_up(v, m):
    return ((v + m - 1) // m) * m


def _pad_to(a, shape):
    pads = [(0, s - d) for d, s in zip(a.shape, shape)]
    return jnp.pad(a, pads)


# --------------------------- fused Pallas kernel ----------------------------

def _fused_iresgnn_kernel(a_ref, x_ref, in_w_ref, in_b_ref,
                          blk_w_ref, blk_b_ref,
                          w1a_ref, w1b_ref, b1_ref, w2_ref, b2_ref,
                          o_ref, *, depth, inv_depth, indp_block, maxiter,
                          threshold, n_nodes, hidden_true):
    f32 = jnp.float32
    a = a_ref[...]                       # [N, N] GCN-normalized adjacency

    # in_: Linear -> Dropout(eval = identity) -> ReLU, fused.
    x = jnp.maximum(
        jnp.dot(x_ref[...], in_w_ref[...], preferred_element_type=f32)
        + in_b_ref[...], 0.0)
    hp = x.shape[1]

    # Hoist block weight loads & bias broadcasts out of every loop.
    blk_w = [blk_w_ref[i] for i in range(indp_block)]
    blk_b = [jnp.broadcast_to(blk_b_ref[i], (n_nodes, hp))
             for i in range(indp_block)]

    def gcn_relu(z, bi):
        # relu(A_hat @ (z @ W) + b): two MXU matmuls + VPU epilogue.
        xw = jnp.dot(z, blk_w[bi], preferred_element_type=f32)
        agg = jnp.dot(a, xw, preferred_element_type=f32)
        return jnp.maximum(agg + blk_b[bi], 0.0)

    # forward residual stack:  z <- z + relu(body(z))
    z_f = x
    for d in range(depth):
        z_f = z_f + gcn_relu(z_f, d % indp_block)

    # inverse stack: fixed-point x <- x_input - relu(body(x)), convergence
    # checked in-kernel.  The early break is a masked unroll over the small
    # static maxiter (identical result to breaking out of the loop).
    inv_denom = 1.0 / float(n_nodes * hidden_true)
    z_b = x
    for inv_d in range(inv_depth):
        bi = indp_block - 1 - inv_d % indp_block
        x_input = z_b
        xc = x_input
        done = f32(0.0)
        for _ in range(maxiter):
            x_new = x_input - gcn_relu(xc, bi)
            # padded lanes are identically zero, so this equals the unpadded
            # mean over the true [N, H] activation.
            diff = jnp.sum(jnp.abs(x_new - xc)) * inv_denom
            active = 1.0 - done
            xc = done * xc + active * x_new
            done = jnp.maximum(done, active * (diff < threshold).astype(f32))
        z_b = xc

    # out: cat([z_f, z_b], 1) @ W1 + b1 -> ReLU -> @ W2 + b2
    # (the concat is folded into two matmuls on the split halves of W1)
    h1 = jnp.maximum(
        jnp.dot(z_f, w1a_ref[...], preferred_element_type=f32)
        + jnp.dot(z_b, w1b_ref[...], preferred_element_type=f32)
        + b1_ref[...], 0.0)
    o_ref[...] = jnp.dot(h1, w2_ref[...], preferred_element_type=f32) + b2_ref[...]


# ------------------------------- wrapper ------------------------------------

def iresgnn_forward(params, x, a_hat, cfg):
    n, f = x.shape
    h = params["in_w"].shape[1]
    c = params["out_w2"].shape[1]
    fp, hp, cp = _round_up(f, LANE), _round_up(h, LANE), _round_up(c, LANE)

    # zero-pad every feature (lane) dimension to a multiple of 128
    x_p = _pad_to(x.astype(jnp.float32), (n, fp))
    in_w_p = _pad_to(params["in_w"], (fp, hp))
    in_b_p = _pad_to(params["in_b"].reshape(1, -1), (1, hp))
    blk_w_p = jnp.stack([_pad_to(p["w"], (hp, hp)) for p in params["blocks"]])
    blk_b_p = jnp.stack([_pad_to(p["b"].reshape(1, -1), (1, hp))
                         for p in params["blocks"]])
    w1 = params["out_w1"]
    w1a_p = _pad_to(w1[:h], (hp, hp))
    w1b_p = _pad_to(w1[h:], (hp, hp))
    b1_p = _pad_to(params["out_b1"].reshape(1, -1), (1, hp))
    w2_p = _pad_to(params["out_w2"], (hp, cp))
    b2_p = _pad_to(params["out_b2"].reshape(1, -1), (1, cp))

    kernel = functools.partial(
        _fused_iresgnn_kernel,
        depth=cfg["depth"], inv_depth=cfg["inv_depth"],
        indp_block=cfg["indp_block"], maxiter=cfg["maxiter"],
        threshold=cfg["converge_threshold"], n_nodes=n, hidden_true=h)

    full2 = lambda i: (0, 0)
    full3 = lambda i: (0, 0, 0)
    out_p = pl.pallas_call(
        kernel,
        out_shape=jax.ShapeDtypeStruct((n, cp), jnp.float32),
        grid=(1,),
        in_specs=[
            pl.BlockSpec(a_hat.shape, full2),
            pl.BlockSpec(x_p.shape, full2),
            pl.BlockSpec(in_w_p.shape, full2),
            pl.BlockSpec(in_b_p.shape, full2),
            pl.BlockSpec(blk_w_p.shape, full3),
            pl.BlockSpec(blk_b_p.shape, full3),
            pl.BlockSpec(w1a_p.shape, full2),
            pl.BlockSpec(w1b_p.shape, full2),
            pl.BlockSpec(b1_p.shape, full2),
            pl.BlockSpec(w2_p.shape, full2),
            pl.BlockSpec(b2_p.shape, full2),
        ],
        out_specs=pl.BlockSpec((n, cp), full2),
        compiler_params=pltpu.CompilerParams(
            dimension_semantics=("arbitrary",),
            vmem_limit_bytes=32 * 1024 * 1024),
    )(a_hat, x_p, in_w_p, in_b_p, blk_w_p, blk_b_p,
      w1a_p, w1b_p, b1_p, w2_p, b2_p)

    # lane-dense slab -> true logits; torch's x.squeeze(1) when out_dim == 1
    out = out_p[:, :c]
    if c == 1:
        out = out[:, 0]
    return out
    # TODO(synk): for N large enough that dense A_hat no longer fits VMEM
    # (~2k nodes on v7x), row-tile A_hat with a reduction grid axis.


# ------------------------------ JAX glue ------------------------------------

def spectral_normalize(w, coeff):
    # spectral_norm_gnn semantics applied deterministically at parameter setup:
    # scale the weight so its spectral norm is <= coeff.
    sigma = jnp.linalg.norm(w, ord=2)
    return w * jnp.minimum(1.0, coeff / sigma)


def make_gcn_norm_adj(edge_index, num_nodes):
    # dense D^{-1/2} (A + I) D^{-1/2} from edge_index (PyG gcn_norm).
    src, dst = edge_index
    a = jnp.zeros((num_nodes, num_nodes), jnp.float32)
    a = a.at[dst, src].set(1.0)
    idx = jnp.arange(num_nodes)
    a = a.at[idx, idx].set(1.0)  # self loops
    deg = a.sum(axis=1)
    dinv = jnp.where(deg > 0, 1.0 / jnp.sqrt(deg), 0.0)
    return a * dinv[:, None] * dinv[None, :]


def iresgnn_reference(params, x, a_hat, cfg):
    # Pure-JAX reference mirroring the PyTorch module (eval mode).
    x = jnp.maximum(x @ params["in_w"] + params["in_b"], 0.0)

    def gcn_relu(z, p):
        return jnp.maximum(a_hat @ (z @ p["w"]) + p["b"], 0.0)

    z_f = x
    for d in range(cfg["depth"]):
        z_f = z_f + gcn_relu(z_f, params["blocks"][d % cfg["indp_block"]])

    z_b = x
    for inv_d in range(cfg["inv_depth"]):
        p = params["blocks"][cfg["indp_block"] - 1 - inv_d % cfg["indp_block"]]
        x_input = z_b
        xc = x_input
        for _ in range(cfg["maxiter"]):
            x_new = x_input - gcn_relu(xc, p)
            diff = jnp.mean(jnp.abs(x_new - xc))
            xc = x_new
            if float(diff) < cfg["converge_threshold"]:
                break
        z_b = xc

    cat = jnp.concatenate([z_f, z_b], axis=1)
    h1 = jnp.maximum(cat @ params["out_w1"] + params["out_b1"], 0.0)
    out = h1 @ params["out_w2"] + params["out_b2"]
    if out.shape[1] == 1:
        out = out[:, 0]
    return out


# -------------------------------- main ---------------------------------------

if __name__ == "__main__":
    N, F, H, C = 32, 16, 32, 3  # nodes, num_features, hidden_dim, num_classes
    cfg = dict(depth=3, inv_depth=3, indp_block=2, maxiter=5,
               converge_threshold=1e-6, coeff=0.9)

    key = jax.random.PRNGKey(0)
    keys = jax.random.split(key, 16)

    # node features
    x = jax.random.normal(keys[0], (N, F), jnp.float32)

    # deterministic symmetric edge_index: ring + chords of stride 5
    idx = jnp.arange(N)
    src = jnp.concatenate([idx, (idx + 1) % N, idx, (idx + 5) % N])
    dst = jnp.concatenate([(idx + 1) % N, idx, (idx + 5) % N, idx])
    edge_index = jnp.stack([src, dst])
    a_hat = make_gcn_norm_adj(edge_index, N)

    # deterministic parameters (shapes dictated by the module's __init__)
    params = {
        "in_w": jax.random.normal(keys[1], (F, H), jnp.float32) / jnp.sqrt(F),
        "in_b": jax.random.normal(keys[2], (H,), jnp.float32) * 0.01,
        "out_w1": jax.random.normal(keys[3], (2 * H, H), jnp.float32) / jnp.sqrt(2.0 * H),
        "out_b1": jax.random.normal(keys[4], (H,), jnp.float32) * 0.01,
        "out_w2": jax.random.normal(keys[5], (H, C), jnp.float32) / jnp.sqrt(1.0 * H),
        "out_b2": jax.random.normal(keys[6], (C,), jnp.float32) * 0.01,
        "blocks": [],
    }
    for i in range(cfg["indp_block"]):
        w = jax.random.normal(keys[7 + 2 * i], (H, H), jnp.float32) / jnp.sqrt(1.0 * H)
        w = spectral_normalize(w, cfg["coeff"])
        b = jax.random.normal(keys[8 + 2 * i], (H,), jnp.float32) * 0.01
        params["blocks"].append({"w": w, "b": b})

    fwd = jax.jit(functools.partial(iresgnn_forward, cfg=cfg))
    out = fwd(params, x, a_hat)
    jax.block_until_ready(out)
    assert out.shape == (N, C)

    ref = iresgnn_reference(params, x, a_hat, cfg)
    max_err = float(jnp.max(jnp.abs(out - ref)))
    assert max_err < 1e-3, f"mismatch vs reference: {max_err}"

    print("KERNEL_OK")
</pallas_src>

<mosaic_0001>
module attributes {stable_mosaic.version = 11 : i64} {
  func.func @_fused_iresgnn_kernel(%arg0: i32, %arg1: memref<32x32xf32, #tpu.memory_space<vmem>>, %arg2: memref<32x128xf32, #tpu.memory_space<vmem>>, %arg3: memref<128x128xf32, #tpu.memory_space<vmem>>, %arg4: memref<1x128xf32, #tpu.memory_space<vmem>>, %arg5: memref<2x128x128xf32, #tpu.memory_space<vmem>>, %arg6: memref<2x1x128xf32, #tpu.memory_space<vmem>>, %arg7: memref<128x128xf32, #tpu.memory_space<vmem>>, %arg8: memref<128x128xf32, #tpu.memory_space<vmem>>, %arg9: memref<1x128xf32, #tpu.memory_space<vmem>>, %arg10: memref<128x128xf32, #tpu.memory_space<vmem>>, %arg11: memref<1x128xf32, #tpu.memory_space<vmem>>, %arg12: memref<32x128xf32, #tpu.memory_space<vmem>>) attributes {dimension_semantics = [#tpu.dimension_semantics<arbitrary>], iteration_bounds = array<i64: 1>, scalar_prefetch = 0 : i64, scratch_operands = 0 : i64, tpu.core_type = #tpu.core_type<tc>, window_params = [{pipeline_mode = #tpu.pipeline_mode<synchronous>, transform_indices = @transform_0, window_bounds = array<i64: 32, 32>}, {pipeline_mode = #tpu.pipeline_mode<synchronous>, transform_indices = @transform_1, window_bounds = array<i64: 32, 128>}, {pipeline_mode = #tpu.pipeline_mode<synchronous>, transform_indices = @transform_2, window_bounds = array<i64: 128, 128>}, {pipeline_mode = #tpu.pipeline_mode<synchronous>, transform_indices = @transform_3, window_bounds = array<i64: 1, 128>}, {pipeline_mode = #tpu.pipeline_mode<synchronous>, transform_indices = @transform_4, window_bounds = array<i64: 2, 128, 128>}, {pipeline_mode = #tpu.pipeline_mode<synchronous>, transform_indices = @transform_5, window_bounds = array<i64: 2, 1, 128>}, {pipeline_mode = #tpu.pipeline_mode<synchronous>, transform_indices = @transform_6, window_bounds = array<i64: 128, 128>}, {pipeline_mode = #tpu.pipeline_mode<synchronous>, transform_indices = @transform_7, window_bounds = array<i64: 128, 128>}, {pipeline_mode = #tpu.pipeline_mode<synchronous>, transform_indices = @transform_8, window_bounds = array<i64: 1, 128>}, {pipeline_mode = #tpu.pipeline_mode<synchronous>, transform_indices = @transform_9, window_bounds = array<i64: 128, 128>}, {pipeline_mode = #tpu.pipeline_mode<synchronous>, transform_indices = @transform_10, window_bounds = array<i64: 1, 128>}, {pipeline_mode = #tpu.pipeline_mode<synchronous>, transform_indices = @transform_11, window_bounds = array<i64: 32, 128>}]} {
    %c0 = arith.constant 0 : index
    %c0_0 = arith.constant 0 : index
    %0 = vector.load %arg1[%c0, %c0_0] : memref<32x32xf32, #tpu.memory_space<vmem>>, vector<32x32xf32>
    %c0_1 = arith.constant 0 : index
    %c0_2 = arith.constant 0 : index
    %1 = vector.load %arg2[%c0_1, %c0_2] : memref<32x128xf32, #tpu.memory_space<vmem>>, vector<32x128xf32>
    %c0_3 = arith.constant 0 : index
    %c0_4 = arith.constant 0 : index
    %2 = vector.load %arg3[%c0_3, %c0_4] : memref<128x128xf32, #tpu.memory_space<vmem>>, vector<128x128xf32>
    %cst = arith.constant dense<0.000000e+00> : vector<32x128xf32>
    %3 = tpu.matmul %1, %2, %cst {dimension_numbers = #tpu.dot_dimension_numbers<[1], [0], [0], [1], [0, 0, 1, 1], [], []>} : vector<32x128xf32>, vector<128x128xf32>, vector<32x128xf32> -> vector<32x128xf32>
    %c0_5 = arith.constant 0 : index
    %c0_6 = arith.constant 0 : index
    %4 = vector.load %arg4[%c0_5, %c0_6] : memref<1x128xf32, #tpu.memory_space<vmem>>, vector<1x128xf32>
    %5 = vector.broadcast %4 : vector<1x128xf32> to vector<32x128xf32>
    %6 = arith.addf %3, %5 : vector<32x128xf32>
    %cst_7 = arith.constant 0.000000e+00 : f32
    %7 = vector.broadcast %cst_7 : f32 to vector<32x128xf32>
    %8 = arith.maximumf %6, %7 : vector<32x128xf32>
    %c0_8 = arith.constant 0 : index
    %c0_9 = arith.constant 0 : index
    %c0_10 = arith.constant 0 : index
    %9 = vector.load %arg5[%c0_8, %c0_9, %c0_10] : memref<2x128x128xf32, #tpu.memory_space<vmem>>, vector<1x128x128xf32>
    %10 = vector.shape_cast %9 : vector<1x128x128xf32> to vector<128x128xf32>
    %c1 = arith.constant 1 : index
    %c0_11 = arith.constant 0 : index
    %c0_12 = arith.constant 0 : index
    %11 = vector.load %arg5[%c1, %c0_11, %c0_12] : memref<2x128x128xf32, #tpu.memory_space<vmem>>, vector<1x128x128xf32>
    %12 = vector.shape_cast %11 : vector<1x128x128xf32> to vector<128x128xf32>
    %c0_13 = arith.constant 0 : index
    %c0_14 = arith.constant 0 : index
    %c0_15 = arith.constant 0 : index
    %13 = vector.load %arg6[%c0_13, %c0_14, %c0_15] : memref<2x1x128xf32, #tpu.memory_space<vmem>>, vector<1x1x128xf32>
    %14 = vector.shape_cast %13 : vector<1x1x128xf32> to vector<1x128xf32>
    %15 = vector.shape_cast %14 : vector<1x128xf32> to vector<1x128xf32>
    %16 = vector.broadcast %15 : vector<1x128xf32> to vector<32x128xf32>
    %c1_16 = arith.constant 1 : index
    %c0_17 = arith.constant 0 : index
    %c0_18 = arith.constant 0 : index
    %17 = vector.load %arg6[%c1_16, %c0_17, %c0_18] : memref<2x1x128xf32, #tpu.memory_space<vmem>>, vector<1x1x128xf32>
    %18 = vector.shape_cast %17 : vector<1x1x128xf32> to vector<1x128xf32>
    %19 = vector.shape_cast %18 : vector<1x128xf32> to vector<1x128xf32>
    %20 = vector.broadcast %19 : vector<1x128xf32> to vector<32x128xf32>
    %cst_19 = arith.constant dense<0.000000e+00> : vector<32x128xf32>
    %21 = tpu.matmul %8, %10, %cst_19 {dimension_numbers = #tpu.dot_dimension_numbers<[1], [0], [0], [1], [0, 0, 1, 1], [], []>} : vector<32x128xf32>, vector<128x128xf32>, vector<32x128xf32> -> vector<32x128xf32>
    %cst_20 = arith.constant dense<0.000000e+00> : vector<32x128xf32>
    %22 = tpu.matmul %0, %21, %cst_20 {dimension_numbers = #tpu.dot_dimension_numbers<[1], [0], [0], [1], [0, 0, 1, 1], [], []>} : vector<32x32xf32>, vector<32x128xf32>, vector<32x128xf32> -> vector<32x128xf32>
    %23 = arith.addf %22, %16 : vector<32x128xf32>
    %cst_21 = arith.constant 0.000000e+00 : f32
    %24 = vector.broadcast %cst_21 : f32 to vector<32x128xf32>
    %25 = arith.maximumf %23, %24 : vector<32x128xf32>
    %26 = arith.addf %8, %25 : vector<32x128xf32>
    %cst_22 = arith.constant dense<0.000000e+00> : vector<32x128xf32>
    %27 = tpu.matmul %26, %12, %cst_22 {dimension_numbers = #tpu.dot_dimension_numbers<[1], [0], [0], [1], [0, 0, 1, 1], [], []>} : vector<32x128xf32>, vector<128x128xf32>, vector<32x128xf32> -> vector<32x128xf32>
    %cst_23 = arith.constant dense<0.000000e+00> : vector<32x128xf32>
    %28 = tpu.matmul %0, %27, %cst_23 {dimension_numbers = #tpu.dot_dimension_numbers<[1], [0], [0], [1], [0, 0, 1, 1], [], []>} : vector<32x32xf32>, vector<32x128xf32>, vector<32x128xf32> -> vector<32x128xf32>
    %29 = arith.addf %28, %20 : vector<32x128xf32>
    %cst_24 = arith.constant 0.000000e+00 : f32
    %30 = vector.broadcast %cst_24 : f32 to vector<32x128xf32>
    %31 = arith.maximumf %29, %30 : vector<32x128xf32>
    %32 = arith.addf %26, %31 : vector<32x128xf32>
    %cst_25 = arith.constant dense<0.000000e+00> : vector<32x128xf32>
    %33 = tpu.matmul %32, %10, %cst_25 {dimension_numbers = #tpu.dot_dimension_numbers<[1], [0], [0], [1], [0, 0, 1, 1], [], []>} : vector<32x128xf32>, vector<128x128xf32>, vector<32x128xf32> -> vector<32x128xf32>
    %cst_26 = arith.constant dense<0.000000e+00> : vector<32x128xf32>
    %34 = tpu.matmul %0, %33, %cst_26 {dimension_numbers = #tpu.dot_dimension_numbers<[1], [0], [0], [1], [0, 0, 1, 1], [], []>} : vector<32x32xf32>, vector<32x128xf32>, vector<32x128xf32> -> vector<32x128xf32>
    %35 = arith.addf %34, %16 : vector<32x128xf32>
    %cst_27 = arith.constant 0.000000e+00 : f32
    %36 = vector.broadcast %cst_27 : f32 to vector<32x128xf32>
    %37 = arith.maximumf %35, %36 : vector<32x128xf32>
    %38 = arith.addf %32, %37 : vector<32x128xf32>
    %cst_28 = arith.constant dense<0.000000e+00> : vector<32x128xf32>
    %39 = tpu.matmul %8, %12, %cst_28 {dimension_numbers = #tpu.dot_dimension_numbers<[1], [0], [0], [1], [0, 0, 1, 1], [], []>} : vector<32x128xf32>, vector<128x128xf32>, vector<32x128xf32> -> vector<32x128xf32>
    %cst_29 = arith.constant dense<0.000000e+00> : vector<32x128xf32>
    %40 = tpu.matmul %0, %39, %cst_29 {dimension_numbers = #tpu.dot_dimension_numbers<[1], [0], [0], [1], [0, 0, 1, 1], [], []>} : vector<32x32xf32>, vector<32x128xf32>, vector<32x128xf32> -> vector<32x128xf32>
    %41 = arith.addf %40, %20 : vector<32x128xf32>
    %cst_30 = arith.constant 0.000000e+00 : f32
    %42 = vector.broadcast %cst_30 : f32 to vector<32x128xf32>
    %43 = arith.maximumf %41, %42 : vector<32x128xf32>
    %44 = arith.subf %8, %43 : vector<32x128xf32>
    %45 = arith.subf %44, %8 : vector<32x128xf32>
    %46 = math.absf %45 : vector<32x128xf32>
    %47 = vector.shape_cast %46 : vector<32x128xf32> to vector<1x32x128xf32>
    %cst_31 = arith.constant dense<0.000000e+00> : vector<1xf32>
    %48 = vector.multi_reduction <add>, %47, %cst_31 [1, 2] : vector<1x32x128xf32> to vector<1xf32>
    %49 = vector.shape_cast %48 : vector<1xf32> to vector<1x1x1xf32>
    %50 = vector.extract %49[0, 0, 0] : f32 from vector<1x1x1xf32>
    %cst_32 = arith.constant 9.765625E-4 : f32
    %51 = arith.mulf %50, %cst_32 : f32
    %cst_33 = arith.constant 1.000000e+00 : f32
    %cst_34 = arith.constant 0.000000e+00 : f32
    %52 = arith.subf %cst_33, %cst_34 : f32
    %cst_35 = arith.constant 0.000000e+00 : f32
    %53 = vector.broadcast %cst_35 : f32 to vector<32x128xf32>
    %54 = arith.mulf %53, %8 : vector<32x128xf32>
    %55 = vector.broadcast %52 : f32 to vector<32x128xf32>
    %56 = arith.mulf %55, %44 : vector<32x128xf32>
    %57 = arith.addf %54, %56 : vector<32x128xf32>
    %cst_36 = arith.constant 9.99999997E-7 : f32
    %58 = arith.cmpf olt, %51, %cst_36 : f32
    %59 = arith.extui %58 : i1 to i32
    %60 = arith.sitofp %59 : i32 to f32
    %61 = arith.mulf %52, %60 : f32
    %cst_37 = arith.constant 0.000000e+00 : f32
    %62 = arith.maximumf %cst_37, %61 : f32
    %cst_38 = arith.constant dense<0.000000e+00> : vector<32x128xf32>
    %63 = tpu.matmul %57, %12, %cst_38 {dimension_numbers = #tpu.dot_dimension_numbers<[1], [0], [0], [1], [0, 0, 1, 1], [], []>} : vector<32x128xf32>, vector<128x128xf32>, vector<32x128xf32> -> vector<32x128xf32>
    %cst_39 = arith.constant dense<0.000000e+00> : vector<32x128xf32>
    %64 = tpu.matmul %0, %63, %cst_39 {dimension_numbers = #tpu.dot_dimension_numbers<[1], [0], [0], [1], [0, 0, 1, 1], [], []>} : vector<32x32xf32>, vector<32x128xf32>, vector<32x128xf32> -> vector<32x128xf32>
    %65 = arith.addf %64, %20 : vector<32x128xf32>
    %cst_40 = arith.constant 0.000000e+00 : f32
    %66 = vector.broadcast %cst_40 : f32 to vector<32x128xf32>
    %67 = arith.maximumf %65, %66 : vector<32x128xf32>
    %68 = arith.subf %8, %67 : vector<32x128xf32>
    %69 = arith.subf %68, %57 : vector<32x128xf32>
    %70 = math.absf %69 : vector<32x128xf32>
    %71 = vector.shape_cast %70 : vector<32x128xf32> to vector<1x32x128xf32>
    %cst_41 = arith.constant dense<0.000000e+00> : vector<1xf32>
    %72 = vector.multi_reduction <add>, %71, %cst_41 [1, 2] : vector<1x32x128xf32> to vector<1xf32>
    %73 = vector.shape_cast %72 : vector<1xf32> to vector<1x1x1xf32>
    %74 = vector.extract %73[0, 0, 0] : f32 from vector<1x1x1xf32>
    %cst_42 = arith.constant 9.765625E-4 : f32
    %75 = arith.mulf %74, %cst_42 : f32
    %cst_43 = arith.constant 1.000000e+00 : f32
    %76 = arith.subf %cst_43, %62 : f32
    %77 = vector.broadcast %62 : f32 to vector<32x128xf32>
    %78 = arith.mulf %77, %57 : vector<32x128xf32>
    %79 = vector.broadcast %76 : f32 to vector<32x128xf32>
    %80 = arith.mulf %79, %68 : vector<32x128xf32>
    %81 = arith.addf %78, %80 : vector<32x128xf32>
    %cst_44 = arith.constant 9.99999997E-7 : f32
    %82 = arith.cmpf olt, %75, %cst_44 : f32
    %83 = arith.extui %82 : i1 to i32
    %84 = arith.sitofp %83 : i32 to f32
    %85 = arith.mulf %76, %84 : f32
    %86 = arith.maximumf %62, %85 : f32
    %cst_45 = arith.constant dense<0.000000e+00> : vector<32x128xf32>
    %87 = tpu.matmul %81, %12, %cst_45 {dimension_numbers = #tpu.dot_dimension_numbers<[1], [0], [0], [1], [0, 0, 1, 1], [], []>} : vector<32x128xf32>, vector<128x128xf32>, vector<32x128xf32> -> vector<32x128xf32>
    %cst_46 = arith.constant dense<0.000000e+00> : vector<32x128xf32>
    %88 = tpu.matmul %0, %87, %cst_46 {dimension_numbers = #tpu.dot_dimension_numbers<[1], [0], [0], [1], [0, 0, 1, 1], [], []>} : vector<32x32xf32>, vector<32x128xf32>, vector<32x128xf32> -> vector<32x128xf32>
    %89 = arith.addf %88, %20 : vector<32x128xf32>
    %cst_47 = arith.constant 0.000000e+00 : f32
    %90 = vector.broadcast %cst_47 : f32 to vector<32x128xf32>
    %91 = arith.maximumf %89, %90 : vector<32x128xf32>
    %92 = arith.subf %8, %91 : vector<32x128xf32>
    %93 = arith.subf %92, %81 : vector<32x128xf32>
    %94 = math.absf %93 : vector<32x128xf32>
    %95 = vector.shape_cast %94 : vector<32x128xf32> to vector<1x32x128xf32>
    %cst_48 = arith.constant dense<0.000000e+00> : vector<1xf32>
    %96 = vector.multi_reduction <add>, %95, %cst_48 [1, 2] : vector<1x32x128xf32> to vector<1xf32>
    %97 = vector.shape_cast %96 : vector<1xf32> to vector<1x1x1xf32>
    %98 = vector.extract %97[0, 0, 0] : f32 from vector<1x1x1xf32>
    %cst_49 = arith.constant 9.765625E-4 : f32
    %99 = arith.mulf %98, %cst_49 : f32
    %cst_50 = arith.constant 1.000000e+00 : f32
    %100 = arith.subf %cst_50, %86 : f32
    %101 = vector.broadcast %86 : f32 to vector<32x128xf32>
    %102 = arith.mulf %101, %81 : vector<32x128xf32>
    %103 = vector.broadcast %100 : f32 to vector<32x128xf32>
    %104 = arith.mulf %103, %92 : vector<32x128xf32>
    %105 = arith.addf %102, %104 : vector<32x128xf32>
    %cst_51 = arith.constant 9.99999997E-7 : f32
    %106 = arith.cmpf olt, %99, %cst_51 : f32
    %107 = arith.extui %106 : i1 to i32
    %108 = arith.sitofp %107 : i32 to f32
    %109 = arith.mulf %100, %108 : f32
    %110 = arith.maximumf %86, %109 : f32
    %cst_52 = arith.constant dense<0.000000e+00> : vector<32x128xf32>
    %111 = tpu.matmul %105, %12, %cst_52 {dimension_numbers = #tpu.dot_dimension_numbers<[1], [0], [0], [1], [0, 0, 1, 1], [], []>} : vector<32x128xf32>, vector<128x128xf32>, vector<32x128xf32> -> vector<32x128xf32>
    %cst_53 = arith.constant dense<0.000000e+00> : vector<32x128xf32>
    %112 = tpu.matmul %0, %111, %cst_53 {dimension_numbers = #tpu.dot_dimension_numbers<[1], [0], [0], [1], [0, 0, 1, 1], [], []>} : vector<32x32xf32>, vector<32x128xf32>, vector<32x128xf32> -> vector<32x128xf32>
    %113 = arith.addf %112, %20 : vector<32x128xf32>
    %cst_54 = arith.constant 0.000000e+00 : f32
    %114 = vector.broadcast %cst_54 : f32 to vector<32x128xf32>
    %115 = arith.maximumf %113, %114 : vector<32x128xf32>
    %116 = arith.subf %8, %115 : vector<32x128xf32>
    %117 = arith.subf %116, %105 : vector<32x128xf32>
    %118 = math.absf %117 : vector<32x128xf32>
    %119 = vector.shape_cast %118 : vector<32x128xf32> to vector<1x32x128xf32>
    %cst_55 = arith.constant dense<0.000000e+00> : vector<1xf32>
    %120 = vector.multi_reduction <add>, %119, %cst_55 [1, 2] : vector<1x32x128xf32> to vector<1xf32>
    %121 = vector.shape_cast %120 : vector<1xf32> to vector<1x1x1xf32>
    %122 = vector.extract %121[0, 0, 0] : f32 from vector<1x1x1xf32>
    %cst_56 = arith.constant 9.765625E-4 : f32
    %123 = arith.mulf %122, %cst_56 : f32
    %cst_57 = arith.constant 1.000000e+00 : f32
    %124 = arith.subf %cst_57, %110 : f32
    %125 = vector.broadcast %110 : f32 to vector<32x128xf32>
    %126 = arith.mulf %125, %105 : vector<32x128xf32>
    %127 = vector.broadcast %124 : f32 to vector<32x128xf32>
    %128 = arith.mulf %127, %116 : vector<32x128xf32>
    %129 = arith.addf %126, %128 : vector<32x128xf32>
    %cst_58 = arith.constant 9.99999997E-7 : f32
    %130 = arith.cmpf olt, %123, %cst_58 : f32
    %131 = arith.extui %130 : i1 to i32
    %132 = arith.sitofp %131 : i32 to f32
    %133 = arith.mulf %124, %132 : f32
    %134 = arith.maximumf %110, %133 : f32
    %cst_59 = arith.constant dense<0.000000e+00> : vector<32x128xf32>
    %135 = tpu.matmul %129, %12, %cst_59 {dimension_numbers = #tpu.dot_dimension_numbers<[1], [0], [0], [1], [0, 0, 1, 1], [], []>} : vector<32x128xf32>, vector<128x128xf32>, vector<32x128xf32> -> vector<32x128xf32>
    %cst_60 = arith.constant dense<0.000000e+00> : vector<32x128xf32>
    %136 = tpu.matmul %0, %135, %cst_60 {dimension_numbers = #tpu.dot_dimension_numbers<[1], [0], [0], [1], [0, 0, 1, 1], [], []>} : vector<32x32xf32>, vector<32x128xf32>, vector<32x128xf32> -> vector<32x128xf32>
    %137 = arith.addf %136, %20 : vector<32x128xf32>
    %cst_61 = arith.constant 0.000000e+00 : f32
    %138 = vector.broadcast %cst_61 : f32 to vector<32x128xf32>
    %139 = arith.maximumf %137, %138 : vector<32x128xf32>
    %140 = arith.subf %8, %139 : vector<32x128xf32>
    %cst_62 = arith.constant 1.000000e+00 : f32
    %141 = arith.subf %cst_62, %134 : f32
    %142 = vector.broadcast %134 : f32 to vector<32x128xf32>
    %143 = arith.mulf %142, %129 : vector<32x128xf32>
    %144 = vector.broadcast %141 : f32 to vector<32x128xf32>
    %145 = arith.mulf %144, %140 : vector<32x128xf32>
    %146 = arith.addf %143, %145 : vector<32x128xf32>
    %cst_63 = arith.constant dense<0.000000e+00> : vector<32x128xf32>
    %147 = tpu.matmul %146, %10, %cst_63 {dimension_numbers = #tpu.dot_dimension_numbers<[1], [0], [0], [1], [0, 0, 1, 1], [], []>} : vector<32x128xf32>, vector<128x128xf32>, vector<32x128xf32> -> vector<32x128xf32>
    %cst_64 = arith.constant dense<0.000000e+00> : vector<32x128xf32>
    %148 = tpu.matmul %0, %147, %cst_64 {dimension_numbers = #tpu.dot_dimension_numbers<[1], [0], [0], [1], [0, 0, 1, 1], [], []>} : vector<32x32xf32>, vector<32x128xf32>, vector<32x128xf32> -> vector<32x128xf32>
    %149 = arith.addf %148, %16 : vector<32x128xf32>
    %cst_65 = arith.constant 0.000000e+00 : f32
    %150 = vector.broadcast %cst_65 : f32 to vector<32x128xf32>
    %151 = arith.maximumf %149, %150 : vector<32x128xf32>
    %152 = arith.subf %146, %151 : vector<32x128xf32>
    %153 = arith.subf %152, %146 : vector<32x128xf32>
    %154 = math.absf %153 : vector<32x128xf32>
    %155 = vector.shape_cast %154 : vector<32x128xf32> to vector<1x32x128xf32>
    %cst_66 = arith.constant dense<0.000000e+00> : vector<1xf32>
    %156 = vector.multi_reduction <add>, %155, %cst_66 [1, 2] : vector<1x32x128xf32> to vector<1xf32>
    %157 = vector.shape_cast %156 : vector<1xf32> to vector<1x1x1xf32>
    %158 = vector.extract %157[0, 0, 0] : f32 from vector<1x1x1xf32>
    %cst_67 = arith.constant 9.765625E-4 : f32
    %159 = arith.mulf %158, %cst_67 : f32
    %cst_68 = arith.constant 1.000000e+00 : f32
    %cst_69 = arith.constant 0.000000e+00 : f32
    %160 = arith.subf %cst_68, %cst_69 : f32
    %cst_70 = arith.constant 0.000000e+00 : f32
    %161 = vector.broadcast %cst_70 : f32 to vector<32x128xf32>
    %162 = arith.mulf %161, %146 : vector<32x128xf32>
    %163 = vector.broadcast %160 : f32 to vector<32x128xf32>
    %164 = arith.mulf %163, %152 : vector<32x128xf32>
    %165 = arith.addf %162, %164 : vector<32x128xf32>
    %cst_71 = arith.constant 9.99999997E-7 : f32
    %166 = arith.cmpf olt, %159, %cst_71 : f32
    %167 = arith.extui %166 : i1 to i32
    %168 = arith.sitofp %167 : i32 to f32
    %169 = arith.mulf %160, %168 : f32
    %cst_72 = arith.constant 0.000000e+00 : f32
    %170 = arith.maximumf %cst_72, %169 : f32
    %cst_73 = arith.constant dense<0.000000e+00> : vector<32x128xf32>
    %171 = tpu.matmul %165, %10, %cst_73 {dimension_numbers = #tpu.dot_dimension_numbers<[1], [0], [0], [1], [0, 0, 1, 1], [], []>} : vector<32x128xf32>, vector<128x128xf32>, vector<32x128xf32> -> vector<32x128xf32>
    %cst_74 = arith.constant dense<0.000000e+00> : vector<32x128xf32>
    %172 = tpu.matmul %0, %171, %cst_74 {dimension_numbers = #tpu.dot_dimension_numbers<[1], [0], [0], [1], [0, 0, 1, 1], [], []>} : vector<32x32xf32>, vector<32x128xf32>, vector<32x128xf32> -> vector<32x128xf32>
    %173 = arith.addf %172, %16 : vector<32x128xf32>
    %cst_75 = arith.constant 0.000000e+00 : f32
    %174 = vector.broadcast %cst_75 : f32 to vector<32x128xf32>
    %175 = arith.maximumf %173, %174 : vector<32x128xf32>
    %176 = arith.subf %146, %175 : vector<32x128xf32>
    %177 = arith.subf %176, %165 : vector<32x128xf32>
    %178 = math.absf %177 : vector<32x128xf32>
    %179 = vector.shape_cast %178 : vector<32x128xf32> to vector<1x32x128xf32>
    %cst_76 = arith.constant dense<0.000000e+00> : vector<1xf32>
    %180 = vector.multi_reduction <add>, %179, %cst_76 [1, 2] : vector<1x32x128xf32> to vector<1xf32>
    %181 = vector.shape_cast %180 : vector<1xf32> to vector<1x1x1xf32>
    %182 = vector.extract %181[0, 0, 0] : f32 from vector<1x1x1xf32>
    %cst_77 = arith.constant 9.765625E-4 : f32
    %183 = arith.mulf %182, %cst_77 : f32
    %cst_78 = arith.constant 1.000000e+00 : f32
    %184 = arith.subf %cst_78, %170 : f32
    %185 = vector.broadcast %170 : f32 to vector<32x128xf32>
    %186 = arith.mulf %185, %165 : vector<32x128xf32>
    %187 = vector.broadcast %184 : f32 to vector<32x128xf32>
    %188 = arith.mulf %187, %176 : vector<32x128xf32>
    %189 = arith.addf %186, %188 : vector<32x128xf32>
    %cst_79 = arith.constant 9.99999997E-7 : f32
    %190 = arith.cmpf olt, %183, %cst_79 : f32
    %191 = arith.extui %190 : i1 to i32
    %192 = arith.sitofp %191 : i32 to f32
    %193 = arith.mulf %184, %192 : f32
    %194 = arith.maximumf %170, %193 : f32
    %cst_80 = arith.constant dense<0.000000e+00> : vector<32x128xf32>
    %195 = tpu.matmul %189, %10, %cst_80 {dimension_numbers = #tpu.dot_dimension_numbers<[1], [0], [0], [1], [0, 0, 1, 1], [], []>} : vector<32x128xf32>, vector<128x128xf32>, vector<32x128xf32> -> vector<32x128xf32>
    %cst_81 = arith.constant dense<0.000000e+00> : vector<32x128xf32>
    %196 = tpu.matmul %0, %195, %cst_81 {dimension_numbers = #tpu.dot_dimension_numbers<[1], [0], [0], [1], [0, 0, 1, 1], [], []>} : vector<32x32xf32>, vector<32x128xf32>, vector<32x128xf32> -> vector<32x128xf32>
    %197 = arith.addf %196, %16 : vector<32x128xf32>
    %cst_82 = arith.constant 0.000000e+00 : f32
    %198 = vector.broadcast %cst_82 : f32 to vector<32x128xf32>
    %199 = arith.maximumf %197, %198 : vector<32x128xf32>
    %200 = arith.subf %146, %199 : vector<32x128xf32>
    %201 = arith.subf %200, %189 : vector<32x128xf32>
    %202 = math.absf %201 : vector<32x128xf32>
    %203 = vector.shape_cast %202 : vector<32x128xf32> to vector<1x32x128xf32>
    %cst_83 = arith.constant dense<0.000000e+00> : vector<1xf32>
    %204 = vector.multi_reduction <add>, %203, %cst_83 [1, 2] : vector<1x32x128xf32> to vector<1xf32>
    %205 = vector.shape_cast %204 : vector<1xf32> to vector<1x1x1xf32>
    %206 = vector.extract %205[0, 0, 0] : f32 from vector<1x1x1xf32>
    %cst_84 = arith.constant 9.765625E-4 : f32
    %207 = arith.mulf %206, %cst_84 : f32
    %cst_85 = arith.constant 1.000000e+00 : f32
    %208 = arith.subf %cst_85, %194 : f32
    %209 = vector.broadcast %194 : f32 to vector<32x128xf32>
    %210 = arith.mulf %209, %189 : vector<32x128xf32>
    %211 = vector.broadcast %208 : f32 to vector<32x128xf32>
    %212 = arith.mulf %211, %200 : vector<32x128xf32>
    %213 = arith.addf %210, %212 : vector<32x128xf32>
    %cst_86 = arith.constant 9.99999997E-7 : f32
    %214 = arith.cmpf olt, %207, %cst_86 : f32
    %215 = arith.extui %214 : i1 to i32
    %216 = arith.sitofp %215 : i32 to f32
    %217 = arith.mulf %208, %216 : f32
    %218 = arith.maximumf %194, %217 : f32
    %cst_87 = arith.constant dense<0.000000e+00> : vector<32x128xf32>
    %219 = tpu.matmul %213, %10, %cst_87 {dimension_numbers = #tpu.dot_dimension_numbers<[1], [0], [0], [1], [0, 0, 1, 1], [], []>} : vector<32x128xf32>, vector<128x128xf32>, vector<32x128xf32> -> vector<32x128xf32>
    %cst_88 = arith.constant dense<0.000000e+00> : vector<32x128xf32>
    %220 = tpu.matmul %0, %219, %cst_88 {dimension_numbers = #tpu.dot_dimension_numbers<[1], [0], [0], [1], [0, 0, 1, 1], [], []>} : vector<32x32xf32>, vector<32x128xf32>, vector<32x128xf32> -> vector<32x128xf32>
    %221 = arith.addf %220, %16 : vector<32x128xf32>
    %cst_89 = arith.constant 0.000000e+00 : f32
    %222 = vector.broadcast %cst_89 : f32 to vector<32x128xf32>
    %223 = arith.maximumf %221, %222 : vector<32x128xf32>
    %224 = arith.subf %146, %223 : vector<32x128xf32>
    %225 = arith.subf %224, %213 : vector<32x128xf32>
    %226 = math.absf %225 : vector<32x128xf32>
    %227 = vector.shape_cast %226 : vector<32x128xf32> to vector<1x32x128xf32>
    %cst_90 = arith.constant dense<0.000000e+00> : vector<1xf32>
    %228 = vector.multi_reduction <add>, %227, %cst_90 [1, 2] : vector<1x32x128xf32> to vector<1xf32>
    %229 = vector.shape_cast %228 : vector<1xf32> to vector<1x1x1xf32>
    %230 = vector.extract %229[0, 0, 0] : f32 from vector<1x1x1xf32>
    %cst_91 = arith.constant 9.765625E-4 : f32
    %231 = arith.mulf %230, %cst_91 : f32
    %cst_92 = arith.constant 1.000000e+00 : f32
    %232 = arith.subf %cst_92, %218 : f32
    %233 = vector.broadcast %218 : f32 to vector<32x128xf32>
    %234 = arith.mulf %233, %213 : vector<32x128xf32>
    %235 = vector.broadcast %232 : f32 to vector<32x128xf32>
    %236 = arith.mulf %235, %224 : vector<32x128xf32>
    %237 = arith.addf %234, %236 : vector<32x128xf32>
    %cst_93 = arith.constant 9.99999997E-7 : f32
    %238 = arith.cmpf olt, %231, %cst_93 : f32
    %239 = arith.extui %238 : i1 to i32
    %240 = arith.sitofp %239 : i32 to f32
    %241 = arith.mulf %232, %240 : f32
    %242 = arith.maximumf %218, %241 : f32
    %cst_94 = arith.constant dense<0.000000e+00> : vector<32x128xf32>
    %243 = tpu.matmul %237, %10, %cst_94 {dimension_numbers = #tpu.dot_dimension_numbers<[1], [0], [0], [1], [0, 0, 1, 1], [], []>} : vector<32x128xf32>, vector<128x128xf32>, vector<32x128xf32> -> vector<32x128xf32>
    %cst_95 = arith.constant dense<0.000000e+00> : vector<32x128xf32>
    %244 = tpu.matmul %0, %243, %cst_95 {dimension_numbers = #tpu.dot_dimension_numbers<[1], [0], [0], [1], [0, 0, 1, 1], [], []>} : vector<32x32xf32>, vector<32x128xf32>, vector<32x128xf32> -> vector<32x128xf32>
    %245 = arith.addf %244, %16 : vector<32x128xf32>
    %cst_96 = arith.constant 0.000000e+00 : f32
    %246 = vector.broadcast %cst_96 : f32 to vector<32x128xf32>
    %247 = arith.maximumf %245, %246 : vector<32x128xf32>
    %248 = arith.subf %146, %247 : vector<32x128xf32>
    %cst_97 = arith.constant 1.000000e+00 : f32
    %249 = arith.subf %cst_97, %242 : f32
    %250 = vector.broadcast %242 : f32 to vector<32x128xf32>
    %251 = arith.mulf %250, %237 : vector<32x128xf32>
    %252 = vector.broadcast %249 : f32 to vector<32x128xf32>
    %253 = arith.mulf %252, %248 : vector<32x128xf32>
    %254 = arith.addf %251, %253 : vector<32x128xf32>
    %cst_98 = arith.constant dense<0.000000e+00> : vector<32x128xf32>
    %255 = tpu.matmul %254, %12, %cst_98 {dimension_numbers = #tpu.dot_dimension_numbers<[1], [0], [0], [1], [0, 0, 1, 1], [], []>} : vector<32x128xf32>, vector<128x128xf32>, vector<32x128xf32> -> vector<32x128xf32>
    %cst_99 = arith.constant dense<0.000000e+00> : vector<32x128xf32>
    %256 = tpu.matmul %0, %255, %cst_99 {dimension_numbers = #tpu.dot_dimension_numbers<[1], [0], [0], [1], [0, 0, 1, 1], [], []>} : vector<32x32xf32>, vector<32x128xf32>, vector<32x128xf32> -> vector<32x128xf32>
    %257 = arith.addf %256, %20 : vector<32x128xf32>
    %cst_100 = arith.constant 0.000000e+00 : f32
    %258 = vector.broadcast %cst_100 : f32 to vector<32x128xf32>
    %259 = arith.maximumf %257, %258 : vector<32x128xf32>
    %260 = arith.subf %254, %259 : vector<32x128xf32>
    %261 = arith.subf %260, %254 : vector<32x128xf32>
    %262 = math.absf %261 : vector<32x128xf32>
    %263 = vector.shape_cast %262 : vector<32x128xf32> to vector<1x32x128xf32>
    %cst_101 = arith.constant dense<0.000000e+00> : vector<1xf32>
    %264 = vector.multi_reduction <add>, %263, %cst_101 [1, 2] : vector<1x32x128xf32> to vector<1xf32>
    %265 = vector.shape_cast %264 : vector<1xf32> to vector<1x1x1xf32>
    %266 = vector.extract %265[0, 0, 0] : f32 from vector<1x1x1xf32>
    %cst_102 = arith.constant 9.765625E-4 : f32
    %267 = arith.mulf %266, %cst_102 : f32
    %cst_103 = arith.constant 1.000000e+00 : f32
    %cst_104 = arith.constant 0.000000e+00 : f32
    %268 = arith.subf %cst_103, %cst_104 : f32
    %cst_105 = arith.constant 0.000000e+00 : f32
    %269 = vector.broadcast %cst_105 : f32 to vector<32x128xf32>
    %270 = arith.mulf %269, %254 : vector<32x128xf32>
    %271 = vector.broadcast %268 : f32 to vector<32x128xf32>
    %272 = arith.mulf %271, %260 : vector<32x128xf32>
    %273 = arith.addf %270, %272 : vector<32x128xf32>
    %cst_106 = arith.constant 9.99999997E-7 : f32
    %274 = arith.cmpf olt, %267, %cst_106 : f32
    %275 = arith.extui %274 : i1 to i32
    %276 = arith.sitofp %275 : i32 to f32
    %277 = arith.mulf %268, %276 : f32
    %cst_107 = arith.constant 0.000000e+00 : f32
    %278 = arith.maximumf %cst_107, %277 : f32
    %cst_108 = arith.constant dense<0.000000e+00> : vector<32x128xf32>
    %279 = tpu.matmul %273, %12, %cst_108 {dimension_numbers = #tpu.dot_dimension_numbers<[1], [0], [0], [1], [0, 0, 1, 1], [], []>} : vector<32x128xf32>, vector<128x128xf32>, vector<32x128xf32> -> vector<32x128xf32>
    %cst_109 = arith.constant dense<0.000000e+00> : vector<32x128xf32>
    %280 = tpu.matmul %0, %279, %cst_109 {dimension_numbers = #tpu.dot_dimension_numbers<[1], [0], [0], [1], [0, 0, 1, 1], [], []>} : vector<32x32xf32>, vector<32x128xf32>, vector<32x128xf32> -> vector<32x128xf32>
    %281 = arith.addf %280, %20 : vector<32x128xf32>
    %cst_110 = arith.constant 0.000000e+00 : f32
    %282 = vector.broadcast %cst_110 : f32 to vector<32x128xf32>
    %283 = arith.maximumf %281, %282 : vector<32x128xf32>
    %284 = arith.subf %254, %283 : vector<32x128xf32>
    %285 = arith.subf %284, %273 : vector<32x128xf32>
    %286 = math.absf %285 : vector<32x128xf32>
    %287 = vector.shape_cast %286 : vector<32x128xf32> to vector<1x32x128xf32>
    %cst_111 = arith.constant dense<0.000000e+00> : vector<1xf32>
    %288 = vector.multi_reduction <add>, %287, %cst_111 [1, 2] : vector<1x32x128xf32> to vector<1xf32>
    %289 = vector.shape_cast %288 : vector<1xf32> to vector<1x1x1xf32>
    %290 = vector.extract %289[0, 0, 0] : f32 from vector<1x1x1xf32>
    %cst_112 = arith.constant 9.765625E-4 : f32
    %291 = arith.mulf %290, %cst_112 : f32
    %cst_113 = arith.constant 1.000000e+00 : f32
    %292 = arith.subf %cst_113, %278 : f32
    %293 = vector.broadcast %278 : f32 to vector<32x128xf32>
    %294 = arith.mulf %293, %273 : vector<32x128xf32>
    %295 = vector.broadcast %292 : f32 to vector<32x128xf32>
    %296 = arith.mulf %295, %284 : vector<32x128xf32>
    %297 = arith.addf %294, %296 : vector<32x128xf32>
    %cst_114 = arith.constant 9.99999997E-7 : f32
    %298 = arith.cmpf olt, %291, %cst_114 : f32
    %299 = arith.extui %298 : i1 to i32
    %300 = arith.sitofp %299 : i32 to f32
    %301 = arith.mulf %292, %300 : f32
    %302 = arith.maximumf %278, %301 : f32
    %cst_115 = arith.constant dense<0.000000e+00> : vector<32x128xf32>
    %303 = tpu.matmul %297, %12, %cst_115 {dimension_numbers = #tpu.dot_dimension_numbers<[1], [0], [0], [1], [0, 0, 1, 1], [], []>} : vector<32x128xf32>, vector<128x128xf32>, vector<32x128xf32> -> vector<32x128xf32>
    %cst_116 = arith.constant dense<0.000000e+00> : vector<32x128xf32>
    %304 = tpu.matmul %0, %303, %cst_116 {dimension_numbers = #tpu.dot_dimension_numbers<[1], [0], [0], [1], [0, 0, 1, 1], [], []>} : vector<32x32xf32>, vector<32x128xf32>, vector<32x128xf32> -> vector<32x128xf32>
    %305 = arith.addf %304, %20 : vector<32x128xf32>
    %cst_117 = arith.constant 0.000000e+00 : f32
    %306 = vector.broadcast %cst_117 : f32 to vector<32x128xf32>
    %307 = arith.maximumf %305, %306 : vector<32x128xf32>
    %308 = arith.subf %254, %307 : vector<32x128xf32>
    %309 = arith.subf %308, %297 : vector<32x128xf32>
    %310 = math.absf %309 : vector<32x128xf32>
    %311 = vector.shape_cast %310 : vector<32x128xf32> to vector<1x32x128xf32>
    %cst_118 = arith.constant dense<0.000000e+00> : vector<1xf32>
    %312 = vector.multi_reduction <add>, %311, %cst_118 [1, 2] : vector<1x32x128xf32> to vector<1xf32>
    %313 = vector.shape_cast %312 : vector<1xf32> to vector<1x1x1xf32>
    %314 = vector.extract %313[0, 0, 0] : f32 from vector<1x1x1xf32>
    %cst_119 = arith.constant 9.765625E-4 : f32
    %315 = arith.mulf %314, %cst_119 : f32
    %cst_120 = arith.constant 1.000000e+00 : f32
    %316 = arith.subf %cst_120, %302 : f32
    %317 = vector.broadcast %302 : f32 to vector<32x128xf32>
    %318 = arith.mulf %317, %297 : vector<32x128xf32>
    %319 = vector.broadcast %316 : f32 to vector<32x128xf32>
    %320 = arith.mulf %319, %308 : vector<32x128xf32>
    %321 = arith.addf %318, %320 : vector<32x128xf32>
    %cst_121 = arith.constant 9.99999997E-7 : f32
    %322 = arith.cmpf olt, %315, %cst_121 : f32
    %323 = arith.extui %322 : i1 to i32
    %324 = arith.sitofp %323 : i32 to f32
    %325 = arith.mulf %316, %324 : f32
    %326 = arith.maximumf %302, %325 : f32
    %cst_122 = arith.constant dense<0.000000e+00> : vector<32x128xf32>
    %327 = tpu.matmul %321, %12, %cst_122 {dimension_numbers = #tpu.dot_dimension_numbers<[1], [0], [0], [1], [0, 0, 1, 1], [], []>} : vector<32x128xf32>, vector<128x128xf32>, vector<32x128xf32> -> vector<32x128xf32>
    %cst_123 = arith.constant dense<0.000000e+00> : vector<32x128xf32>
    %328 = tpu.matmul %0, %327, %cst_123 {dimension_numbers = #tpu.dot_dimension_numbers<[1], [0], [0], [1], [0, 0, 1, 1], [], []>} : vector<32x32xf32>, vector<32x128xf32>, vector<32x128xf32> -> vector<32x128xf32>
    %329 = arith.addf %328, %20 : vector<32x128xf32>
    %cst_124 = arith.constant 0.000000e+00 : f32
    %330 = vector.broadcast %cst_124 : f32 to vector<32x128xf32>
    %331 = arith.maximumf %329, %330 : vector<32x128xf32>
    %332 = arith.subf %254, %331 : vector<32x128xf32>
    %333 = arith.subf %332, %321 : vector<32x128xf32>
    %334 = math.absf %333 : vector<32x128xf32>
    %335 = vector.shape_cast %334 : vector<32x128xf32> to vector<1x32x128xf32>
    %cst_125 = arith.constant dense<0.000000e+00> : vector<1xf32>
    %336 = vector.multi_reduction <add>, %335, %cst_125 [1, 2] : vector<1x32x128xf32> to vector<1xf32>
    %337 = vector.shape_cast %336 : vector<1xf32> to vector<1x1x1xf32>
    %338 = vector.extract %337[0, 0, 0] : f32 from vector<1x1x1xf32>
    %cst_126 = arith.constant 9.765625E-4 : f32
    %339 = arith.mulf %338, %cst_126 : f32
    %cst_127 = arith.constant 1.000000e+00 : f32
    %340 = arith.subf %cst_127, %326 : f32
    %341 = vector.broadcast %326 : f32 to vector<32x128xf32>
    %342 = arith.mulf %341, %321 : vector<32x128xf32>
    %343 = vector.broadcast %340 : f32 to vector<32x128xf32>
    %344 = arith.mulf %343, %332 : vector<32x128xf32>
    %345 = arith.addf %342, %344 : vector<32x128xf32>
    %cst_128 = arith.constant 9.99999997E-7 : f32
    %346 = arith.cmpf olt, %339, %cst_128 : f32
    %347 = arith.extui %346 : i1 to i32
    %348 = arith.sitofp %347 : i32 to f32
    %349 = arith.mulf %340, %348 : f32
    %350 = arith.maximumf %326, %349 : f32
    %cst_129 = arith.constant dense<0.000000e+00> : vector<32x128xf32>
    %351 = tpu.matmul %345, %12, %cst_129 {dimension_numbers = #tpu.dot_dimension_numbers<[1], [0], [0], [1], [0, 0, 1, 1], [], []>} : vector<32x128xf32>, vector<128x128xf32>, vector<32x128xf32> -> vector<32x128xf32>
    %cst_130 = arith.constant dense<0.000000e+00> : vector<32x128xf32>
    %352 = tpu.matmul %0, %351, %cst_130 {dimension_numbers = #tpu.dot_dimension_numbers<[1], [0], [0], [1], [0, 0, 1, 1], [], []>} : vector<32x32xf32>, vector<32x128xf32>, vector<32x128xf32> -> vector<32x128xf32>
    %353 = arith.addf %352, %20 : vector<32x128xf32>
    %cst_131 = arith.constant 0.000000e+00 : f32
    %354 = vector.broadcast %cst_131 : f32 to vector<32x128xf32>
    %355 = arith.maximumf %353, %354 : vector<32x128xf32>
    %356 = arith.subf %254, %355 : vector<32x128xf32>
    %cst_132 = arith.constant 1.000000e+00 : f32
    %357 = arith.subf %cst_132, %350 : f32
    %358 = vector.broadcast %350 : f32 to vector<32x128xf32>
    %359 = arith.mulf %358, %345 : vector<32x128xf32>
    %360 = vector.broadcast %357 : f32 to vector<32x128xf32>
    %361 = arith.mulf %360, %356 : vector<32x128xf32>
    %362 = arith.addf %359, %361 : vector<32x128xf32>
    %c0_133 = arith.constant 0 : index
    %c0_134 = arith.constant 0 : index
    %363 = vector.load %arg7[%c0_133, %c0_134] : memref<128x128xf32, #tpu.memory_space<vmem>>, vector<128x128xf32>
    %cst_135 = arith.constant dense<0.000000e+00> : vector<32x128xf32>
    %364 = tpu.matmul %38, %363, %cst_135 {dimension_numbers = #tpu.dot_dimension_numbers<[1], [0], [0], [1], [0, 0, 1, 1], [], []>} : vector<32x128xf32>, vector<128x128xf32>, vector<32x128xf32> -> vector<32x128xf32>
    %c0_136 = arith.constant 0 : index
    %c0_137 = arith.constant 0 : index
    %365 = vector.load %arg8[%c0_136, %c0_137] : memref<128x128xf32, #tpu.memory_space<vmem>>, vector<128x128xf32>
    %cst_138 = arith.constant dense<0.000000e+00> : vector<32x128xf32>
    %366 = tpu.matmul %362, %365, %cst_138 {dimension_numbers = #tpu.dot_dimension_numbers<[1], [0], [0], [1], [0, 0, 1, 1], [], []>} : vector<32x128xf32>, vector<128x128xf32>, vector<32x128xf32> -> vector<32x128xf32>
    %367 = arith.addf %364, %366 : vector<32x128xf32>
    %c0_139 = arith.constant 0 : index
    %c0_140 = arith.constant 0 : index
    %368 = vector.load %arg9[%c0_139, %c0_140] : memref<1x128xf32, #tpu.memory_space<vmem>>, vector<1x128xf32>
    %369 = vector.broadcast %368 : vector<1x128xf32> to vector<32x128xf32>
    %370 = arith.addf %367, %369 : vector<32x128xf32>
    %cst_141 = arith.constant 0.000000e+00 : f32
    %371 = vector.broadcast %cst_141 : f32 to vector<32x128xf32>
    %372 = arith.maximumf %370, %371 : vector<32x128xf32>
    %c0_142 = arith.constant 0 : index
    %c0_143 = arith.constant 0 : index
    %373 = vector.load %arg10[%c0_142, %c0_143] : memref<128x128xf32, #tpu.memory_space<vmem>>, vector<128x128xf32>
    %cst_144 = arith.constant dense<0.000000e+00> : vector<32x128xf32>
    %374 = tpu.matmul %372, %373, %cst_144 {dimension_numbers = #tpu.dot_dimension_numbers<[1], [0], [0], [1], [0, 0, 1, 1], [], []>} : vector<32x128xf32>, vector<128x128xf32>, vector<32x128xf32> -> vector<32x128xf32>
    %c0_145 = arith.constant 0 : index
    %c0_146 = arith.constant 0 : index
    %375 = vector.load %arg11[%c0_145, %c0_146] : memref<1x128xf32, #tpu.memory_space<vmem>>, vector<1x128xf32>
    %376 = vector.broadcast %375 : vector<1x128xf32> to vector<32x128xf32>
    %377 = arith.addf %374, %376 : vector<32x128xf32>
    %c0_147 = arith.constant 0 : index
    %c0_148 = arith.constant 0 : index
    %378 = vector.load %arg12[%c0_147, %c0_148] : memref<32x128xf32, #tpu.memory_space<vmem>>, vector<32x128xf32>
    tpu.vector_store %arg12[%c0_147, %c0_148], %377 {strides = array<i32>} : memref<32x128xf32, #tpu.memory_space<vmem>>, vector<32x128xf32>,
    return
  }
  func.func @transform_0(%arg0: i32) -> (i32, i32) {
    %c0_i32 = arith.constant 0 : i32
    %c0_i32_0 = arith.constant 0 : i32
    %c0_i32_1 = arith.constant 0 : i32
    return %c0_i32, %c0_i32_0 : i32, i32
  }
  func.func @transform_1(%arg0: i32) -> (i32, i32) {
    %c0_i32 = arith.constant 0 : i32
    %c0_i32_0 = arith.constant 0 : i32
    %c0_i32_1 = arith.constant 0 : i32
    return %c0_i32, %c0_i32_0 : i32, i32
  }
  func.func @transform_2(%arg0: i32) -> (i32, i32) {
    %c0_i32 = arith.constant 0 : i32
    %c0_i32_0 = arith.constant 0 : i32
    %c0_i32_1 = arith.constant 0 : i32
    return %c0_i32, %c0_i32_0 : i32, i32
  }
  func.func @transform_3(%arg0: i32) -> (i32, i32) {
    %c0_i32 = arith.constant 0 : i32
    %c0_i32_0 = arith.constant 0 : i32
    %c0_i32_1 = arith.constant 0 : i32
    return %c0_i32, %c0_i32_0 : i32, i32
  }
  func.func @transform_4(%arg0: i32) -> (i32, i32, i32) {
    %c0_i32 = arith.constant 0 : i32
    %c0_i32_0 = arith.constant 0 : i32
    %c0_i32_1 = arith.constant 0 : i32
    %c0_i32_2 = arith.constant 0 : i32
    return %c0_i32, %c0_i32_0, %c0_i32_1 : i32, i32, i32
  }
  func.func @transform_5(%arg0: i32) -> (i32, i32, i32) {
    %c0_i32 = arith.constant 0 : i32
    %c0_i32_0 = arith.constant 0 : i32
    %c0_i32_1 = arith.constant 0 : i32
    %c0_i32_2 = arith.constant 0 : i32
    return %c0_i32, %c0_i32_0, %c0_i32_1 : i32, i32, i32
  }
  func.func @transform_6(%arg0: i32) -> (i32, i32) {
    %c0_i32 = arith.constant 0 : i32
    %c0_i32_0 = arith.constant 0 : i32
    %c0_i32_1 = arith.constant 0 : i32
    return %c0_i32, %c0_i32_0 : i32, i32
  }
  func.func @transform_7(%arg0: i32) -> (i32, i32) {
    %c0_i32 = arith.constant 0 : i32
    %c0_i32_0 = arith.constant 0 : i32
    %c0_i32_1 = arith.constant 0 : i32
    return %c0_i32, %c0_i32_0 : i32, i32
  }
  func.func @transform_8(%arg0: i32) -> (i32, i32) {
    %c0_i32 = arith.constant 0 : i32
    %c0_i32_0 = arith.constant 0 : i32
    %c0_i32_1 = arith.constant 0 : i32
    return %c0_i32, %c0_i32_0 : i32, i32
  }
  func.func @transform_9(%arg0: i32) -> (i32, i32) {
    %c0_i32 = arith.constant 0 : i32
    %c0_i32_0 = arith.constant 0 : i32
    %c0_i32_1 = arith.constant 0 : i32
    return %c0_i32, %c0_i32_0 : i32, i32
  }
  func.func @transform_10(%arg0: i32) -> (i32, i32) {
    %c0_i32 = arith.constant 0 : i32
    %c0_i32_0 = arith.constant 0 : i32
    %c0_i32_1 = arith.constant 0 : i32
    return %c0_i32, %c0_i32_0 : i32, i32
  }
  func.func @transform_11(%arg0: i32) -> (i32, i32) {
    %c0_i32 = arith.constant 0 : i32
    %c0_i32_0 = arith.constant 0 : i32
    %c0_i32_1 = arith.constant 0 : i32
    return %c0_i32, %c0_i32_0 : i32, i32
  }
}

</mosaic_0001>

<bundles_post_ra>
// kernel: iresgnn_forward.1
= control target key start
LH: loop header
LB: loop body
LE: loop exit
PB: predicated region body
PF: predicated region fallthrough
CT: control target
= control target key end

     0   :  { %vm291_vm0 = vcmask 261120   ;;  %s6125_s16 = smov 0.0   ;;  %s8117_s2 = inlined_call_operand.vmem [shape: f32[128,128], index: 2, kind: input, shape index: {}]   ;;  %s8118_s1 = inlined_call_operand.vmem [shape: f32[32,128], index: 1, kind: input, shape index: {}]   ;;  %s8119_s4 = inlined_call_operand.vmem [shape: f32[2,128,128], index: 4, kind: input, shape index: {}]   ;;  %s8120_s3 = inlined_call_operand.vmem [shape: f32[1,128], index: 3, kind: input, shape index: {}]   ;;  %s8121_s0 = inlined_call_operand.vmem [shape: f32[32,32], index: 0, kind: input, shape index: {}]   ;;  %s8122_s5 = inlined_call_operand.vmem [shape: f32[2,1,128], index: 5, kind: input, shape index: {}]   ;;  %s8123_s6 = inlined_call_operand.vmem [shape: f32[128,128], index: 6, kind: input, shape index: {}]   ;;  %s8124_s7 = inlined_call_operand.vmem [shape: f32[128,128], index: 7, kind: input, shape index: {}]   ;;  %s8125_s9 = inlined_call_operand.vmem [shape: f32[128,128], index: 9, kind: input, shape index: {}]   ;;  %s8126_s8 = inlined_call_operand.vmem [shape: f32[1,128], index: 8, kind: input, shape index: {}]   ;;  %s8127_s10 = inlined_call_operand.vmem [shape: f32[1,128], index: 10, kind: input, shape index: {}]   ;;  %s8128_s11 = inlined_call_operand.vmem [shape: f32[32,128], index: 11, kind: output, shape index: {}]  }
   0x1   :  { %v61_v0 = vld [vmem:[%s8117_s2 + $0x78] sm:$0xff]  ;;  %v60_v1 = vld [vmem:[%s8117_s2 + $0x70] sm:$0xff]  ;;  %v59_v2 = vld [vmem:[%s8117_s2 + $0x68] sm:$0xff] }
   0x2   :  { %4947 = vmatprep.subr.mxu0 %v61_v0  ;;  %v58_v3 = vld [vmem:[%s8117_s2 + $0x60] sm:$0xff]  ;;  %v57_v5 = vld [vmem:[%s8117_s2 + $0x58] sm:$0xff]  ;;  %v6213_v7 = vld [vmem:[%s8119_s4 + $0x70] sm:$0xff] }
   0x3   :  { %4948 = vmatpush3.msra.mxu0 %v61_v0  ;;  %v42_v4 = vld [vmem:[%s8118_s1] sm:$0xff]  ;;  %v6207_v6 = vld [vmem:[%s8119_s4 + $0x78] sm:$0xff]  ;;  %v56_v8 = vld [vmem:[%s8117_s2 + $0x50] sm:$0xff] }
   0x4   :  { %4949 = vmatprep.subr.mxu0 %v60_v1  ;;  %4979 = vmatprep.mubr.f32.mxu0 %v42_v4  ;;  %v6222_v9 = vld [vmem:[%s8119_s4 + $0x68] sm:$0xff]  ;;  %v6232_v11 = vld [vmem:[%s8119_s4 + $0x60] sm:$0xff]  ;;  %v6242_v13 = vld [vmem:[%s8119_s4 + $0x58] sm:$0xff] }
   0x5   :  { %4950 = vmatpush3.msra.mxu0 %v60_v1  ;;  %4985 = vmatprep.subr.mxu1 %v6207_v6  ;;  %v55_v10 = vld [vmem:[%s8117_s2 + $0x48] sm:$0xff]  ;;  %v54_v12 = vld [vmem:[%s8117_s2 + $0x40] sm:$0xff]  ;;  %v53_v14 = vld [vmem:[%s8117_s2 + $0x38] sm:$0xff] }
   0x6   :  { %4951 = vmatprep.subr.mxu0 %v59_v2  ;;  %4986 = vmatpush3.msra.mxu1 %v6207_v6  ;;  %v6252_v15 = vld [vmem:[%s8119_s4 + $0x50] sm:$0xff]  ;;  %v6262_v17 = vld [vmem:[%s8119_s4 + $0x48] sm:$0xff]  ;;  %v6272_v19 = vld [vmem:[%s8119_s4 + $0x40] sm:$0xff] }
   0x7   :  { %4952 = vmatpush3.msra.mxu0 %v59_v2  ;;  %4987 = vmatprep.subr.mxu1 %v6213_v7  ;;  %v52_v16 = vld [vmem:[%s8117_s2 + $0x30] sm:$0xff]  ;;  %v51_v18 = vld [vmem:[%s8117_s2 + $0x28] sm:$0xff]  ;;  %v50_v20 = vld [vmem:[%s8117_s2 + $0x20] sm:$0xff] }
   0x8   :  { %4953 = vmatprep.subr.mxu0 %v58_v3  ;;  %4988 = vmatpush3.msra.mxu1 %v6213_v7  ;;  %v6282_v21 = vld [vmem:[%s8119_s4 + $0x38] sm:$0xff]  ;;  %v6292_v23 = vld [vmem:[%s8119_s4 + $0x30] sm:$0xff]  ;;  %v6302_v25 = vld [vmem:[%s8119_s4 + $0x28] sm:$0xff] }
   0x9   :  { %4954 = vmatpush3.msra.mxu0 %v58_v3  ;;  %4989 = vmatprep.subr.mxu1 %v6222_v9  ;;  %v49_v22 = vld [vmem:[%s8117_s2 + $0x18] sm:$0xff]  ;;  %v48_v24 = vld [vmem:[%s8117_s2 + $0x10] sm:$0xff]  ;;  %v47_v26 = vld [vmem:[%s8117_s2 + $0x8] sm:$0xff] }
   0xa   :  { %4955 = vmatprep.subr.mxu0 %v57_v5  ;;  %4990 = vmatpush3.msra.mxu1 %v6222_v9  ;;  %v6312_v27 = vld [vmem:[%s8119_s4 + $0x20] sm:$0xff]  ;;  %v43_v29 = vld [vmem:[%s8118_s1 + $0x8] sm:$0xff]  ;;  %v44_v30 = vld [vmem:[%s8118_s1 + $0x10] sm:$0xff] }
   0xb   :  { %4956 = vmatpush3.msra.mxu0 %v57_v5  ;;  %4991 = vmatprep.subr.mxu1 %v6232_v11  ;;  %v46_v28 = vld [vmem:[%s8117_s2] sm:$0xff]  ;;  %v45_v31 = vld [vmem:[%s8118_s1 + $0x18] sm:$0xff]  ;;  %v6340_v33 = vld [vmem:[%s8119_s4 + $0x10] sm:$0xff] }
   0xc   :  { %4957 = vmatprep.subr.mxu0 %v56_v8  ;;  %4992 = vmatpush3.msra.mxu1 %v6232_v11  ;;  %v6333_v32 = vld [vmem:[%s8119_s4 + $0x18] sm:$0xff]  ;;  %v6347_v34 = vld [vmem:[%s8119_s4 + $0x8] sm:$0xff]  ;;  %v6354_v35 = vld [vmem:[%s8119_s4] sm:$0xff] }
   0xd   :  { %4958 = vmatpush3.msra.mxu0 %v56_v8  ;;  %4993 = vmatprep.subr.mxu1 %v6242_v13  ;;  %v4269_v36 = vld [vmem:[%s8120_s3] ss:$0 sm:$0xff]  ;;  %v6385_v54 = vld [vmem:[%s8121_s0 + $0x8] sm:$0xff]  ;;  %v6390_v55 = vld [vmem:[%s8119_s4 + $0xf8] sm:$0xff] }
   0xe   :  { %4959 = vmatprep.subr.mxu0 %v55_v10  ;;  %4994 = vmatpush3.msra.mxu1 %v6242_v13  ;;  %v6376_v49 = vld [vmem:[%s8121_s0] sm:$0xff]  ;;  %v6395_v56 = vld [vmem:[%s8121_s0 + $0x10] sm:$0xff]  ;;  %v6410_v58 = vld [vmem:[%s8121_s0 + $0x18] sm:$0xff] }
   0xf   :  { %4960 = vmatpush3.msra.mxu0 %v55_v10  ;;  %4995 = vmatprep.subr.mxu1 %v6252_v15  ;;  %v6400_v57 = vld [vmem:[%s8119_s4 + $0xf0] sm:$0xff]  ;;  %v6416_v59 = vld [vmem:[%s8119_s4 + $0xe8] sm:$0xff]  ;;  %v6423_v60 = vld [vmem:[%s8119_s4 + $0xe0] sm:$0xff] }
  0x10   :  { %4961 = vmatprep.subr.mxu0 %v54_v12  ;;  %4996 = vmatpush3.msra.mxu1 %v6252_v15  ;;  %v6432_v61 = vld [vmem:[%s8119_s4 + $0xd8] sm:$0xff]  ;;  %v6439_v62 = vld [vmem:[%s8119_s4 + $0xd0] sm:$0xff]  ;;  %v6446_v63 = vld [vmem:[%s8119_s4 + $0xc8] sm:$0xff] }
  0x11   :  { %4962 = vmatpush3.msra.mxu0 %v54_v12  ;;  %4997 = vmatprep.subr.mxu1 %v6262_v17  ;;  %v6453_v0 = vld [vmem:[%s8119_s4 + $0xc0] sm:$0xff]  ;;  %v6460_v1 = vld [vmem:[%s8119_s4 + $0xb8] sm:$0xff]  ;;  %v6467_v2 = vld [vmem:[%s8119_s4 + $0xb0] sm:$0xff] }
  0x12   :  { %4963 = vmatprep.subr.mxu0 %v53_v14  ;;  %4998 = vmatpush3.msra.mxu1 %v6262_v17  ;;  %v6474_v3 = vld [vmem:[%s8119_s4 + $0xa8] sm:$0xff]  ;;  %v6483_v4 = vld [vmem:[%s8119_s4 + $0xa0] sm:$0xff]  ;;  %v6490_v5 = vld [vmem:[%s8119_s4 + $0x98] sm:$0xff] }
  0x13   :  { %4964 = vmatpush3.msra.mxu0 %v53_v14  ;;  %4999 = vmatprep.subr.mxu1 %v6272_v19  ;;  %v6497_v8 = vld [vmem:[%s8119_s4 + $0x90] sm:$0xff]  ;;  %v6504_v10 = vld [vmem:[%s8119_s4 + $0x88] sm:$0xff]  ;;  %v6511_v12 = vld [vmem:[%s8119_s4 + $0x80] sm:$0xff] }
  0x14   :  { %4965 = vmatprep.subr.mxu0 %v52_v16  ;;  %5000 = vmatpush3.msra.mxu1 %v6272_v19  ;;  %v4286_v14 = vld [vmem:[%s8122_s5] ss:$0 sm:$0xff] }
  0x15   :  { %4966 = vmatpush3.msra.mxu0 %v52_v16  ;;  %5001 = vmatprep.subr.mxu1 %v6282_v21 }
  0x16   :  { %4967 = vmatprep.subr.mxu0 %v51_v18  ;;  %5002 = vmatpush3.msra.mxu1 %v6282_v21 }
  0x17   :  { %4968 = vmatpush3.msra.mxu0 %v51_v18  ;;  %5003 = vmatprep.subr.mxu1 %v6292_v23 }
  0x18   :  { %4969 = vmatprep.subr.mxu0 %v50_v20  ;;  %5004 = vmatpush3.msra.mxu1 %v6292_v23 }
  0x19   :  { %4970 = vmatpush3.msra.mxu0 %v50_v20  ;;  %5005 = vmatprep.subr.mxu1 %v6302_v25 }
  0x1a   :  { %4971 = vmatprep.subr.mxu0 %v49_v22  ;;  %5006 = vmatpush3.msra.mxu1 %v6302_v25 }
  0x1b   :  { %4972 = vmatpush3.msra.mxu0 %v49_v22  ;;  %5007 = vmatprep.subr.mxu1 %v6312_v27 }
  0x1c   :  { %4973 = vmatprep.subr.mxu0 %v48_v24  ;;  %5008 = vmatpush3.msra.mxu1 %v6312_v27 }
  0x1d   :  { %4974 = vmatpush3.msra.mxu0 %v48_v24  ;;  %5009 = vmatprep.subr.mxu1 %v6333_v32 }
  0x1e   :  { %4975 = vmatprep.subr.mxu0 %v47_v26  ;;  %5010 = vmatpush3.msra.mxu1 %v6333_v32 }
  0x1f   :  { %4976 = vmatpush3.msra.mxu0 %v47_v26  ;;  %5011 = vmatprep.subr.mxu1 %v6340_v33 }
  0x20   :  { %4977 = vmatprep.subr.mxu0 %v46_v28  ;;  %5012 = vmatpush3.msra.mxu1 %v6340_v33 }
  0x21   :  { %4978 = vmatpush3.msra.mxu0 %v46_v28  ;;  %5013 = vmatprep.subr.mxu1 %v6347_v34 }
  0x22   :  { %4980 = vmatmul.mubr.f32.vlgmr.msra.gmra.mxu0 %v43_v29  ;;  %5014 = vmatpush3.msra.mxu1 %v6347_v34 }
  0x23   :  { %4982 = vmatprep.mubr.f32.mxu0 %v44_v30  ;;  %5015 = vmatprep.subr.mxu1 %v6354_v35 }
  0x24   :  { %5016 = vmatpush3.msra.mxu1 %v6354_v35 }
  0x26   :  { %4983 = vmatmul.mubr.f32.gmra.mxu0 %v45_v31 }
  0x27   :  { %5083 = vmatprep.mubr.msk.f32.mxu0 %vm291_vm0, %v6376_v49 }
  0xe2   :  { %v4981_v37 = vpop.f32.mrf.mxu0 }
  0xe3   :  { %v141_v38 = vadd.f32 %v4981_v37, %v4269_v36 }
  0xe4   :  { %v135_v39 = vpop.f32.mrf.mxu0 }
  0xe5   :  { %v136_v40 = vadd.f32 %v4269_v36, %v135_v39  ;;  %v6363_v43 = vmax.f32 %v141_v38, 0.0 }
  0xe6   :  { %v4984_v41 = vpop.f32.mrf.mxu0 }
  0xe7   :  { %v6361_v42 = vmax.f32 %v136_v40, 0.0  ;;  %v151_v44 = vadd.f32 %v4984_v41, %v4269_v36 }
  0xe8   :  { %v145_v45 = vpop.f32.mrf.mxu0 }
  0xe9   :  { %v146_v46 = vadd.f32 %v4269_v36, %v145_v45  ;;  %5017 = vmatprep.mubr.f32.mxu1 %v6361_v42  ;;  %v6369_v48 = vmax.f32 %v151_v44, 0.0 }
  0xea   :  { %5018 = vmatmul.mubr.f32.vlgmr.msra.gmra.mxu1 %v6363_v43 }
  0xeb   :  { %v6367_v47 = vmax.f32 %v146_v46, 0.0 }
  0xed   :  { %5020 = vmatprep.mubr.f32.mxu1 %v6367_v47 }
  0xee   :  { %5021 = vmatmul.mubr.f32.gmra.mxu1 %v6369_v48 }
  0xef   :  { %5031 = vmatprep.mubr.msk.f32.mxu1 %vm291_vm0, %v6376_v49 }
 0x1aa   :  { %v5019_v50 = vpop.f32.mrf.mxu1 }
 0x1ac   :  { %v272_v51 = vpop.f32.mrf.mxu1 }
 0x1ae   :  { %v5022_v52 = vpop.f32.mrf.mxu1 }
 0x1af   :  { %5023 = vmatprep.subr.mxu1 %v5022_v52 }
 0x1b0   :  { %v282_v53 = vpop.f32.mrf.mxu1  ;;  %5024 = vmatpush3.msra.mxu1 %v5022_v52 }
 0x1b1   :  { %5025 = vmatprep.subr.mxu1 %v282_v53 }
 0x1b2   :  { %5026 = vmatpush3.msra.mxu1 %v282_v53 }
 0x1b3   :  { %5027 = vmatprep.subr.mxu1 %v5019_v50 }
 0x1b4   :  { %5028 = vmatpush3.msra.mxu1 %v5019_v50 }
 0x1b5   :  { %5029 = vmatprep.subr.mxu1 %v272_v51 }
 0x1b6   :  { %5030 = vmatpush3.msra.mxu1 %v272_v51 }
 0x1b7   :  { %5032 = vmatmul.mubr.msk.f32.vlgmr.msra.gmra.mxu1 %vm291_vm0, %v6385_v54  ;;  %5037 = vmatprep.subr.mxu1 %v6390_v55 }
 0x1b8   :  { %5034 = vmatprep.mubr.msk.f32.mxu1 %vm291_vm0, %v6395_v56  ;;  %5038 = vmatpush3.msra.mxu1 %v6390_v55 }
 0x1b9   :  { %5039 = vmatprep.subr.mxu1 %v6400_v57 }
 0x1ba   :  { %5040 = vmatpush3.msra.mxu1 %v6400_v57 }
 0x1bb   :  { %5035 = vmatmul.mubr.msk.f32.gmra.mxu1 %vm291_vm0, %v6410_v58  ;;  %5041 = vmatprep.subr.mxu1 %v6416_v59 }
 0x1bc   :  { %5042 = vmatpush3.msra.mxu1 %v6416_v59 }
 0x1bd   :  { %5043 = vmatprep.subr.mxu1 %v6423_v60 }
 0x1be   :  { %5044 = vmatpush3.msra.mxu1 %v6423_v60 }
 0x1bf   :  { %5045 = vmatprep.subr.mxu1 %v6432_v61 }
 0x1c0   :  { %5046 = vmatpush3.msra.mxu1 %v6432_v61 }
 0x1c1   :  { %5047 = vmatprep.subr.mxu1 %v6439_v62 }
 0x1c2   :  { %5048 = vmatpush3.msra.mxu1 %v6439_v62 }
 0x1c3   :  { %5049 = vmatprep.subr.mxu1 %v6446_v63 }
 0x1c4   :  { %5050 = vmatpush3.msra.mxu1 %v6446_v63 }
 0x1c5   :  { %5051 = vmatprep.subr.mxu1 %v6453_v0 }
 0x1c6   :  { %5052 = vmatpush3.msra.mxu1 %v6453_v0 }
 0x1c7   :  { %5053 = vmatprep.subr.mxu1 %v6460_v1 }
 0x1c8   :  { %5054 = vmatpush3.msra.mxu1 %v6460_v1 }
 0x1c9   :  { %5055 = vmatprep.subr.mxu1 %v6467_v2 }
 0x1ca   :  { %5056 = vmatpush3.msra.mxu1 %v6467_v2 }
 0x1cb   :  { %5057 = vmatprep.subr.mxu1 %v6474_v3 }
 0x1cc   :  { %5058 = vmatpush3.msra.mxu1 %v6474_v3 }
 0x1cd   :  { %5059 = vmatprep.subr.mxu1 %v6483_v4 }
 0x1ce   :  { %5060 = vmatpush3.msra.mxu1 %v6483_v4 }
 0x1cf   :  { %5061 = vmatprep.subr.mxu1 %v6490_v5 }
 0x1d0   :  { %5062 = vmatpush3.msra.mxu1 %v6490_v5 }
 0x1d1   :  { %5063 = vmatprep.subr.mxu1 %v6497_v8 }
 0x1d2   :  { %5064 = vmatpush3.msra.mxu1 %v6497_v8 }
 0x1d3   :  { %5065 = vmatprep.subr.mxu1 %v6504_v10 }
 0x1d4   :  { %5066 = vmatpush3.msra.mxu1 %v6504_v10 }
 0x1d5   :  { %5067 = vmatprep.subr.mxu1 %v6511_v12 }
 0x1d6   :  { %5068 = vmatpush3.msra.mxu1 %v6511_v12 }
 0x277   :  { %v5033_v16 = vpop.f32.mrf.mxu1 }
 0x278   :  { %v376_v18 = vadd.f32 %v5033_v16, %v4286_v14 }
 0x279   :  { %v370_v20 = vpop.f32.mrf.mxu1 }
 0x27a   :  { %v371_v22 = vadd.f32 %v4286_v14, %v370_v20  ;;  %v390_v24 = vmax.f32 %v376_v18, 0.0 }
 0x27b   :  { %v5036_v26 = vpop.f32.mrf.mxu1 }
 0x27c   :  { %v389_v28 = vmax.f32 %v371_v22, 0.0  ;;  %v386_v29 = vadd.f32 %v5036_v26, %v4286_v14  ;;  %v6522_v37 = vadd.f32 %v390_v24, %v6363_v43 }
 0x27d   :  { %v380_v30 = vpop.f32.mrf.mxu1 }
 0x27e   :  { %v6519_v31 = vadd.f32 %v389_v28, %v6361_v42  ;;  %v381_v36 = vadd.f32 %v4286_v14, %v380_v30  ;;  %v392_v38 = vmax.f32 %v386_v29, 0.0 }
 0x280   :  { %v391_v39 = vmax.f32 %v381_v36, 0.0  ;;  %5069 = vmatprep.mubr.f32.mxu1 %v6519_v31  ;;  %v6530_v41 = vadd.f32 %v392_v38, %v6369_v48 }
 0x281   :  { %5070 = vmatmul.mubr.f32.vlgmr.msra.gmra.mxu1 %v6522_v37 }
 0x282   :  { %v6527_v40 = vadd.f32 %v391_v39, %v6367_v47 }
 0x284   :  { %5072 = vmatprep.mubr.f32.mxu1 %v6527_v40 }
 0x285   :  { %5073 = vmatmul.mubr.f32.gmra.mxu1 %v6530_v41 }
 0x286   :  { %5135 = vmatprep.mubr.msk.f32.mxu1 %vm291_vm0, %v6376_v49 }
 0x341   :  { %v5071_v44 = vpop.f32.mrf.mxu1 }
 0x343   :  { %v463_v45 = vpop.f32.mrf.mxu1 }
 0x345   :  { %v5074_v46 = vpop.f32.mrf.mxu1 }
 0x346   :  { %5075 = vmatprep.subr.mxu0 %v5074_v46 }
 0x347   :  { %v473_v50 = vpop.f32.mrf.mxu1  ;;  %5076 = vmatpush3.msra.mxu0 %v5074_v46 }
 0x348   :  { %5077 = vmatprep.subr.mxu0 %v473_v50 }
 0x349   :  { %5078 = vmatpush3.msra.mxu0 %v473_v50 }
 0x34a   :  { %5079 = vmatprep.subr.mxu0 %v5071_v44 }
 0x34b   :  { %5080 = vmatpush3.msra.mxu0 %v5071_v44 }
 0x34c   :  { %5081 = vmatprep.subr.mxu0 %v463_v45 }
 0x34d   :  { %5082 = vmatpush3.msra.mxu0 %v463_v45 }
 0x34e   :  { %5084 = vmatmul.mubr.msk.f32.vlgmr.msra.gmra.mxu0 %vm291_vm0, %v6385_v54  ;;  %5089 = vmatprep.subr.mxu0 %v6207_v6 }
 0x34f   :  { %5086 = vmatprep.mubr.msk.f32.mxu0 %vm291_vm0, %v6395_v56  ;;  %5090 = vmatpush3.msra.mxu0 %v6207_v6  ;;  %v6577_v6 = vld [vmem:[%s8122_s5 + $0x1] ss:$0 sm:$0xff] }
 0x350   :  { %5091 = vmatprep.subr.mxu0 %v6213_v7 }
 0x351   :  { %5092 = vmatpush3.msra.mxu0 %v6213_v7 }
 0x352   :  { %5087 = vmatmul.mubr.msk.f32.gmra.mxu0 %vm291_vm0, %v6410_v58  ;;  %5093 = vmatprep.subr.mxu0 %v6222_v9 }
 0x353   :  { %5094 = vmatpush3.msra.mxu0 %v6222_v9 }
 0x354   :  { %5095 = vmatprep.subr.mxu0 %v6232_v11 }
 0x355   :  { %5096 = vmatpush3.msra.mxu0 %v6232_v11 }
 0x356   :  { %5097 = vmatprep.subr.mxu0 %v6242_v13 }
 0x357   :  { %5098 = vmatpush3.msra.mxu0 %v6242_v13 }
 0x358   :  { %5099 = vmatprep.subr.mxu0 %v6252_v15 }
 0x359   :  { %5100 = vmatpush3.msra.mxu0 %v6252_v15 }
 0x35a   :  { %5101 = vmatprep.subr.mxu0 %v6262_v17 }
 0x35b   :  { %5102 = vmatpush3.msra.mxu0 %v6262_v17 }
 0x35c   :  { %5103 = vmatprep.subr.mxu0 %v6272_v19 }
 0x35d   :  { %5104 = vmatpush3.msra.mxu0 %v6272_v19 }
 0x35e   :  { %5105 = vmatprep.subr.mxu0 %v6282_v21 }
 0x35f   :  { %5106 = vmatpush3.msra.mxu0 %v6282_v21 }
 0x360   :  { %5107 = vmatprep.subr.mxu0 %v6292_v23 }
 0x361   :  { %5108 = vmatpush3.msra.mxu0 %v6292_v23 }
 0x362   :  { %5109 = vmatprep.subr.mxu0 %v6302_v25 }
 0x363   :  { %5110 = vmatpush3.msra.mxu0 %v6302_v25 }
 0x364   :  { %5111 = vmatprep.subr.mxu0 %v6312_v27 }
 0x365   :  { %5112 = vmatpush3.msra.mxu0 %v6312_v27 }
 0x366   :  { %5113 = vmatprep.subr.mxu0 %v6333_v32 }
 0x367   :  { %5114 = vmatpush3.msra.mxu0 %v6333_v32 }
 0x368   :  { %5115 = vmatprep.subr.mxu0 %v6340_v33 }
 0x369   :  { %5116 = vmatpush3.msra.mxu0 %v6340_v33 }
 0x36a   :  { %5117 = vmatprep.subr.mxu0 %v6347_v34 }
 0x36b   :  { %5118 = vmatpush3.msra.mxu0 %v6347_v34 }
 0x36c   :  { %5119 = vmatprep.subr.mxu0 %v6354_v35 }
 0x36d   :  { %5120 = vmatpush3.msra.mxu0 %v6354_v35 }
 0x40e   :  { %v5085_v7 = vpop.f32.mrf.mxu0 }
 0x40f   :  { %v554_v9 = vadd.f32 %v5085_v7, %v6577_v6 }
 0x410   :  { %v548_v11 = vpop.f32.mrf.mxu0 }
 0x411   :  { %v549_v13 = vadd.f32 %v6577_v6, %v548_v11  ;;  %v568_v15 = vmax.f32 %v554_v9, 0.0  ;;  %v952_v9 = vmul.f32 0.0, %v6361_v42  ;;  %v953_v11 = vmul.f32 0.0, %v6363_v43 }
 0x412   :  { %v5088_v17 = vpop.f32.mrf.mxu0 }
 0x413   :  { %v567_v19 = vmax.f32 %v549_v13, 0.0  ;;  %v564_v21 = vadd.f32 %v5088_v17, %v6577_v6  ;;  %v6587_v32 = vadd.f32 %v568_v15, %v6522_v37 }
 0x414   :  { %v558_v23 = vpop.f32.mrf.mxu0 }
 0x415   :  { %v6583_v25 = vadd.f32 %v567_v19, %v6519_v31  ;;  %v559_v27 = vadd.f32 %v6577_v6, %v558_v23  ;;  %v570_v33 = vmax.f32 %v564_v21, 0.0 }
 0x417   :  { %v569_v34 = vmax.f32 %v559_v27, 0.0  ;;  %5121 = vmatprep.mubr.f32.mxu0 %v6583_v25  ;;  %v6595_v51 = vadd.f32 %v570_v33, %v6530_v41 }
 0x418   :  { %5122 = vmatmul.mubr.f32.vlgmr.msra.gmra.mxu0 %v6587_v32 }
 0x419   :  { %v6592_v35 = vadd.f32 %v569_v34, %v6527_v40 }
 0x41b   :  { %5124 = vmatprep.mubr.f32.mxu0 %v6592_v35 }
 0x41c   :  { %5125 = vmatmul.mubr.f32.gmra.mxu0 %v6595_v51 }
 0x41d   :  { %5187 = vmatprep.mubr.msk.f32.mxu0 %vm291_vm0, %v6376_v49 }
 0x4d8   :  { %v5123_v52 = vpop.f32.mrf.mxu0 }
 0x4da   :  { %v641_v53 = vpop.f32.mrf.mxu0 }
 0x4dc   :  { %v5126_v14 = vpop.f32.mrf.mxu0 }
 0x4dd   :  { %5127 = vmatprep.subr.mxu1 %v5126_v14 }
 0x4de   :  { %v651_v16 = vpop.f32.mrf.mxu0  ;;  %5128 = vmatpush3.msra.mxu1 %v5126_v14 }
 0x4df   :  { %5129 = vmatprep.subr.mxu1 %v651_v16 }
 0x4e0   :  { %5130 = vmatpush3.msra.mxu1 %v651_v16 }
 0x4e1   :  { %5131 = vmatprep.subr.mxu1 %v5123_v52 }
 0x4e2   :  { %5132 = vmatpush3.msra.mxu1 %v5123_v52  ;;  %v954_v52 = vmul.f32 0.0, %v6367_v47 }
 0x4e3   :  { %5133 = vmatprep.subr.mxu1 %v641_v53 }
 0x4e4   :  { %5134 = vmatpush3.msra.mxu1 %v641_v53  ;;  %v955_v53 = vmul.f32 0.0, %v6369_v48 }
 0x4e5   :  { %5136 = vmatmul.mubr.msk.f32.vlgmr.msra.gmra.mxu1 %vm291_vm0, %v6385_v54  ;;  %5141 = vmatprep.subr.mxu1 %v6390_v55 }
 0x4e6   :  { %5142 = vmatpush3.msra.mxu1 %v6390_v55  ;;  %5138 = vmatprep.mubr.msk.f32.mxu1 %vm291_vm0, %v6395_v56 }
 0x4e7   :  { %5143 = vmatprep.subr.mxu1 %v6400_v57 }
 0x4e8   :  { %5144 = vmatpush3.msra.mxu1 %v6400_v57 }
 0x4e9   :  { %5139 = vmatmul.mubr.msk.f32.gmra.mxu1 %vm291_vm0, %v6410_v58  ;;  %5145 = vmatprep.subr.mxu1 %v6416_v59 }
 0x4ea   :  { %5146 = vmatpush3.msra.mxu1 %v6416_v59  ;;  %5173 = vmatprep.mubr.f32.mxu1 %v6361_v42 }
 0x4eb   :  { %5147 = vmatprep.subr.mxu1 %v6423_v60 }
 0x4ec   :  { %5148 = vmatpush3.msra.mxu1 %v6423_v60 }
 0x4ed   :  { %5149 = vmatprep.subr.mxu1 %v6432_v61 }
 0x4ee   :  { %5150 = vmatpush3.msra.mxu1 %v6432_v61 }
 0x4ef   :  { %5151 = vmatprep.subr.mxu1 %v6439_v62 }
 0x4f0   :  { %5152 = vmatpush3.msra.mxu1 %v6439_v62 }
 0x4f1   :  { %5153 = vmatprep.subr.mxu1 %v6446_v63 }
 0x4f2   :  { %5154 = vmatpush3.msra.mxu1 %v6446_v63 }
 0x4f3   :  { %5155 = vmatprep.subr.mxu1 %v6453_v0 }
 0x4f4   :  { %5156 = vmatpush3.msra.mxu1 %v6453_v0 }
 0x4f5   :  { %5157 = vmatprep.subr.mxu1 %v6460_v1 }
 0x4f6   :  { %5158 = vmatpush3.msra.mxu1 %v6460_v1 }
 0x4f7   :  { %5159 = vmatprep.subr.mxu1 %v6467_v2 }
 0x4f8   :  { %5160 = vmatpush3.msra.mxu1 %v6467_v2 }
 0x4f9   :  { %5161 = vmatprep.subr.mxu1 %v6474_v3 }
 0x4fa   :  { %5162 = vmatpush3.msra.mxu1 %v6474_v3 }
 0x4fb   :  { %5163 = vmatprep.subr.mxu1 %v6483_v4 }
 0x4fc   :  { %5164 = vmatpush3.msra.mxu1 %v6483_v4 }
 0x4fd   :  { %5165 = vmatprep.subr.mxu1 %v6490_v5 }
 0x4fe   :  { %5166 = vmatpush3.msra.mxu1 %v6490_v5 }
 0x4ff   :  { %5167 = vmatprep.subr.mxu1 %v6497_v8 }
 0x500   :  { %5168 = vmatpush3.msra.mxu1 %v6497_v8 }
 0x501   :  { %5169 = vmatprep.subr.mxu1 %v6504_v10 }
 0x502   :  { %5170 = vmatpush3.msra.mxu1 %v6504_v10 }
 0x503   :  { %5171 = vmatprep.subr.mxu1 %v6511_v12 }
 0x504   :  { %5172 = vmatpush3.msra.mxu1 %v6511_v12 }
 0x505   :  { %5174 = vmatmul.mubr.f32.vlgmr.msra.gmra.mxu1 %v6363_v43 }
 0x506   :  { %5176 = vmatprep.mubr.f32.mxu1 %v6367_v47 }
 0x509   :  { %5177 = vmatmul.mubr.f32.gmra.mxu1 %v6369_v48 }
 0x50a   :  { %5239 = vmatprep.mubr.msk.f32.mxu1 %vm291_vm0, %v6376_v49 }
 0x5a5   :  { %v6645_v18 = vpop.f32.mrf.mxu1 }
 0x5a7   :  { %v6647_v20 = vpop.f32.mrf.mxu1 }
 0x5a9   :  { %v6649_v22 = vpop.f32.mrf.mxu1 }
 0x5ab   :  { %v6651_v24 = vpop.f32.mrf.mxu1 }
 0x5c5   :  { %v5175_v26 = vpop.f32.mrf.mxu1 }
 0x5c7   :  { %v819_v28 = vpop.f32.mrf.mxu1 }
 0x5c9   :  { %v5178_v29 = vpop.f32.mrf.mxu1 }
 0x5ca   :  { %5179 = vmatprep.subr.mxu0 %v5178_v29 }
 0x5cb   :  { %v829_v30 = vpop.f32.mrf.mxu1  ;;  %5180 = vmatpush3.msra.mxu0 %v5178_v29 }
 0x5cc   :  { %5181 = vmatprep.subr.mxu0 %v829_v30 }
 0x5cd   :  { %5182 = vmatpush3.msra.mxu0 %v829_v30 }
 0x5ce   :  { %5183 = vmatprep.subr.mxu0 %v5175_v26 }
 0x5cf   :  { %5184 = vmatpush3.msra.mxu0 %v5175_v26 }
 0x5d0   :  { %5185 = vmatprep.subr.mxu0 %v819_v28 }
 0x5d1   :  { %5186 = vmatpush3.msra.mxu0 %v819_v28 }
 0x5d2   :  { %5188 = vmatmul.mubr.msk.f32.vlgmr.msra.gmra.mxu0 %vm291_vm0, %v6385_v54  ;;  %5193 = vmatprep.subr.mxu0 %v6390_v55 }
 0x5d3   :  { %5190 = vmatprep.mubr.msk.f32.mxu0 %vm291_vm0, %v6395_v56  ;;  %5194 = vmatpush3.msra.mxu0 %v6390_v55 }
 0x5d4   :  { %5195 = vmatprep.subr.mxu0 %v6400_v57 }
 0x5d5   :  { %5196 = vmatpush3.msra.mxu0 %v6400_v57 }
 0x5d6   :  { %5191 = vmatmul.mubr.msk.f32.gmra.mxu0 %vm291_vm0, %v6410_v58  ;;  %5197 = vmatprep.subr.mxu0 %v6416_v59 }
 0x5d7   :  { %5198 = vmatpush3.msra.mxu0 %v6416_v59 }
 0x5d8   :  { %5199 = vmatprep.subr.mxu0 %v6423_v60 }
 0x5d9   :  { %5200 = vmatpush3.msra.mxu0 %v6423_v60 }
 0x5da   :  { %5201 = vmatprep.subr.mxu0 %v6432_v61 }
 0x5db   :  { %5202 = vmatpush3.msra.mxu0 %v6432_v61 }
 0x5dc   :  { %5203 = vmatprep.subr.mxu0 %v6439_v62 }
 0x5dd   :  { %5204 = vmatpush3.msra.mxu0 %v6439_v62 }
 0x5de   :  { %5205 = vmatprep.subr.mxu0 %v6446_v63 }
 0x5df   :  { %5206 = vmatpush3.msra.mxu0 %v6446_v63 }
 0x5e0   :  { %5207 = vmatprep.subr.mxu0 %v6453_v0 }
 0x5e1   :  { %5208 = vmatpush3.msra.mxu0 %v6453_v0 }
 0x5e2   :  { %5209 = vmatprep.subr.mxu0 %v6460_v1 }
 0x5e3   :  { %5210 = vmatpush3.msra.mxu0 %v6460_v1 }
 0x5e4   :  { %5211 = vmatprep.subr.mxu0 %v6467_v2 }
 0x5e5   :  { %5212 = vmatpush3.msra.mxu0 %v6467_v2 }
 0x5e6   :  { %5213 = vmatprep.subr.mxu0 %v6474_v3 }
 0x5e7   :  { %5214 = vmatpush3.msra.mxu0 %v6474_v3 }
 0x5e8   :  { %5215 = vmatprep.subr.mxu0 %v6483_v4 }
 0x5e9   :  { %5216 = vmatpush3.msra.mxu0 %v6483_v4 }
 0x5ea   :  { %5217 = vmatprep.subr.mxu0 %v6490_v5 }
 0x5eb   :  { %5218 = vmatpush3.msra.mxu0 %v6490_v5 }
 0x5ec   :  { %5219 = vmatprep.subr.mxu0 %v6497_v8 }
 0x5ed   :  { %5220 = vmatpush3.msra.mxu0 %v6497_v8 }
 0x5ee   :  { %5221 = vmatprep.subr.mxu0 %v6504_v10 }
 0x5ef   :  { %5222 = vmatpush3.msra.mxu0 %v6504_v10 }
 0x5f0   :  { %5223 = vmatprep.subr.mxu0 %v6511_v12 }
 0x5f1   :  { %5224 = vmatpush3.msra.mxu0 %v6511_v12 }
 0x692   :  { %v5189_v31 = vpop.f32.mrf.mxu0 }
 0x693   :  { %v910_v36 = vadd.f32 %v5189_v31, %v6577_v6 }
 0x694   :  { %v904_v37 = vpop.f32.mrf.mxu0 }
 0x695   :  { %v924_v38 = vmax.f32 %v910_v36, 0.0  ;;  %v905_v39 = vadd.f32 %v6577_v6, %v904_v37 }
 0x696   :  { %v5192_v40 = vpop.f32.mrf.mxu0 }
 0x697   :  { %v923_v41 = vmax.f32 %v905_v39, 0.0  ;;  %v920_v44 = vadd.f32 %v5192_v40, %v6577_v6  ;;  %v928_v45 = vsub.f32 %v6363_v43, %v924_v38 }
 0x698   :  { %v914_v46 = vpop.f32.mrf.mxu0 }
 0x699   :  { %v927_v50 = vsub.f32 %v6361_v42, %v923_v41  ;;  %v926_v7 = vmax.f32 %v920_v44, 0.0  ;;  %v915_v13 = vadd.f32 %v6577_v6, %v914_v46  ;;  %v932_v19 = vsub.f32 %v928_v45, %v6363_v43 }
 0x69a   :  { %v6703_v21 = vadd.f32 %v953_v11, %v928_v45 }
 0x69b   :  { %v931_v15 = vsub.f32 %v927_v50, %v6361_v42  ;;  %v6700_v17 = vadd.f32 %v952_v9, %v927_v50  ;;  %v930_v23 = vsub.f32 %v6369_v48, %v926_v7  ;;  %v925_v27 = vmax.f32 %v915_v13, 0.0 }
 0x69c   :  { %v936_v14 = vand.u32 2147483647, %v932_v19 }
 0x69d   :  { %5225 = vmatprep.mubr.f32.mxu0 %v6700_v17  ;;  %v935_v33 = vand.u32 2147483647, %v931_v15  ;;  %v929_v34 = vsub.f32 %v6367_v47, %v925_v27  ;;  %v934_v28 = vsub.f32 %v930_v23, %v6369_v48  ;;  %v6715_v29 = vadd.f32 %v955_v53, %v930_v23 }
 0x69e   :  { %5226 = vmatmul.mubr.f32.vlgmr.msra.gmra.mxu0 %v6703_v21 }
 0x69f   :  { %v6711_v16 = vadd.f32 %v954_v52, %v929_v34  ;;  %v933_v26 = vsub.f32 %v929_v34, %v6367_v47  ;;  %v939_v31 = vadd.f32 %v936_v14, %v935_v33  ;;  %v938_v36 = vand.u32 2147483647, %v934_v28 }
 0x6a1   :  { %5228 = vmatprep.mubr.f32.mxu0 %v6711_v16  ;;  %v937_v30 = vand.u32 2147483647, %v933_v26 }
 0x6a2   :  { %5229 = vmatmul.mubr.f32.gmra.mxu0 %v6715_v29 }
 0x6a3   :  { %v940_v37 = vadd.f32 %v939_v31, %v937_v30  ;;  %5291 = vmatprep.mubr.msk.f32.mxu0 %vm291_vm0, %v6376_v49 }
 0x6a5   :  { %v941_v38 = vadd.f32 %v940_v37, %v938_v36 }
 0x6a7   :  { %942 = vadd.xlane.f32.xlu0 %v941_v38 }
 0x730   :  { %v943_v39 = vpop.xlane.xlu0 %942 }
 0x731   :  { %v944_v40 = vrot.slane %v943_v39, 4 }
 0x733   :  { %v945_v41 = vadd.f32 %v944_v40, %v943_v39 }
 0x735   :  { %v946_v44 = vrot.slane %v945_v41, 2 }
 0x737   :  { %v947_v45 = vadd.f32 %v946_v44, %v945_v41 }
 0x739   :  { %v948_v46 = vrot.slane %v947_v45, 1 }
 0x73b   :  { %v949_v50 = vadd.f32 %v948_v46, %v947_v45 }
 0x73d   :  { %6035 = vpush %v949_v50 }
 0x75e   :  { %v5227_v7 = vpop.f32.mrf.mxu0 }
 0x760   :  { %v1030_v9 = vpop.f32.mrf.mxu0 }
 0x762   :  { %v5230_v11 = vpop.f32.mrf.mxu0 }
 0x763   :  { %5231 = vmatprep.subr.mxu1 %v5230_v11 }
 0x764   :  { %v1040_v13 = vpop.f32.mrf.mxu0  ;;  %5232 = vmatpush3.msra.mxu1 %v5230_v11 }
 0x765   :  { %5233 = vmatprep.subr.mxu1 %v1040_v13 }
 0x766   :  { %5234 = vmatpush3.msra.mxu1 %v1040_v13 }
 0x767   :  { %5235 = vmatprep.subr.mxu1 %v5227_v7 }
 0x768   :  { %5236 = vmatpush3.msra.mxu1 %v5227_v7 }
 0x769   :  { %5237 = vmatprep.subr.mxu1 %v1030_v9 }
 0x76a   :  { %5238 = vmatpush3.msra.mxu1 %v1030_v9 }
 0x76b   :  { %5240 = vmatmul.mubr.msk.f32.vlgmr.msra.gmra.mxu1 %vm291_vm0, %v6385_v54  ;;  %5245 = vmatprep.subr.mxu1 %v6390_v55 }
 0x76c   :  { %5242 = vmatprep.mubr.msk.f32.mxu1 %vm291_vm0, %v6395_v56  ;;  %5246 = vmatpush3.msra.mxu1 %v6390_v55 }
 0x76d   :  { %5247 = vmatprep.subr.mxu1 %v6400_v57 }
 0x76e   :  { %5248 = vmatpush3.msra.mxu1 %v6400_v57  ;;  %s6036_s3 = spop %6035 }
 0x76f   :  { %5243 = vmatmul.mubr.msk.f32.gmra.mxu1 %vm291_vm0, %v6410_v58  ;;  %5249 = vmatprep.subr.mxu1 %v6416_v59  ;;  %s951_s13 = smul.f32 0.0009765625, %s6036_s3 }
 0x770   :  { %5250 = vmatpush3.msra.mxu1 %v6416_v59 }
 0x771   :  { %5251 = vmatprep.subr.mxu1 %v6423_v60  ;;  %p960_p0 = scmp.lt.f32.partialorder %s951_s13, 1e-06 }
 0x772   :  { %5252 = vmatpush3.msra.mxu1 %v6423_v60 }
 0x773   :  { %5253 = vmatprep.subr.mxu1 %v6432_v61  ;;  %s961_s14 = scalar_select %p960_p0, 1, 0 }
 0x774   :  { %5254 = vmatpush3.msra.mxu1 %v6432_v61 }
 0x775   :  { %5255 = vmatprep.subr.mxu1 %v6439_v62  ;;  %s962_s15 = scvt.s32.f32 %s961_s14 }
 0x776   :  { %5256 = vmatpush3.msra.mxu1 %v6439_v62 }
 0x777   :  { %5257 = vmatprep.subr.mxu1 %v6446_v63  ;;  %s6760_s17 = smax.f32 %s6125_s16, %s962_s15 }
 0x778   :  { %5258 = vmatpush3.msra.mxu1 %v6446_v63  ;;  %s1163_s18 = ssub.f32 1.0, %s6760_s17  ;;  %v1164_v26 = vstv %s6760_s17 }
 0x779   :  { %5259 = vmatprep.subr.mxu1 %v6453_v0  ;;  %v1165_v41 = vmul.f32 %v1164_v26, %v6700_v17  ;;  %v1166_v45 = vmul.f32 %v1164_v26, %v6703_v21 }
 0x77a   :  { %5260 = vmatpush3.msra.mxu1 %v6453_v0  ;;  %v1169_v30 = vstv %s1163_s18 }
 0x77b   :  { %5261 = vmatprep.subr.mxu1 %v6460_v1 }
 0x77c   :  { %5262 = vmatpush3.msra.mxu1 %v6460_v1 }
 0x77d   :  { %5263 = vmatprep.subr.mxu1 %v6467_v2 }
 0x77e   :  { %5264 = vmatpush3.msra.mxu1 %v6467_v2 }
 0x77f   :  { %5265 = vmatprep.subr.mxu1 %v6474_v3 }
 0x780   :  { %5266 = vmatpush3.msra.mxu1 %v6474_v3 }
 0x781   :  { %5267 = vmatprep.subr.mxu1 %v6483_v4 }
 0x782   :  { %5268 = vmatpush3.msra.mxu1 %v6483_v4 }
 0x783   :  { %5269 = vmatprep.subr.mxu1 %v6490_v5 }
 0x784   :  { %5270 = vmatpush3.msra.mxu1 %v6490_v5 }
 0x785   :  { %5271 = vmatprep.subr.mxu1 %v6497_v8 }
 0x786   :  { %5272 = vmatpush3.msra.mxu1 %v6497_v8 }
 0x787   :  { %5273 = vmatprep.subr.mxu1 %v6504_v10 }
 0x788   :  { %5274 = vmatpush3.msra.mxu1 %v6504_v10 }
 0x789   :  { %5275 = vmatprep.subr.mxu1 %v6511_v12 }
 0x78a   :  { %5276 = vmatpush3.msra.mxu1 %v6511_v12 }
 0x82b   :  { %v5241_v15 = vpop.f32.mrf.mxu1 }
 0x82c   :  { %v1121_v19 = vadd.f32 %v5241_v15, %v6577_v6 }
 0x82d   :  { %v1115_v23 = vpop.f32.mrf.mxu1 }
 0x82e   :  { %v1135_v27 = vmax.f32 %v1121_v19, 0.0  ;;  %v1116_v33 = vadd.f32 %v6577_v6, %v1115_v23  ;;  %v1167_v19 = vmul.f32 %v1164_v26, %v6711_v16 }
 0x82f   :  { %v5244_v34 = vpop.f32.mrf.mxu1 }
 0x830   :  { %v1139_v52 = vsub.f32 %v6363_v43, %v1135_v27  ;;  %v1134_v53 = vmax.f32 %v1116_v33, 0.0  ;;  %v1131_v14 = vadd.f32 %v5244_v34, %v6577_v6  ;;  %v1168_v33 = vmul.f32 %v1164_v26, %v6715_v29 }
 0x831   :  { %v1125_v28 = vpop.f32.mrf.mxu1 }
 0x832   :  { %v1138_v31 = vsub.f32 %v6361_v42, %v1134_v53  ;;  %v1137_v36 = vmax.f32 %v1131_v14, 0.0  ;;  %v1171_v37 = vmul.f32 %v1169_v30, %v1139_v52  ;;  %v1126_v38 = vadd.f32 %v6577_v6, %v1125_v28 }
 0x833   :  { %v1143_v44 = vsub.f32 %v1139_v52, %v6703_v21 }
 0x834   :  { %v1142_v39 = vsub.f32 %v1138_v31, %v6700_v17  ;;  %v1170_v40 = vmul.f32 %v1169_v30, %v1138_v31  ;;  %v1141_v46 = vsub.f32 %v6369_v48, %v1137_v36  ;;  %v1136_v50 = vmax.f32 %v1126_v38, 0.0 }
 0x835   :  { %v6779_v9 = vadd.f32 %v1171_v37, %v1166_v45  ;;  %v1147_v17 = vand.u32 2147483647, %v1143_v44 }
 0x836   :  { %v6777_v7 = vadd.f32 %v1170_v40, %v1165_v41  ;;  %v1146_v11 = vand.u32 2147483647, %v1142_v39  ;;  %v1140_v13 = vsub.f32 %v6367_v47, %v1136_v50  ;;  %v1173_v15 = vmul.f32 %v1169_v30, %v1141_v46 }
 0x837   :  { %v1145_v21 = vsub.f32 %v1141_v46, %v6715_v29 }
 0x838   :  { %5277 = vmatprep.mubr.f32.mxu1 %v6777_v7  ;;  %v1144_v23 = vsub.f32 %v1140_v13, %v6711_v16  ;;  %v1172_v27 = vmul.f32 %v1169_v30, %v1140_v13  ;;  %v1150_v53 = vadd.f32 %v1147_v17, %v1146_v11  ;;  %v6790_v14 = vadd.f32 %v1173_v15, %v1168_v33 }
 0x839   :  { %5278 = vmatmul.mubr.f32.vlgmr.msra.gmra.mxu1 %v6779_v9  ;;  %v1149_v28 = vand.u32 2147483647, %v1145_v21 }
 0x83a   :  { %v6788_v34 = vadd.f32 %v1172_v27, %v1167_v19  ;;  %v1148_v52 = vand.u32 2147483647, %v1144_v23 }
 0x83c   :  { %5280 = vmatprep.mubr.f32.mxu1 %v6788_v34  ;;  %v1151_v31 = vadd.f32 %v1150_v53, %v1148_v52 }
 0x83d   :  { %5281 = vmatmul.mubr.f32.gmra.mxu1 %v6790_v14 }
 0x83e   :  { %v1152_v16 = vadd.f32 %v1151_v31, %v1149_v28  ;;  %5343 = vmatprep.mubr.msk.f32.mxu1 %vm291_vm0, %v6376_v49 }
 0x840   :  { %1153 = vadd.xlane.f32.xlu0 %v1152_v16 }
 0x8c9   :  { %v1154_v30 = vpop.xlane.xlu0 %1153 }
 0x8ca   :  { %v1155_v36 = vrot.slane %v1154_v30, 4 }
 0x8cc   :  { %v1156_v29 = vadd.f32 %v1155_v36, %v1154_v30 }
 0x8ce   :  { %v1157_v26 = vrot.slane %v1156_v29, 2 }
 0x8d0   :  { %v1158_v37 = vadd.f32 %v1157_v26, %v1156_v29 }
 0x8d2   :  { %v1159_v38 = vrot.slane %v1158_v37, 1 }
 0x8d4   :  { %v1160_v39 = vadd.f32 %v1159_v38, %v1158_v37 }
 0x8d6   :  { %6037 = vpush %v1160_v39 }
 0x8f9   :  { %v5279_v40 = vpop.f32.mrf.mxu1 }
 0x8fb   :  { %v1249_v41 = vpop.f32.mrf.mxu1 }
 0x8fd   :  { %v5282_v44 = vpop.f32.mrf.mxu1 }
 0x8fe   :  { %5283 = vmatprep.subr.mxu0 %v5282_v44 }
 0x8ff   :  { %v1259_v45 = vpop.f32.mrf.mxu1  ;;  %5284 = vmatpush3.msra.mxu0 %v5282_v44 }
 0x900   :  { %5285 = vmatprep.subr.mxu0 %v1259_v45 }
 0x901   :  { %5286 = vmatpush3.msra.mxu0 %v1259_v45 }
 0x902   :  { %5287 = vmatprep.subr.mxu0 %v5279_v40 }
 0x903   :  { %5288 = vmatpush3.msra.mxu0 %v5279_v40 }
 0x904   :  { %5289 = vmatprep.subr.mxu0 %v1249_v41 }
 0x905   :  { %5290 = vmatpush3.msra.mxu0 %v1249_v41 }
 0x906   :  { %5292 = vmatmul.mubr.msk.f32.vlgmr.msra.gmra.mxu0 %vm291_vm0, %v6385_v54  ;;  %5297 = vmatprep.subr.mxu0 %v6390_v55 }
 0x907   :  { %5294 = vmatprep.mubr.msk.f32.mxu0 %vm291_vm0, %v6395_v56  ;;  %5298 = vmatpush3.msra.mxu0 %v6390_v55  ;;  %s6038_s19 = spop %6037 }
 0x908   :  { %5299 = vmatprep.subr.mxu0 %v6400_v57  ;;  %s1162_s20 = smul.f32 0.0009765625, %s6038_s19 }
 0x909   :  { %5300 = vmatpush3.msra.mxu0 %v6400_v57 }
 0x90a   :  { %5295 = vmatmul.mubr.msk.f32.gmra.mxu0 %vm291_vm0, %v6410_v58  ;;  %5301 = vmatprep.subr.mxu0 %v6416_v59  ;;  %p1178_p1 = scmp.lt.f32.partialorder %s1162_s20, 1e-06 }
 0x90b   :  { %5302 = vmatpush3.msra.mxu0 %v6416_v59 }
 0x90c   :  { %5303 = vmatprep.subr.mxu0 %v6423_v60  ;;  %s1179_s21 = scalar_select %p1178_p1, 1, 0 }
 0x90d   :  { %5304 = vmatpush3.msra.mxu0 %v6423_v60 }
 0x90e   :  { %5305 = vmatprep.subr.mxu0 %v6432_v61  ;;  %s1180_s2 = scvt.s32.f32 %s1179_s21 }
 0x90f   :  { %5306 = vmatpush3.msra.mxu0 %v6432_v61 }
 0x910   :  { %5307 = vmatprep.subr.mxu0 %v6439_v62  ;;  %s1181_s22 = smul.f32 %s1180_s2, %s1163_s18 }
 0x911   :  { %5308 = vmatpush3.msra.mxu0 %v6439_v62 }
 0x912   :  { %5309 = vmatprep.subr.mxu0 %v6446_v63  ;;  %s6837_s23 = smax.f32 %s1181_s22, %s6760_s17 }
 0x913   :  { %5310 = vmatpush3.msra.mxu0 %v6446_v63  ;;  %s1382_s24 = ssub.f32 1.0, %s6837_s23  ;;  %v1383_v62 = vstv %s6837_s23 }
 0x914   :  { %5311 = vmatprep.subr.mxu0 %v6453_v0  ;;  %v1385_v46 = vmul.f32 %v1383_v62, %v6779_v9  ;;  %v1386_v27 = vmul.f32 %v1383_v62, %v6788_v34  ;;  %v1387_v52 = vmul.f32 %v1383_v62, %v6790_v14 }
 0x915   :  { %5312 = vmatpush3.msra.mxu0 %v6453_v0  ;;  %v1388_v0 = vstv %s1382_s24 }
 0x916   :  { %5313 = vmatprep.subr.mxu0 %v6460_v1 }
 0x917   :  { %5314 = vmatpush3.msra.mxu0 %v6460_v1 }
 0x918   :  { %5315 = vmatprep.subr.mxu0 %v6467_v2 }
 0x919   :  { %5316 = vmatpush3.msra.mxu0 %v6467_v2 }
 0x91a   :  { %5317 = vmatprep.subr.mxu0 %v6474_v3 }
 0x91b   :  { %5318 = vmatpush3.msra.mxu0 %v6474_v3 }
 0x91c   :  { %5319 = vmatprep.subr.mxu0 %v6483_v4 }
 0x91d   :  { %5320 = vmatpush3.msra.mxu0 %v6483_v4 }
 0x91e   :  { %5321 = vmatprep.subr.mxu0 %v6490_v5 }
 0x91f   :  { %5322 = vmatpush3.msra.mxu0 %v6490_v5 }
 0x920   :  { %5323 = vmatprep.subr.mxu0 %v6497_v8 }
 0x921   :  { %5324 = vmatpush3.msra.mxu0 %v6497_v8 }
 0x922   :  { %5325 = vmatprep.subr.mxu0 %v6504_v10 }
 0x923   :  { %5326 = vmatpush3.msra.mxu0 %v6504_v10  ;;  %v1384_v10 = vmul.f32 %v1383_v62, %v6777_v7  ;;  %v6068_v62 = vld [vmem:[%s8119_s4 + $0xd8] sm:$0xff] }
 0x924   :  { %5327 = vmatprep.subr.mxu0 %v6511_v12 }
 0x925   :  { %5328 = vmatpush3.msra.mxu0 %v6511_v12 }
 0x9c6   :  { %v5293_v49 = vpop.f32.mrf.mxu0 }
 0x9c7   :  { %v1340_v54 = vadd.f32 %v5293_v49, %v6577_v6 }
 0x9c8   :  { %v1334_v55 = vpop.f32.mrf.mxu0 }
 0x9c9   :  { %v1354_v56 = vmax.f32 %v1340_v54, 0.0  ;;  %v1335_v57 = vadd.f32 %v6577_v6, %v1334_v55  ;;  %v6881_v55 = vld [vmem:[%s8121_s0 + $0x8] sm:$0xff] }
 0x9ca   :  { %v5296_v58 = vpop.f32.mrf.mxu0 }
 0x9cb   :  { %v1358_v59 = vsub.f32 %v6363_v43, %v1354_v56  ;;  %v1353_v60 = vmax.f32 %v1335_v57, 0.0  ;;  %v1350_v61 = vadd.f32 %v5296_v58, %v6577_v6  ;;  %v6062_v56 = vld [vmem:[%s8119_s4 + $0xf8] sm:$0xff]  ;;  %v6891_v57 = vld [vmem:[%s8121_s0 + $0x10] sm:$0xff] }
 0x9cc   :  { %v1344_v63 = vpop.f32.mrf.mxu0  ;;  %v6064_v58 = vld [vmem:[%s8119_s4 + $0xf0] sm:$0xff] }
 0x9cd   :  { %v1357_v1 = vsub.f32 %v6361_v42, %v1353_v60  ;;  %v1356_v2 = vmax.f32 %v1350_v61, 0.0  ;;  %v1390_v3 = vmul.f32 %v1388_v0, %v1358_v59  ;;  %v1345_v4 = vadd.f32 %v6577_v6, %v1344_v63  ;;  %v6066_v60 = vld [vmem:[%s8119_s4 + $0xe8] sm:$0xff]  ;;  %v6067_v61 = vld [vmem:[%s8119_s4 + $0xe0] sm:$0xff]  ;;  %v6069_v63 = vld [vmem:[%s8119_s4 + $0xd0] sm:$0xff] }
 0x9ce   :  { %v1362_v12 = vsub.f32 %v1358_v59, %v6779_v9  ;;  %v6901_v59 = vld [vmem:[%s8121_s0 + $0x18] sm:$0xff] }
 0x9cf   :  { %v1361_v5 = vsub.f32 %v1357_v1, %v6777_v7  ;;  %v1389_v8 = vmul.f32 %v1388_v0, %v1357_v1  ;;  %v1360_v50 = vsub.f32 %v6369_v48, %v1356_v2  ;;  %v1355_v11 = vmax.f32 %v1345_v4, 0.0  ;;  %v6071_v1 = vld [vmem:[%s8119_s4 + $0xc0] sm:$0xff]  ;;  %v6072_v2 = vld [vmem:[%s8119_s4 + $0xb8] sm:$0xff]  ;;  %v6074_v4 = vld [vmem:[%s8119_s4 + $0xa8] sm:$0xff] }
 0x9d0   :  { %v6856_v15 = vadd.f32 %v1390_v3, %v1385_v46  ;;  %v1366_v7 = vand.u32 2147483647, %v1362_v12  ;;  %v6073_v3 = vld [vmem:[%s8119_s4 + $0xb0] sm:$0xff]  ;;  %v6078_v12 = vld [vmem:[%s8119_s4 + $0x88] sm:$0xff]  ;;  %v6079_v46 = vld [vmem:[%s8119_s4 + $0x80] sm:$0xff] }
 0x9d1   :  { %v6854_v13 = vadd.f32 %v1389_v8, %v1384_v10  ;;  %v1365_v19 = vand.u32 2147483647, %v1361_v5  ;;  %v1359_v17 = vsub.f32 %v6367_v47, %v1355_v11  ;;  %v1392_v23 = vmul.f32 %v1388_v0, %v1360_v50  ;;  %v6075_v5 = vld [vmem:[%s8119_s4 + $0xa0] sm:$0xff]  ;;  %v6076_v8 = vld [vmem:[%s8119_s4 + $0x98] sm:$0xff]  ;;  %v6077_v10 = vld [vmem:[%s8119_s4 + $0x90] sm:$0xff] }
 0x9d2   :  { %v1364_v33 = vsub.f32 %v1360_v50, %v6790_v14 }
 0x9d3   :  { %5329 = vmatprep.mubr.f32.mxu0 %v6854_v13  ;;  %v1391_v21 = vmul.f32 %v1388_v0, %v1359_v17  ;;  %v1363_v9 = vsub.f32 %v1359_v17, %v6788_v34  ;;  %v1369_v31 = vadd.f32 %v1366_v7, %v1365_v19  ;;  %v6867_v16 = vadd.f32 %v1392_v23, %v1387_v52  ;;  %v6874_v34 = vld [vmem:[%s8121_s0] sm:$0xff]  ;;  %v6070_v0 = vld [vmem:[%s8119_s4 + $0xc8] sm:$0xff] }
 0x9d4   :  { %5330 = vmatmul.mubr.f32.vlgmr.msra.gmra.mxu0 %v6856_v15  ;;  %v1368_v30 = vand.u32 2147483647, %v1364_v33 }
 0x9d5   :  { %v6865_v53 = vadd.f32 %v1391_v21, %v1386_v27  ;;  %v1367_v28 = vand.u32 2147483647, %v1363_v9 }
 0x9d7   :  { %5332 = vmatprep.mubr.f32.mxu0 %v6865_v53  ;;  %v1370_v36 = vadd.f32 %v1369_v31, %v1367_v28 }
 0x9d8   :  { %5333 = vmatmul.mubr.f32.gmra.mxu0 %v6867_v16 }
 0x9d9   :  { %v1371_v29 = vadd.f32 %v1370_v36, %v1368_v30  ;;  %5395 = vmatprep.mubr.msk.f32.mxu0 %vm291_vm0, %v6874_v34 }
 0x9db   :  { %1372 = vadd.xlane.f32.xlu1 %v1371_v29 }
 0xa64   :  { %v1373_v14 = vpop.xlane.xlu1 %1372 }
 0xa65   :  { %v1374_v26 = vrot.slane %v1373_v14, 4 }
 0xa67   :  { %v1375_v37 = vadd.f32 %v1374_v26, %v1373_v14 }
 0xa69   :  { %v1376_v38 = vrot.slane %v1375_v37, 2 }
 0xa6b   :  { %v1377_v39 = vadd.f32 %v1376_v38, %v1375_v37 }
 0xa6d   :  { %v1378_v40 = vrot.slane %v1377_v39, 1 }
 0xa6f   :  { %v1379_v41 = vadd.f32 %v1378_v40, %v1377_v39 }
 0xa71   :  { %6039 = vpush %v1379_v41 }
 0xa94   :  { %v5331_v44 = vpop.f32.mrf.mxu0 }
 0xa96   :  { %v1468_v45 = vpop.f32.mrf.mxu0 }
 0xa98   :  { %v5334_v49 = vpop.f32.mrf.mxu0 }
 0xa99   :  { %5335 = vmatprep.subr.mxu1 %v5334_v49 }
 0xa9a   :  { %v1478_v54 = vpop.f32.mrf.mxu0  ;;  %5336 = vmatpush3.msra.mxu1 %v5334_v49 }
 0xa9b   :  { %5337 = vmatprep.subr.mxu1 %v1478_v54 }
 0xa9c   :  { %5338 = vmatpush3.msra.mxu1 %v1478_v54 }
 0xa9d   :  { %5339 = vmatprep.subr.mxu1 %v5331_v44 }
 0xa9e   :  { %5340 = vmatpush3.msra.mxu1 %v5331_v44 }
 0xa9f   :  { %5341 = vmatprep.subr.mxu1 %v1468_v45 }
 0xaa0   :  { %5342 = vmatpush3.msra.mxu1 %v1468_v45 }
 0xaa1   :  { %5344 = vmatmul.mubr.msk.f32.vlgmr.msra.gmra.mxu1 %vm291_vm0, %v6881_v55  ;;  %5349 = vmatprep.subr.mxu1 %v6062_v56 }
 0xaa2   :  { %5346 = vmatprep.mubr.msk.f32.mxu1 %vm291_vm0, %v6891_v57  ;;  %5350 = vmatpush3.msra.mxu1 %v6062_v56  ;;  %s6040_s1 = spop %6039 }
 0xaa3   :  { %5351 = vmatprep.subr.mxu1 %v6064_v58  ;;  %s1381_s27 = smul.f32 0.0009765625, %s6040_s1 }
 0xaa4   :  { %5352 = vmatpush3.msra.mxu1 %v6064_v58 }
 0xaa5   :  { %5347 = vmatmul.mubr.msk.f32.gmra.mxu1 %vm291_vm0, %v6901_v59  ;;  %5353 = vmatprep.subr.mxu1 %v6066_v60  ;;  %p1397_p2 = scmp.lt.f32.partialorder %s1381_s27, 1e-06 }
 0xaa6   :  { %5354 = vmatpush3.msra.mxu1 %v6066_v60 }
 0xaa7   :  { %5355 = vmatprep.subr.mxu1 %v6067_v61  ;;  %s1398_s28 = scalar_select %p1397_p2, 1, 0 }
 0xaa8   :  { %5356 = vmatpush3.msra.mxu1 %v6067_v61 }
 0xaa9   :  { %5357 = vmatprep.subr.mxu1 %v6068_v62  ;;  %s1399_s29 = scvt.s32.f32 %s1398_s28 }
 0xaaa   :  { %5358 = vmatpush3.msra.mxu1 %v6068_v62 }
 0xaab   :  { %5359 = vmatprep.subr.mxu1 %v6069_v63  ;;  %s1400_s30 = smul.f32 %s1399_s29, %s1382_s24 }
 0xaac   :  { %5360 = vmatpush3.msra.mxu1 %v6069_v63 }
 0xaad   :  { %5361 = vmatprep.subr.mxu1 %v6070_v0  ;;  %s6950_s12 = smax.f32 %s1400_s30, %s6837_s23 }
 0xaae   :  { %5362 = vmatpush3.msra.mxu1 %v6070_v0  ;;  %s1601_s3 = ssub.f32 1.0, %s6950_s12  ;;  %v1602_v33 = vstv %s6950_s12 }
 0xaaf   :  { %5363 = vmatprep.subr.mxu1 %v6071_v1  ;;  %v1603_v37 = vmul.f32 %v1602_v33, %v6854_v13  ;;  %v1604_v39 = vmul.f32 %v1602_v33, %v6856_v15  ;;  %v1605_v56 = vmul.f32 %v1602_v33, %v6865_v53  ;;  %v1606_v61 = vmul.f32 %v1602_v33, %v6867_v16  ;;  %v7030_v33 = vld [vmem:[%s8119_s4 + $0x50] sm:$0xff] }
 0xab0   :  { %5364 = vmatpush3.msra.mxu1 %v6071_v1  ;;  %v1607_v28 = vstv %s1601_s3 }
 0xab1   :  { %5365 = vmatprep.subr.mxu1 %v6072_v2 }
 0xab2   :  { %5366 = vmatpush3.msra.mxu1 %v6072_v2 }
 0xab3   :  { %5367 = vmatprep.subr.mxu1 %v6073_v3 }
 0xab4   :  { %5368 = vmatpush3.msra.mxu1 %v6073_v3 }
 0xab5   :  { %5369 = vmatprep.subr.mxu1 %v6074_v4 }
 0xab6   :  { %5370 = vmatpush3.msra.mxu1 %v6074_v4 }
 0xab7   :  { %5371 = vmatprep.subr.mxu1 %v6075_v5 }
 0xab8   :  { %5372 = vmatpush3.msra.mxu1 %v6075_v5 }
 0xab9   :  { %5373 = vmatprep.subr.mxu1 %v6076_v8 }
 0xaba   :  { %5374 = vmatpush3.msra.mxu1 %v6076_v8 }
 0xabb   :  { %5375 = vmatprep.subr.mxu1 %v6077_v10 }
 0xabc   :  { %5376 = vmatpush3.msra.mxu1 %v6077_v10 }
 0xabd   :  { %5377 = vmatprep.subr.mxu1 %v6078_v12 }
 0xabe   :  { %5378 = vmatpush3.msra.mxu1 %v6078_v12 }
 0xabf   :  { %5379 = vmatprep.subr.mxu1 %v6079_v46 }
 0xac0   :  { %5380 = vmatpush3.msra.mxu1 %v6079_v46 }
 0xb61   :  { %v5345_v50 = vpop.f32.mrf.mxu1 }
 0xb62   :  { %v1559_v11 = vadd.f32 %v5345_v50, %v6577_v6 }
 0xb63   :  { %v1553_v19 = vpop.f32.mrf.mxu1 }
 0xb64   :  { %v1573_v17 = vmax.f32 %v1559_v11, 0.0  ;;  %v1554_v23 = vadd.f32 %v6577_v6, %v1553_v19 }
 0xb65   :  { %v5348_v27 = vpop.f32.mrf.mxu1 }
 0xb66   :  { %v1577_v7 = vsub.f32 %v6363_v43, %v1573_v17  ;;  %v1572_v21 = vmax.f32 %v1554_v23, 0.0  ;;  %v1569_v9 = vadd.f32 %v5348_v27, %v6577_v6  ;;  %v6991_v23 = vld [vmem:[%s8119_s4 + $0x78] sm:$0xff]  ;;  %v7000_v27 = vld [vmem:[%s8119_s4 + $0x70] sm:$0xff] }
 0xb67   :  { %v1563_v52 = vpop.f32.mrf.mxu1 }
 0xb68   :  { %v1576_v31 = vsub.f32 %v6361_v42, %v1572_v21  ;;  %v1575_v30 = vmax.f32 %v1569_v9, 0.0  ;;  %v1609_v36 = vmul.f32 %v1607_v28, %v1577_v7  ;;  %v1564_v29 = vadd.f32 %v6577_v6, %v1563_v52  ;;  %v7016_v21 = vld [vmem:[%s8119_s4 + $0x60] sm:$0xff]  ;;  %v7023_v9 = vld [vmem:[%s8119_s4 + $0x58] sm:$0xff]  ;;  %v7037_v52 = vld [vmem:[%s8119_s4 + $0x48] sm:$0xff] }
 0xb69   :  { %v1581_v38 = vsub.f32 %v1577_v7, %v6856_v15  ;;  %v7009_v7 = vld [vmem:[%s8119_s4 + $0x68] sm:$0xff] }
 0xb6a   :  { %v1580_v14 = vsub.f32 %v1576_v31, %v6854_v13  ;;  %v1608_v26 = vmul.f32 %v1607_v28, %v1576_v31  ;;  %v1579_v40 = vsub.f32 %v6369_v48, %v1575_v30  ;;  %v1574_v41 = vmax.f32 %v1564_v29, 0.0  ;;  %v7051_v31 = vld [vmem:[%s8119_s4 + $0x38] sm:$0xff]  ;;  %v7058_v30 = vld [vmem:[%s8119_s4 + $0x30] sm:$0xff]  ;;  %v7072_v29 = vld [vmem:[%s8119_s4 + $0x20] sm:$0xff] }
 0xb6b   :  { %v6969_v45 = vadd.f32 %v1609_v36, %v1604_v39  ;;  %v1585_v13 = vand.u32 2147483647, %v1581_v38  ;;  %v7065_v36 = vld [vmem:[%s8119_s4 + $0x28] sm:$0xff]  ;;  %v7100_v38 = vld [vmem:[%s8119_s4] sm:$0xff] }
 0xb6c   :  { %v6967_v44 = vadd.f32 %v1608_v26, %v1603_v37  ;;  %v1584_v49 = vand.u32 2147483647, %v1580_v14  ;;  %v1578_v54 = vsub.f32 %v6367_v47, %v1574_v41  ;;  %v1611_v6 = vmul.f32 %v1607_v28, %v1579_v40  ;;  %v7079_v14 = vld [vmem:[%s8119_s4 + $0x18] sm:$0xff]  ;;  %v7086_v26 = vld [vmem:[%s8119_s4 + $0x10] sm:$0xff]  ;;  %v7093_v37 = vld [vmem:[%s8119_s4 + $0x8] sm:$0xff] }
 0xb6d   :  { %v1583_v15 = vsub.f32 %v1579_v40, %v6867_v16  ;;  %v6096_v40 = vld [vmem:[%s8122_s5 + $0x1] ss:$0 sm:$0xff] }
 0xb6e   :  { %5381 = vmatprep.mubr.f32.mxu1 %v6967_v44  ;;  %v1582_v58 = vsub.f32 %v1578_v54, %v6865_v53  ;;  %v1610_v60 = vmul.f32 %v1607_v28, %v1578_v54  ;;  %v1588_v0 = vadd.f32 %v1585_v13, %v1584_v49  ;;  %v6980_v1 = vadd.f32 %v1611_v6, %v1606_v61  ;;  %v7044_v28 = vld [vmem:[%s8119_s4 + $0x40] sm:$0xff] }
 0xb6f   :  { %5382 = vmatmul.mubr.f32.vlgmr.msra.gmra.mxu1 %v6969_v45  ;;  %v1587_v2 = vand.u32 2147483647, %v1583_v15 }
 0xb70   :  { %v6978_v62 = vadd.f32 %v1610_v60, %v1605_v56  ;;  %v1586_v63 = vand.u32 2147483647, %v1582_v58 }
 0xb72   :  { %5384 = vmatprep.mubr.f32.mxu1 %v6978_v62  ;;  %v1589_v3 = vadd.f32 %v1588_v0, %v1586_v63 }
 0xb73   :  { %5385 = vmatmul.mubr.f32.gmra.mxu1 %v6980_v1 }
 0xb74   :  { %v1590_v53 = vadd.f32 %v1589_v3, %v1587_v2  ;;  %5447 = vmatprep.mubr.msk.f32.mxu1 %vm291_vm0, %v6874_v34 }
 0xb76   :  { %1591 = vadd.xlane.f32.xlu1 %v1590_v53 }
 0xbff   :  { %v1592_v4 = vpop.xlane.xlu1 %1591 }
 0xc00   :  { %v1593_v5 = vrot.slane %v1592_v4, 4 }
 0xc02   :  { %v1594_v16 = vadd.f32 %v1593_v5, %v1592_v4 }
 0xc04   :  { %v1595_v8 = vrot.slane %v1594_v16, 2 }
 0xc06   :  { %v1596_v10 = vadd.f32 %v1595_v8, %v1594_v16 }
 0xc08   :  { %v1597_v12 = vrot.slane %v1596_v10, 1 }
 0xc0a   :  { %v1598_v46 = vadd.f32 %v1597_v12, %v1596_v10 }
 0xc0c   :  { %6041 = vpush %v1598_v46 }
 0xc2f   :  { %v5383_v50 = vpop.f32.mrf.mxu1 }
 0xc31   :  { %v1687_v11 = vpop.f32.mrf.mxu1 }
 0xc33   :  { %v5386_v19 = vpop.f32.mrf.mxu1 }
 0xc34   :  { %5387 = vmatprep.subr.mxu0 %v5386_v19 }
 0xc35   :  { %v1697_v17 = vpop.f32.mrf.mxu1  ;;  %5388 = vmatpush3.msra.mxu0 %v5386_v19 }
 0xc36   :  { %5389 = vmatprep.subr.mxu0 %v1697_v17 }
 0xc37   :  { %5390 = vmatpush3.msra.mxu0 %v1697_v17 }
 0xc38   :  { %5391 = vmatprep.subr.mxu0 %v5383_v50 }
 0xc39   :  { %5392 = vmatpush3.msra.mxu0 %v5383_v50 }
 0xc3a   :  { %5393 = vmatprep.subr.mxu0 %v1687_v11 }
 0xc3b   :  { %5394 = vmatpush3.msra.mxu0 %v1687_v11 }
 0xc3c   :  { %5396 = vmatmul.mubr.msk.f32.vlgmr.msra.gmra.mxu0 %vm291_vm0, %v6881_v55  ;;  %5401 = vmatprep.subr.mxu0 %v6991_v23 }
 0xc3d   :  { %5398 = vmatprep.mubr.msk.f32.mxu0 %vm291_vm0, %v6891_v57  ;;  %5402 = vmatpush3.msra.mxu0 %v6991_v23  ;;  %s6042_s26 = spop %6041 }
 0xc3e   :  { %5403 = vmatprep.subr.mxu0 %v7000_v27  ;;  %s1600_s1 = smul.f32 0.0009765625, %s6042_s26 }
 0xc3f   :  { %5404 = vmatpush3.msra.mxu0 %v7000_v27 }
 0xc40   :  { %5399 = vmatmul.mubr.msk.f32.gmra.mxu0 %vm291_vm0, %v6901_v59  ;;  %5405 = vmatprep.subr.mxu0 %v7009_v7  ;;  %p1616_p3 = scmp.lt.f32.partialorder %s1600_s1, 1e-06 }
 0xc41   :  { %5406 = vmatpush3.msra.mxu0 %v7009_v7 }
 0xc42   :  { %5407 = vmatprep.subr.mxu0 %v7016_v21  ;;  %s1617_s27 = scalar_select %p1616_p3, 1, 0 }
 0xc43   :  { %5408 = vmatpush3.msra.mxu0 %v7016_v21 }
 0xc44   :  { %5409 = vmatprep.subr.mxu0 %v7023_v9  ;;  %s1618_s28 = scvt.s32.f32 %s1617_s27 }
 0xc45   :  { %5410 = vmatpush3.msra.mxu0 %v7023_v9 }
 0xc46   :  { %5411 = vmatprep.subr.mxu0 %v7030_v33  ;;  %s1619_s29 = smul.f32 %s1618_s28, %s1601_s3 }
 0xc47   :  { %5412 = vmatpush3.msra.mxu0 %v7030_v33 }
 0xc48   :  { %5413 = vmatprep.subr.mxu0 %v7037_v52  ;;  %s1620_s30 = smax.f32 %s1619_s29, %s6950_s12 }
 0xc49   :  { %5414 = vmatpush3.msra.mxu0 %v7037_v52  ;;  %s1799_s13 = ssub.f32 1.0, %s1620_s30  ;;  %v1800_v15 = vstv %s1620_s30 }
 0xc4a   :  { %5415 = vmatprep.subr.mxu0 %v7044_v28  ;;  %v1801_v4 = vmul.f32 %v1800_v15, %v6967_v44  ;;  %v1802_v10 = vmul.f32 %v1800_v15, %v6969_v45  ;;  %v1804_v44 = vmul.f32 %v1800_v15, %v6980_v1 }
 0xc4b   :  { %5416 = vmatpush3.msra.mxu0 %v7044_v28  ;;  %v1805_v63 = vstv %s1799_s13 }
 0xc4c   :  { %5417 = vmatprep.subr.mxu0 %v7051_v31 }
 0xc4d   :  { %5418 = vmatpush3.msra.mxu0 %v7051_v31 }
 0xc4e   :  { %5419 = vmatprep.subr.mxu0 %v7058_v30 }
 0xc4f   :  { %5420 = vmatpush3.msra.mxu0 %v7058_v30 }
 0xc50   :  { %5421 = vmatprep.subr.mxu0 %v7065_v36 }
 0xc51   :  { %5422 = vmatpush3.msra.mxu0 %v7065_v36 }
 0xc52   :  { %5423 = vmatprep.subr.mxu0 %v7072_v29 }
 0xc53   :  { %5424 = vmatpush3.msra.mxu0 %v7072_v29 }
 0xc54   :  { %5425 = vmatprep.subr.mxu0 %v7079_v14 }
 0xc55   :  { %5426 = vmatpush3.msra.mxu0 %v7079_v14 }
 0xc56   :  { %5427 = vmatprep.subr.mxu0 %v7086_v26 }
 0xc57   :  { %5428 = vmatpush3.msra.mxu0 %v7086_v26 }
 0xc58   :  { %5429 = vmatprep.subr.mxu0 %v7093_v37 }
 0xc59   :  { %5430 = vmatpush3.msra.mxu0 %v7093_v37 }
 0xc5a   :  { %5431 = vmatprep.subr.mxu0 %v7100_v38 }
 0xc5b   :  { %5432 = vmatpush3.msra.mxu0 %v7100_v38 }
 0xcfc   :  { %v5397_v39 = vpop.f32.mrf.mxu0 }
 0xcfd   :  { %v1778_v41 = vadd.f32 %v6096_v40, %v5397_v39  ;;  %v7173_v39 = vld [vmem:[%s8122_s5] ss:$0 sm:$0xff] }
 0xcfe   :  { %v1772_v49 = vpop.f32.mrf.mxu0 }
 0xcff   :  { %v1792_v54 = vmax.f32 %v1778_v41, 0.0  ;;  %v1773_v6 = vadd.f32 %v6096_v40, %v1772_v49 }
 0xd00   :  { %v5400_v56 = vpop.f32.mrf.mxu0 }
 0xd01   :  { %v1796_v13 = vsub.f32 %v6363_v43, %v1792_v54  ;;  %v1791_v58 = vmax.f32 %v1773_v6, 0.0  ;;  %v1788_v60 = vadd.f32 %v6096_v40, %v5400_v56 }
 0xd02   :  { %v1782_v61 = vpop.f32.mrf.mxu0 }
 0xd03   :  { %v1795_v0 = vsub.f32 %v6361_v42, %v1791_v58  ;;  %v1794_v2 = vmax.f32 %v1788_v60, 0.0  ;;  %v1783_v3 = vadd.f32 %v6096_v40, %v1782_v61  ;;  %v1807_v53 = vmul.f32 %v1805_v63, %v1796_v13 }
 0xd04   :  { %v1803_v42 = vmul.f32 %v1800_v15, %v6978_v62 }
 0xd05   :  { %v1806_v5 = vmul.f32 %v1805_v63, %v1795_v0  ;;  %v1798_v16 = vsub.f32 %v6369_v48, %v1794_v2  ;;  %v1793_v8 = vmax.f32 %v1783_v3, 0.0  ;;  %v7118_v46 = vadd.f32 %v1807_v53, %v1802_v10 }
 0xd07   :  { %v7115_v12 = vadd.f32 %v1806_v5, %v1801_v4  ;;  %v1797_v43 = vsub.f32 %v6367_v47, %v1793_v8  ;;  %v1809_v50 = vmul.f32 %v1805_v63, %v1798_v16  ;;  %v2014_v0 = vmul.f32 0.0, %v7118_v46 }
 0xd09   :  { %v1808_v11 = vmul.f32 %v1805_v63, %v1797_v43  ;;  %5433 = vmatprep.mubr.f32.mxu0 %v7115_v12  ;;  %v7126_v19 = vadd.f32 %v1809_v50, %v1804_v44  ;;  %v2013_v63 = vmul.f32 0.0, %v7115_v12 }
 0xd0a   :  { %5434 = vmatmul.mubr.f32.vlgmr.msra.gmra.mxu0 %v7118_v46 }
 0xd0b   :  { %v7124_v48 = vadd.f32 %v1808_v11, %v1803_v42  ;;  %v2016_v42 = vmul.f32 0.0, %v7126_v19 }
 0xd0d   :  { %5436 = vmatprep.mubr.f32.mxu0 %v7124_v48  ;;  %v2015_v50 = vmul.f32 0.0, %v7124_v48 }
 0xd0e   :  { %5437 = vmatmul.mubr.f32.gmra.mxu0 %v7126_v19 }
 0xd0f   :  { %5499 = vmatprep.mubr.msk.f32.mxu0 %vm291_vm0, %v6874_v34 }
 0xdca   :  { %v5435_v47 = vpop.f32.mrf.mxu0 }
 0xdcc   :  { %v1880_v45 = vpop.f32.mrf.mxu0 }
 0xdce   :  { %v5438_v62 = vpop.f32.mrf.mxu0 }
 0xdcf   :  { %5439 = vmatprep.subr.mxu1 %v5438_v62 }
 0xdd0   :  { %v1890_v17 = vpop.f32.mrf.mxu0  ;;  %5440 = vmatpush3.msra.mxu1 %v5438_v62 }
 0xdd1   :  { %5441 = vmatprep.subr.mxu1 %v1890_v17 }
 0xdd2   :  { %5442 = vmatpush3.msra.mxu1 %v1890_v17 }
 0xdd3   :  { %5443 = vmatprep.subr.mxu1 %v5435_v47 }
 0xdd4   :  { %5444 = vmatpush3.msra.mxu1 %v5435_v47 }
 0xdd5   :  { %5445 = vmatprep.subr.mxu1 %v1880_v45 }
 0xdd6   :  { %5446 = vmatpush3.msra.mxu1 %v1880_v45 }
 0xdd7   :  { %5448 = vmatmul.mubr.msk.f32.vlgmr.msra.gmra.mxu1 %vm291_vm0, %v6881_v55  ;;  %5453 = vmatprep.subr.mxu1 %v6991_v23 }
 0xdd8   :  { %5450 = vmatprep.mubr.msk.f32.mxu1 %vm291_vm0, %v6891_v57  ;;  %5454 = vmatpush3.msra.mxu1 %v6991_v23 }
 0xdd9   :  { %5455 = vmatprep.subr.mxu1 %v7000_v27 }
 0xdda   :  { %5456 = vmatpush3.msra.mxu1 %v7000_v27 }
 0xddb   :  { %5451 = vmatmul.mubr.msk.f32.gmra.mxu1 %vm291_vm0, %v6901_v59  ;;  %5457 = vmatprep.subr.mxu1 %v7009_v7 }
 0xddc   :  { %5458 = vmatpush3.msra.mxu1 %v7009_v7 }
 0xddd   :  { %5459 = vmatprep.subr.mxu1 %v7016_v21 }
 0xdde   :  { %5460 = vmatpush3.msra.mxu1 %v7016_v21 }
 0xddf   :  { %5461 = vmatprep.subr.mxu1 %v7023_v9 }
 0xde0   :  { %5462 = vmatpush3.msra.mxu1 %v7023_v9 }
 0xde1   :  { %5463 = vmatprep.subr.mxu1 %v7030_v33 }
 0xde2   :  { %5464 = vmatpush3.msra.mxu1 %v7030_v33 }
 0xde3   :  { %5465 = vmatprep.subr.mxu1 %v7037_v52 }
 0xde4   :  { %5466 = vmatpush3.msra.mxu1 %v7037_v52 }
 0xde5   :  { %5467 = vmatprep.subr.mxu1 %v7044_v28 }
 0xde6   :  { %5468 = vmatpush3.msra.mxu1 %v7044_v28 }
 0xde7   :  { %5469 = vmatprep.subr.mxu1 %v7051_v31 }
 0xde8   :  { %5470 = vmatpush3.msra.mxu1 %v7051_v31 }
 0xde9   :  { %5471 = vmatprep.subr.mxu1 %v7058_v30 }
 0xdea   :  { %5472 = vmatpush3.msra.mxu1 %v7058_v30 }
 0xdeb   :  { %5473 = vmatprep.subr.mxu1 %v7065_v36 }
 0xdec   :  { %5474 = vmatpush3.msra.mxu1 %v7065_v36 }
 0xded   :  { %5475 = vmatprep.subr.mxu1 %v7072_v29 }
 0xdee   :  { %5476 = vmatpush3.msra.mxu1 %v7072_v29 }
 0xdef   :  { %5477 = vmatprep.subr.mxu1 %v7079_v14 }
 0xdf0   :  { %5478 = vmatpush3.msra.mxu1 %v7079_v14 }
 0xdf1   :  { %5479 = vmatprep.subr.mxu1 %v7086_v26 }
 0xdf2   :  { %5480 = vmatpush3.msra.mxu1 %v7086_v26 }
 0xdf3   :  { %5481 = vmatprep.subr.mxu1 %v7093_v37 }
 0xdf4   :  { %5482 = vmatpush3.msra.mxu1 %v7093_v37 }
 0xdf5   :  { %5483 = vmatprep.subr.mxu1 %v7100_v38 }
 0xdf6   :  { %5484 = vmatpush3.msra.mxu1 %v7100_v38 }
 0xe97   :  { %v5449_v1 = vpop.f32.mrf.mxu1 }
 0xe98   :  { %v1971_v40 = vadd.f32 %v7173_v39, %v5449_v1 }
 0xe99   :  { %v1965_v41 = vpop.f32.mrf.mxu1 }
 0xe9a   :  { %v1985_v49 = vmax.f32 %v1971_v40, 0.0  ;;  %v1966_v54 = vadd.f32 %v7173_v39, %v1965_v41 }
 0xe9b   :  { %v5452_v6 = vpop.f32.mrf.mxu1 }
 0xe9c   :  { %v1984_v56 = vmax.f32 %v1966_v54, 0.0  ;;  %v1981_v13 = vadd.f32 %v7173_v39, %v5452_v6  ;;  %v1989_v58 = vsub.f32 %v7118_v46, %v1985_v49 }
 0xe9d   :  { %v1975_v60 = vpop.f32.mrf.mxu1 }
 0xe9e   :  { %v1988_v15 = vsub.f32 %v7115_v12, %v1984_v56  ;;  %v1987_v61 = vmax.f32 %v1981_v13, 0.0  ;;  %v1976_v2 = vadd.f32 %v7173_v39, %v1975_v60  ;;  %v1993_v4 = vsub.f32 %v1989_v58, %v7118_v46 }
 0xe9f   :  { %v7187_v5 = vadd.f32 %v2014_v0, %v1989_v58 }
 0xea0   :  { %v1992_v3 = vsub.f32 %v1988_v15, %v7115_v12  ;;  %v7184_v53 = vadd.f32 %v2013_v63, %v1988_v15  ;;  %v1991_v16 = vsub.f32 %v7126_v19, %v1987_v61  ;;  %v1986_v8 = vmax.f32 %v1976_v2, 0.0 }
 0xea1   :  { %v1997_v11 = vand.u32 2147483647, %v1993_v4 }
 0xea2   :  { %5485 = vmatprep.mubr.f32.mxu1 %v7184_v53  ;;  %v1996_v10 = vand.u32 2147483647, %v1992_v3  ;;  %v1990_v43 = vsub.f32 %v7124_v48, %v1986_v8  ;;  %v1995_v45 = vsub.f32 %v1991_v16, %v7126_v19  ;;  %v7199_v62 = vadd.f32 %v2016_v42, %v1991_v16 }
 0xea3   :  { %5486 = vmatmul.mubr.f32.vlgmr.msra.gmra.mxu1 %v7187_v5 }
 0xea4   :  { %v1994_v44 = vsub.f32 %v1990_v43, %v7124_v48  ;;  %v7196_v47 = vadd.f32 %v2015_v50, %v1990_v43  ;;  %v2000_v1 = vadd.f32 %v1997_v11, %v1996_v10  ;;  %v1999_v40 = vand.u32 2147483647, %v1995_v45 }
 0xea6   :  { %5488 = vmatprep.mubr.f32.mxu1 %v7196_v47  ;;  %v1998_v17 = vand.u32 2147483647, %v1994_v44 }
 0xea7   :  { %5489 = vmatmul.mubr.f32.gmra.mxu1 %v7199_v62 }
 0xea8   :  { %v2001_v41 = vadd.f32 %v2000_v1, %v1998_v17  ;;  %5551 = vmatprep.mubr.msk.f32.mxu1 %vm291_vm0, %v6874_v34 }
 0xeaa   :  { %v2002_v49 = vadd.f32 %v2001_v41, %v1999_v40 }
 0xeac   :  { %2003 = vadd.xlane.f32.xlu0 %v2002_v49 }
 0xf35   :  { %v2004_v54 = vpop.xlane.xlu0 %2003 }
 0xf36   :  { %v2005_v6 = vrot.slane %v2004_v54, 4 }
 0xf38   :  { %v2006_v56 = vadd.f32 %v2005_v6, %v2004_v54 }
 0xf3a   :  { %v2007_v13 = vrot.slane %v2006_v56, 2 }
 0xf3c   :  { %v2008_v58 = vadd.f32 %v2007_v13, %v2006_v56 }
 0xf3e   :  { %v2009_v60 = vrot.slane %v2008_v58, 1 }
 0xf40   :  { %v2010_v15 = vadd.f32 %v2009_v60, %v2008_v58 }
 0xf42   :  { %6043 = vpush %v2010_v15 }
 0xf63   :  { %v5487_v61 = vpop.f32.mrf.mxu1 }
 0xf65   :  { %v2091_v63 = vpop.f32.mrf.mxu1 }
 0xf67   :  { %v5490_v0 = vpop.f32.mrf.mxu1 }
 0xf68   :  { %5491 = vmatprep.subr.mxu0 %v5490_v0 }
 0xf69   :  { %v2101_v2 = vpop.f32.mrf.mxu1  ;;  %5492 = vmatpush3.msra.mxu0 %v5490_v0 }
 0xf6a   :  { %5493 = vmatprep.subr.mxu0 %v2101_v2 }
 0xf6b   :  { %5494 = vmatpush3.msra.mxu0 %v2101_v2 }
 0xf6c   :  { %5495 = vmatprep.subr.mxu0 %v5487_v61 }
 0xf6d   :  { %5496 = vmatpush3.msra.mxu0 %v5487_v61 }
 0xf6e   :  { %5497 = vmatprep.subr.mxu0 %v2091_v63 }
 0xf6f   :  { %5498 = vmatpush3.msra.mxu0 %v2091_v63 }
 0xf70   :  { %5500 = vmatmul.mubr.msk.f32.vlgmr.msra.gmra.mxu0 %vm291_vm0, %v6881_v55  ;;  %5505 = vmatprep.subr.mxu0 %v6991_v23 }
 0xf71   :  { %5502 = vmatprep.mubr.msk.f32.mxu0 %vm291_vm0, %v6891_v57  ;;  %5506 = vmatpush3.msra.mxu0 %v6991_v23 }
 0xf72   :  { %5507 = vmatprep.subr.mxu0 %v7000_v27 }
 0xf73   :  { %5508 = vmatpush3.msra.mxu0 %v7000_v27  ;;  %s6044_s14 = spop %6043 }
 0xf74   :  { %5503 = vmatmul.mubr.msk.f32.gmra.mxu0 %vm291_vm0, %v6901_v59  ;;  %5509 = vmatprep.subr.mxu0 %v7009_v7  ;;  %s2012_s15 = smul.f32 0.0009765625, %s6044_s14 }
 0xf75   :  { %5510 = vmatpush3.msra.mxu0 %v7009_v7 }
 0xf76   :  { %5511 = vmatprep.subr.mxu0 %v7016_v21  ;;  %p2021_p4 = scmp.lt.f32.partialorder %s2012_s15, 1e-06 }
 0xf77   :  { %5512 = vmatpush3.msra.mxu0 %v7016_v21 }
 0xf78   :  { %5513 = vmatprep.subr.mxu0 %v7023_v9  ;;  %s2022_s17 = scalar_select %p2021_p4, 1, 0 }
 0xf79   :  { %5514 = vmatpush3.msra.mxu0 %v7023_v9 }
 0xf7a   :  { %5515 = vmatprep.subr.mxu0 %v7030_v33  ;;  %s2023_s18 = scvt.s32.f32 %s2022_s17 }
 0xf7b   :  { %5516 = vmatpush3.msra.mxu0 %v7030_v33 }
 0xf7c   :  { %5517 = vmatprep.subr.mxu0 %v7037_v52  ;;  %s7244_s19 = smax.f32 %s6125_s16, %s2023_s18 }
 0xf7d   :  { %5518 = vmatpush3.msra.mxu0 %v7037_v52  ;;  %s2224_s20 = ssub.f32 1.0, %s7244_s19  ;;  %v2225_v44 = vstv %s7244_s19 }
 0xf7e   :  { %5519 = vmatprep.subr.mxu0 %v7044_v28  ;;  %v2226_v56 = vmul.f32 %v2225_v44, %v7184_v53  ;;  %v2227_v58 = vmul.f32 %v2225_v44, %v7187_v5 }
 0xf7f   :  { %5520 = vmatpush3.msra.mxu0 %v7044_v28  ;;  %v2230_v17 = vstv %s2224_s20 }
 0xf80   :  { %5521 = vmatprep.subr.mxu0 %v7051_v31 }
 0xf81   :  { %5522 = vmatpush3.msra.mxu0 %v7051_v31 }
 0xf82   :  { %5523 = vmatprep.subr.mxu0 %v7058_v30 }
 0xf83   :  { %5524 = vmatpush3.msra.mxu0 %v7058_v30 }
 0xf84   :  { %5525 = vmatprep.subr.mxu0 %v7065_v36 }
 0xf85   :  { %5526 = vmatpush3.msra.mxu0 %v7065_v36 }
 0xf86   :  { %5527 = vmatprep.subr.mxu0 %v7072_v29 }
 0xf87   :  { %5528 = vmatpush3.msra.mxu0 %v7072_v29 }
 0xf88   :  { %5529 = vmatprep.subr.mxu0 %v7079_v14 }
 0xf89   :  { %5530 = vmatpush3.msra.mxu0 %v7079_v14 }
 0xf8a   :  { %5531 = vmatprep.subr.mxu0 %v7086_v26 }
 0xf8b   :  { %5532 = vmatpush3.msra.mxu0 %v7086_v26 }
 0xf8c   :  { %5533 = vmatprep.subr.mxu0 %v7093_v37 }
 0xf8d   :  { %5534 = vmatpush3.msra.mxu0 %v7093_v37 }
 0xf8e   :  { %5535 = vmatprep.subr.mxu0 %v7100_v38 }
 0xf8f   :  { %5536 = vmatpush3.msra.mxu0 %v7100_v38 }
0x1030   :  { %v5501_v3 = vpop.f32.mrf.mxu0 }
0x1031   :  { %v2182_v4 = vadd.f32 %v7173_v39, %v5501_v3 }
0x1032   :  { %v2176_v16 = vpop.f32.mrf.mxu0 }
0x1033   :  { %v2196_v8 = vmax.f32 %v2182_v4, 0.0  ;;  %v2177_v10 = vadd.f32 %v7173_v39, %v2176_v16  ;;  %v2228_v4 = vmul.f32 %v2225_v44, %v7196_v47 }
0x1034   :  { %v5504_v43 = vpop.f32.mrf.mxu0 }
0x1035   :  { %v2200_v50 = vsub.f32 %v7118_v46, %v2196_v8  ;;  %v2195_v42 = vmax.f32 %v2177_v10, 0.0  ;;  %v2192_v11 = vadd.f32 %v7173_v39, %v5504_v43  ;;  %v2229_v10 = vmul.f32 %v2225_v44, %v7199_v62 }
0x1036   :  { %v2186_v45 = vpop.f32.mrf.mxu0 }
0x1037   :  { %v2199_v1 = vsub.f32 %v7115_v12, %v2195_v42  ;;  %v2198_v40 = vmax.f32 %v2192_v11, 0.0  ;;  %v2232_v41 = vmul.f32 %v2230_v17, %v2200_v50  ;;  %v2187_v49 = vadd.f32 %v7173_v39, %v2186_v45 }
0x1038   :  { %v2204_v13 = vsub.f32 %v2200_v50, %v7187_v5 }
0x1039   :  { %v2203_v54 = vsub.f32 %v2199_v1, %v7184_v53  ;;  %v2231_v6 = vmul.f32 %v2230_v17, %v2199_v1  ;;  %v2202_v60 = vsub.f32 %v7126_v19, %v2198_v40  ;;  %v2197_v15 = vmax.f32 %v2187_v49, 0.0 }
0x103a   :  { %v7263_v63 = vadd.f32 %v2232_v41, %v2227_v58  ;;  %v2208_v53 = vand.u32 2147483647, %v2204_v13 }
0x103b   :  { %v7261_v61 = vadd.f32 %v2231_v6, %v2226_v56  ;;  %v2207_v0 = vand.u32 2147483647, %v2203_v54  ;;  %v2201_v2 = vsub.f32 %v7124_v48, %v2197_v15  ;;  %v2234_v3 = vmul.f32 %v2230_v17, %v2202_v60 }
0x103c   :  { %v2206_v5 = vsub.f32 %v2202_v60, %v7199_v62 }
0x103d   :  { %5537 = vmatprep.mubr.f32.mxu0 %v7261_v61  ;;  %v2205_v16 = vsub.f32 %v2201_v2, %v7196_v47  ;;  %v2233_v8 = vmul.f32 %v2230_v17, %v2201_v2  ;;  %v2211_v42 = vadd.f32 %v2208_v53, %v2207_v0  ;;  %v7274_v11 = vadd.f32 %v2234_v3, %v2229_v10 }
0x103e   :  { %5538 = vmatmul.mubr.f32.vlgmr.msra.gmra.mxu0 %v7263_v63  ;;  %v2210_v45 = vand.u32 2147483647, %v2206_v5 }
0x103f   :  { %v7272_v43 = vadd.f32 %v2233_v8, %v2228_v4  ;;  %v2209_v50 = vand.u32 2147483647, %v2205_v16 }
0x1041   :  { %5540 = vmatprep.mubr.f32.mxu0 %v7272_v43  ;;  %v2212_v1 = vadd.f32 %v2211_v42, %v2209_v50 }
0x1042   :  { %5541 = vmatmul.mubr.f32.gmra.mxu0 %v7274_v11 }
0x1043   :  { %v2213_v47 = vadd.f32 %v2212_v1, %v2210_v45  ;;  %5603 = vmatprep.mubr.msk.f32.mxu0 %vm291_vm0, %v6874_v34 }
0x1045   :  { %2214 = vadd.xlane.f32.xlu1 %v2213_v47 }
0x10ce   :  { %v2215_v17 = vpop.xlane.xlu1 %2214 }
0x10cf   :  { %v2216_v40 = vrot.slane %v2215_v17, 4 }
0x10d1   :  { %v2217_v62 = vadd.f32 %v2216_v40, %v2215_v17 }
0x10d3   :  { %v2218_v44 = vrot.slane %v2217_v62, 2 }
0x10d5   :  { %v2219_v41 = vadd.f32 %v2218_v44, %v2217_v62 }
0x10d7   :  { %v2220_v49 = vrot.slane %v2219_v41, 1 }
0x10d9   :  { %v2221_v54 = vadd.f32 %v2220_v49, %v2219_v41 }
0x10db   :  { %6045 = vpush %v2221_v54 }
0x10fe   :  { %v5539_v6 = vpop.f32.mrf.mxu0 }
0x1100   :  { %v2310_v56 = vpop.f32.mrf.mxu0 }
0x1102   :  { %v5542_v13 = vpop.f32.mrf.mxu0 }
0x1103   :  { %5543 = vmatprep.subr.mxu1 %v5542_v13 }
0x1104   :  { %v2320_v58 = vpop.f32.mrf.mxu0  ;;  %5544 = vmatpush3.msra.mxu1 %v5542_v13 }
0x1105   :  { %5545 = vmatprep.subr.mxu1 %v2320_v58 }
0x1106   :  { %5546 = vmatpush3.msra.mxu1 %v2320_v58 }
0x1107   :  { %5547 = vmatprep.subr.mxu1 %v5539_v6 }
0x1108   :  { %5548 = vmatpush3.msra.mxu1 %v5539_v6 }
0x1109   :  { %5549 = vmatprep.subr.mxu1 %v2310_v56 }
0x110a   :  { %5550 = vmatpush3.msra.mxu1 %v2310_v56 }
0x110b   :  { %5552 = vmatmul.mubr.msk.f32.vlgmr.msra.gmra.mxu1 %vm291_vm0, %v6881_v55  ;;  %5557 = vmatprep.subr.mxu1 %v6991_v23 }
0x110c   :  { %5554 = vmatprep.mubr.msk.f32.mxu1 %vm291_vm0, %v6891_v57  ;;  %5558 = vmatpush3.msra.mxu1 %v6991_v23  ;;  %s6046_s21 = spop %6045 }
0x110d   :  { %5559 = vmatprep.subr.mxu1 %v7000_v27  ;;  %s2223_s2 = smul.f32 0.0009765625, %s6046_s21 }
0x110e   :  { %5560 = vmatpush3.msra.mxu1 %v7000_v27 }
0x110f   :  { %5555 = vmatmul.mubr.msk.f32.gmra.mxu1 %vm291_vm0, %v6901_v59  ;;  %5561 = vmatprep.subr.mxu1 %v7009_v7  ;;  %p2239_p5 = scmp.lt.f32.partialorder %s2223_s2, 1e-06 }
0x1110   :  { %5562 = vmatpush3.msra.mxu1 %v7009_v7 }
0x1111   :  { %5563 = vmatprep.subr.mxu1 %v7016_v21  ;;  %s2240_s22 = scalar_select %p2239_p5, 1, 0 }
0x1112   :  { %5564 = vmatpush3.msra.mxu1 %v7016_v21 }
0x1113   :  { %5565 = vmatprep.subr.mxu1 %v7023_v9  ;;  %s2241_s25 = scvt.s32.f32 %s2240_s22 }
0x1114   :  { %5566 = vmatpush3.msra.mxu1 %v7023_v9 }
0x1115   :  { %5567 = vmatprep.subr.mxu1 %v7030_v33  ;;  %s2242_s26 = smul.f32 %s2241_s25, %s2224_s20 }
0x1116   :  { %5568 = vmatpush3.msra.mxu1 %v7030_v33 }
0x1117   :  { %5569 = vmatprep.subr.mxu1 %v7037_v52  ;;  %s7321_s1 = smax.f32 %s2242_s26, %s7244_s19 }
0x1118   :  { %5570 = vmatpush3.msra.mxu1 %v7037_v52  ;;  %s2443_s27 = ssub.f32 1.0, %s7321_s1  ;;  %v2444_v4 = vstv %s7321_s1 }
0x1119   :  { %5571 = vmatprep.subr.mxu1 %v7044_v28  ;;  %v2445_v1 = vmul.f32 %v2444_v4, %v7261_v61  ;;  %v2446_v17 = vmul.f32 %v2444_v4, %v7263_v63  ;;  %v2447_v56 = vmul.f32 %v2444_v4, %v7272_v43 }
0x111a   :  { %5572 = vmatpush3.msra.mxu1 %v7044_v28  ;;  %v2449_v16 = vstv %s2443_s27 }
0x111b   :  { %5573 = vmatprep.subr.mxu1 %v7051_v31 }
0x111c   :  { %5574 = vmatpush3.msra.mxu1 %v7051_v31 }
0x111d   :  { %5575 = vmatprep.subr.mxu1 %v7058_v30 }
0x111e   :  { %5576 = vmatpush3.msra.mxu1 %v7058_v30 }
0x111f   :  { %5577 = vmatprep.subr.mxu1 %v7065_v36 }
0x1120   :  { %5578 = vmatpush3.msra.mxu1 %v7065_v36 }
0x1121   :  { %5579 = vmatprep.subr.mxu1 %v7072_v29 }
0x1122   :  { %5580 = vmatpush3.msra.mxu1 %v7072_v29 }
0x1123   :  { %5581 = vmatprep.subr.mxu1 %v7079_v14 }
0x1124   :  { %5582 = vmatpush3.msra.mxu1 %v7079_v14 }
0x1125   :  { %5583 = vmatprep.subr.mxu1 %v7086_v26 }
0x1126   :  { %5584 = vmatpush3.msra.mxu1 %v7086_v26 }
0x1127   :  { %5585 = vmatprep.subr.mxu1 %v7093_v37 }
0x1128   :  { %5586 = vmatpush3.msra.mxu1 %v7093_v37 }
0x1129   :  { %5587 = vmatprep.subr.mxu1 %v7100_v38 }
0x112a   :  { %5588 = vmatpush3.msra.mxu1 %v7100_v38 }
0x11cb   :  { %v5553_v34 = vpop.f32.mrf.mxu1 }
0x11cc   :  { %v2401_v55 = vadd.f32 %v7173_v39, %v5553_v34  ;;  %v2448_v34 = vmul.f32 %v2444_v4, %v7274_v11 }
0x11cd   :  { %v2395_v57 = vpop.f32.mrf.mxu1 }
0x11ce   :  { %v2415_v59 = vmax.f32 %v2401_v55, 0.0  ;;  %v2396_v60 = vadd.f32 %v7173_v39, %v2395_v57 }
0x11cf   :  { %v5556_v15 = vpop.f32.mrf.mxu1 }
0x11d0   :  { %v2419_v0 = vsub.f32 %v7118_v46, %v2415_v59  ;;  %v2414_v2 = vmax.f32 %v2396_v60, 0.0  ;;  %v2411_v3 = vadd.f32 %v7173_v39, %v5556_v15 }
0x11d1   :  { %v2405_v53 = vpop.f32.mrf.mxu1 }
0x11d2   :  { %v2418_v8 = vsub.f32 %v7115_v12, %v2414_v2  ;;  %v2417_v5 = vmax.f32 %v2411_v3, 0.0  ;;  %v2451_v10 = vmul.f32 %v2449_v16, %v2419_v0  ;;  %v2406_v50 = vadd.f32 %v7173_v39, %v2405_v53  ;;  %v7358_v2 = vld [vmem:[%s8121_s0] sm:$0xff] }
0x11d3   :  { %v2423_v47 = vsub.f32 %v2419_v0, %v7263_v63 }
0x11d4   :  { %v2422_v42 = vsub.f32 %v2418_v8, %v7261_v61  ;;  %v2450_v45 = vmul.f32 %v2449_v16, %v2418_v8  ;;  %v2421_v40 = vsub.f32 %v7126_v19, %v2417_v5  ;;  %v2416_v62 = vmax.f32 %v2406_v50, 0.0 }
0x11d5   :  { %v7340_v41 = vadd.f32 %v2451_v10, %v2446_v17  ;;  %v2427_v61 = vand.u32 2147483647, %v2423_v47  ;;  %v7373_v47 = vld [vmem:[%s8121_s0 + $0x10] sm:$0xff]  ;;  %v7383_v17 = vld [vmem:[%s8121_s0 + $0x18] sm:$0xff] }
0x11d6   :  { %v7338_v44 = vadd.f32 %v2450_v45, %v2445_v1  ;;  %v2426_v49 = vand.u32 2147483647, %v2422_v42  ;;  %v2420_v54 = vsub.f32 %v7124_v48, %v2416_v62  ;;  %v2453_v6 = vmul.f32 %v2449_v16, %v2421_v40  ;;  %v7365_v1 = vld [vmem:[%s8121_s0 + $0x8] sm:$0xff] }
0x11d7   :  { %v2425_v63 = vsub.f32 %v2421_v40, %v7274_v11 }
0x11d8   :  { %5589 = vmatprep.mubr.f32.mxu1 %v7338_v44  ;;  %v2424_v13 = vsub.f32 %v2420_v54, %v7272_v43  ;;  %v2452_v58 = vmul.f32 %v2449_v16, %v2420_v54  ;;  %v2430_v59 = vadd.f32 %v2427_v61, %v2426_v49  ;;  %v7351_v60 = vadd.f32 %v2453_v6, %v2448_v34 }
0x11d9   :  { %5590 = vmatmul.mubr.f32.vlgmr.msra.gmra.mxu1 %v7340_v41  ;;  %v2429_v15 = vand.u32 2147483647, %v2425_v63 }
0x11da   :  { %v7349_v55 = vadd.f32 %v2452_v58, %v2447_v56  ;;  %v2428_v57 = vand.u32 2147483647, %v2424_v13 }
0x11dc   :  { %5592 = vmatprep.mubr.f32.mxu1 %v7349_v55  ;;  %v2431_v0 = vadd.f32 %v2430_v59, %v2428_v57 }
0x11dd   :  { %5593 = vmatmul.mubr.f32.gmra.mxu1 %v7351_v60 }
0x11de   :  { %v2432_v43 = vadd.f32 %v2431_v0, %v2429_v15  ;;  %5655 = vmatprep.mubr.msk.f32.mxu1 %vm291_vm0, %v7358_v2 }
0x11e0   :  { %2433 = vadd.xlane.f32.xlu0 %v2432_v43 }
0x1269   :  { %v2434_v11 = vpop.xlane.xlu0 %2433 }
0x126a   :  { %v2435_v3 = vrot.slane %v2434_v11, 4 }
0x126c   :  { %v2436_v4 = vadd.f32 %v2435_v3, %v2434_v11 }
0x126e   :  { %v2437_v53 = vrot.slane %v2436_v4, 2 }
0x1270   :  { %v2438_v16 = vadd.f32 %v2437_v53, %v2436_v4 }
0x1272   :  { %v2439_v8 = vrot.slane %v2438_v16, 1 }
0x1274   :  { %v2440_v5 = vadd.f32 %v2439_v8, %v2438_v16 }
0x1276   :  { %6047 = vpush %v2440_v5 }
0x1299   :  { %v5591_v10 = vpop.f32.mrf.mxu1 }
0x129b   :  { %v2529_v50 = vpop.f32.mrf.mxu1 }
0x129d   :  { %v5594_v42 = vpop.f32.mrf.mxu1 }
0x129e   :  { %5595 = vmatprep.subr.mxu0 %v5594_v42 }
0x129f   :  { %v2539_v45 = vpop.f32.mrf.mxu1  ;;  %5596 = vmatpush3.msra.mxu0 %v5594_v42 }
0x12a0   :  { %5597 = vmatprep.subr.mxu0 %v2539_v45 }
0x12a1   :  { %5598 = vmatpush3.msra.mxu0 %v2539_v45 }
0x12a2   :  { %5599 = vmatprep.subr.mxu0 %v5591_v10 }
0x12a3   :  { %5600 = vmatpush3.msra.mxu0 %v5591_v10 }
0x12a4   :  { %5601 = vmatprep.subr.mxu0 %v2529_v50 }
0x12a5   :  { %5602 = vmatpush3.msra.mxu0 %v2529_v50 }
0x12a6   :  { %5604 = vmatmul.mubr.msk.f32.vlgmr.msra.gmra.mxu0 %vm291_vm0, %v7365_v1  ;;  %5609 = vmatprep.subr.mxu0 %v6991_v23 }
0x12a7   :  { %5606 = vmatprep.mubr.msk.f32.mxu0 %vm291_vm0, %v7373_v47  ;;  %5610 = vmatpush3.msra.mxu0 %v6991_v23  ;;  %s6048_s14 = spop %6047 }
0x12a8   :  { %5611 = vmatprep.subr.mxu0 %v7000_v27  ;;  %s2442_s15 = smul.f32 0.0009765625, %s6048_s14 }
0x12a9   :  { %5612 = vmatpush3.msra.mxu0 %v7000_v27 }
0x12aa   :  { %5607 = vmatmul.mubr.msk.f32.gmra.mxu0 %vm291_vm0, %v7383_v17  ;;  %5613 = vmatprep.subr.mxu0 %v7009_v7  ;;  %p2458_p6 = scmp.lt.f32.partialorder %s2442_s15, 1e-06 }
0x12ab   :  { %5614 = vmatpush3.msra.mxu0 %v7009_v7 }
0x12ac   :  { %5615 = vmatprep.subr.mxu0 %v7016_v21  ;;  %s2459_s17 = scalar_select %p2458_p6, 1, 0 }
0x12ad   :  { %5616 = vmatpush3.msra.mxu0 %v7016_v21 }
0x12ae   :  { %5617 = vmatprep.subr.mxu0 %v7023_v9  ;;  %s2460_s18 = scvt.s32.f32 %s2459_s17 }
0x12af   :  { %5618 = vmatpush3.msra.mxu0 %v7023_v9 }
0x12b0   :  { %5619 = vmatprep.subr.mxu0 %v7030_v33  ;;  %s2461_s19 = smul.f32 %s2460_s18, %s2443_s27 }
0x12b1   :  { %5620 = vmatpush3.msra.mxu0 %v7030_v33 }
0x12b2   :  { %5621 = vmatprep.subr.mxu0 %v7037_v52  ;;  %s7418_s20 = smax.f32 %s2461_s19, %s7321_s1 }
0x12b3   :  { %5622 = vmatpush3.msra.mxu0 %v7037_v52  ;;  %s2662_s21 = ssub.f32 1.0, %s7418_s20 }
0x12b4   :  { %5623 = vmatprep.subr.mxu0 %v7044_v28 }
0x12b5   :  { %5624 = vmatpush3.msra.mxu0 %v7044_v28 }
0x12b6   :  { %5625 = vmatprep.subr.mxu0 %v7051_v31 }
0x12b7   :  { %5626 = vmatpush3.msra.mxu0 %v7051_v31 }
0x12b8   :  { %5627 = vmatprep.subr.mxu0 %v7058_v30 }
0x12b9   :  { %5628 = vmatpush3.msra.mxu0 %v7058_v30  ;;  %v2663_v30 = vstv %s7418_s20 }
0x12ba   :  { %5629 = vmatprep.subr.mxu0 %v7065_v36  ;;  %v2664_v49 = vmul.f32 %v2663_v30, %v7338_v44  ;;  %v2665_v6 = vmul.f32 %v2663_v30, %v7340_v41  ;;  %v2666_v59 = vmul.f32 %v2663_v30, %v7349_v55  ;;  %v2667_v43 = vmul.f32 %v2663_v30, %v7351_v60  ;;  %v7491_v30 = vld [vmem:[%s8119_s4 + $0xd8] sm:$0xff] }
0x12bb   :  { %5630 = vmatpush3.msra.mxu0 %v7065_v36 }
0x12bc   :  { %5631 = vmatprep.subr.mxu0 %v7072_v29 }
0x12bd   :  { %5632 = vmatpush3.msra.mxu0 %v7072_v29  ;;  %v2668_v29 = vstv %s2662_s21 }
0x12be   :  { %5633 = vmatprep.subr.mxu0 %v7079_v14 }
0x12bf   :  { %5634 = vmatpush3.msra.mxu0 %v7079_v14 }
0x12c0   :  { %5635 = vmatprep.subr.mxu0 %v7086_v26 }
0x12c1   :  { %5636 = vmatpush3.msra.mxu0 %v7086_v26 }
0x12c2   :  { %5637 = vmatprep.subr.mxu0 %v7093_v37 }
0x12c3   :  { %5638 = vmatpush3.msra.mxu0 %v7093_v37 }
0x12c4   :  { %5639 = vmatprep.subr.mxu0 %v7100_v38 }
0x12c5   :  { %5640 = vmatpush3.msra.mxu0 %v7100_v38 }
0x1366   :  { %v5605_v23 = vpop.f32.mrf.mxu0 }
0x1367   :  { %v2620_v27 = vadd.f32 %v7173_v39, %v5605_v23 }
0x1368   :  { %v2614_v7 = vpop.f32.mrf.mxu0 }
0x1369   :  { %v2634_v21 = vmax.f32 %v2620_v27, 0.0  ;;  %v2615_v9 = vadd.f32 %v7173_v39, %v2614_v7 }
0x136a   :  { %v5608_v33 = vpop.f32.mrf.mxu0 }
0x136b   :  { %v2638_v52 = vsub.f32 %v7118_v46, %v2634_v21  ;;  %v2633_v28 = vmax.f32 %v2615_v9, 0.0  ;;  %v2630_v31 = vadd.f32 %v7173_v39, %v5608_v33  ;;  %v7459_v33 = vld [vmem:[%s8119_s4 + $0xf8] sm:$0xff] }
0x136c   :  { %v2624_v36 = vpop.f32.mrf.mxu0 }
0x136d   :  { %v2637_v14 = vsub.f32 %v7115_v12, %v2633_v28  ;;  %v2636_v26 = vmax.f32 %v2630_v31, 0.0  ;;  %v2670_v37 = vmul.f32 %v2668_v29, %v2638_v52  ;;  %v2625_v38 = vadd.f32 %v7173_v39, %v2624_v36  ;;  %v7477_v28 = vld [vmem:[%s8119_s4 + $0xe8] sm:$0xff]  ;;  %v7484_v31 = vld [vmem:[%s8119_s4 + $0xe0] sm:$0xff]  ;;  %v7498_v36 = vld [vmem:[%s8119_s4 + $0xd0] sm:$0xff] }
0x136e   :  { %v2642_v54 = vsub.f32 %v2638_v52, %v7340_v41  ;;  %v7468_v52 = vld [vmem:[%s8119_s4 + $0xf0] sm:$0xff] }
0x136f   :  { %v2641_v40 = vsub.f32 %v2637_v14, %v7338_v44  ;;  %v2669_v62 = vmul.f32 %v2668_v29, %v2637_v14  ;;  %v2640_v56 = vsub.f32 %v7126_v19, %v2636_v26  ;;  %v2635_v61 = vmax.f32 %v2625_v38, 0.0  ;;  %v7512_v14 = vld [vmem:[%s8119_s4 + $0xc0] sm:$0xff]  ;;  %v7519_v26 = vld [vmem:[%s8119_s4 + $0xb8] sm:$0xff]  ;;  %v7533_v38 = vld [vmem:[%s8119_s4 + $0xa8] sm:$0xff] }
0x1370   :  { %v7437_v58 = vadd.f32 %v2670_v37, %v2665_v6  ;;  %v2646_v44 = vand.u32 2147483647, %v2642_v54  ;;  %v7526_v37 = vld [vmem:[%s8119_s4 + $0xb0] sm:$0xff]  ;;  %v7561_v54 = vld [vmem:[%s8119_s4 + $0x88] sm:$0xff]  ;;  %v7568_v6 = vld [vmem:[%s8119_s4 + $0x80] sm:$0xff] }
0x1371   :  { %v7435_v13 = vadd.f32 %v2669_v62, %v2664_v49  ;;  %v2645_v63 = vand.u32 2147483647, %v2641_v40  ;;  %v2639_v34 = vsub.f32 %v7124_v48, %v2635_v61  ;;  %v2672_v57 = vmul.f32 %v2668_v29, %v2640_v56  ;;  %v7540_v40 = vld [vmem:[%s8119_s4 + $0xa0] sm:$0xff]  ;;  %v7547_v62 = vld [vmem:[%s8119_s4 + $0x98] sm:$0xff]  ;;  %v7554_v49 = vld [vmem:[%s8119_s4 + $0x90] sm:$0xff] }
0x1372   :  { %v2644_v41 = vsub.f32 %v2640_v56, %v7351_v60 }
0x1373   :  { %5641 = vmatprep.mubr.f32.mxu0 %v7435_v13  ;;  %v2643_v15 = vsub.f32 %v2639_v34, %v7349_v55  ;;  %v2671_v0 = vmul.f32 %v2668_v29, %v2639_v34  ;;  %v2649_v4 = vadd.f32 %v2646_v44, %v2645_v63  ;;  %v7448_v53 = vadd.f32 %v2672_v57, %v2667_v43  ;;  %v7505_v29 = vld [vmem:[%s8119_s4 + $0xc8] sm:$0xff] }
0x1374   :  { %5642 = vmatmul.mubr.f32.vlgmr.msra.gmra.mxu0 %v7437_v58  ;;  %v2648_v16 = vand.u32 2147483647, %v2644_v41 }
0x1375   :  { %v7446_v11 = vadd.f32 %v2671_v0, %v2666_v59  ;;  %v2647_v3 = vand.u32 2147483647, %v2643_v15 }
0x1377   :  { %5644 = vmatprep.mubr.f32.mxu0 %v7446_v11  ;;  %v2650_v8 = vadd.f32 %v2649_v4, %v2647_v3 }
0x1378   :  { %5645 = vmatmul.mubr.f32.gmra.mxu0 %v7448_v53 }
0x1379   :  { %v2651_v55 = vadd.f32 %v2650_v8, %v2648_v16  ;;  %5707 = vmatprep.mubr.msk.f32.mxu0 %vm291_vm0, %v7358_v2 }
0x137b   :  { %2652 = vadd.xlane.f32.xlu1 %v2651_v55 }
0x1404   :  { %v2653_v5 = vpop.xlane.xlu1 %2652 }
0x1405   :  { %v2654_v10 = vrot.slane %v2653_v5, 4 }
0x1407   :  { %v2655_v60 = vadd.f32 %v2654_v10, %v2653_v5 }
0x1409   :  { %v2656_v50 = vrot.slane %v2655_v60, 2 }
0x140b   :  { %v2657_v42 = vadd.f32 %v2656_v50, %v2655_v60 }
0x140d   :  { %v2658_v45 = vrot.slane %v2657_v42, 1 }
0x140f   :  { %v2659_v23 = vadd.f32 %v2658_v45, %v2657_v42 }
0x1411   :  { %6049 = vpush %v2659_v23 }
0x1434   :  { %v5643_v27 = vpop.f32.mrf.mxu0 }
0x1436   :  { %v2748_v7 = vpop.f32.mrf.mxu0 }
0x1438   :  { %v5646_v21 = vpop.f32.mrf.mxu0 }
0x1439   :  { %5647 = vmatprep.subr.mxu1 %v5646_v21 }
0x143a   :  { %v2758_v9 = vpop.f32.mrf.mxu0  ;;  %5648 = vmatpush3.msra.mxu1 %v5646_v21 }
0x143b   :  { %5649 = vmatprep.subr.mxu1 %v2758_v9 }
0x143c   :  { %5650 = vmatpush3.msra.mxu1 %v2758_v9  ;;  %v7642_v9 = vld [vmem:[%s8122_s5 + $0x1] ss:$0 sm:$0xff] }
0x143d   :  { %5651 = vmatprep.subr.mxu1 %v5643_v27 }
0x143e   :  { %5652 = vmatpush3.msra.mxu1 %v5643_v27 }
0x143f   :  { %5653 = vmatprep.subr.mxu1 %v2748_v7 }
0x1440   :  { %5654 = vmatpush3.msra.mxu1 %v2748_v7 }
0x1441   :  { %5656 = vmatmul.mubr.msk.f32.vlgmr.msra.gmra.mxu1 %vm291_vm0, %v7365_v1  ;;  %5661 = vmatprep.subr.mxu1 %v7459_v33 }
0x1442   :  { %5658 = vmatprep.mubr.msk.f32.mxu1 %vm291_vm0, %v7373_v47  ;;  %5662 = vmatpush3.msra.mxu1 %v7459_v33  ;;  %s6050_s3 = spop %6049 }
0x1443   :  { %5663 = vmatprep.subr.mxu1 %v7468_v52  ;;  %s2661_s14 = smul.f32 0.0009765625, %s6050_s3 }
0x1444   :  { %5664 = vmatpush3.msra.mxu1 %v7468_v52 }
0x1445   :  { %5659 = vmatmul.mubr.msk.f32.gmra.mxu1 %vm291_vm0, %v7383_v17  ;;  %5665 = vmatprep.subr.mxu1 %v7477_v28  ;;  %p2677_p7 = scmp.lt.f32.partialorder %s2661_s14, 1e-06 }
0x1446   :  { %5666 = vmatpush3.msra.mxu1 %v7477_v28 }
0x1447   :  { %5667 = vmatprep.subr.mxu1 %v7484_v31  ;;  %s2678_s15 = scalar_select %p2677_p7, 1, 0 }
0x1448   :  { %5668 = vmatpush3.msra.mxu1 %v7484_v31 }
0x1449   :  { %5669 = vmatprep.subr.mxu1 %v7491_v30  ;;  %s2679_s17 = scvt.s32.f32 %s2678_s15 }
0x144a   :  { %5670 = vmatpush3.msra.mxu1 %v7491_v30 }
0x144b   :  { %5671 = vmatprep.subr.mxu1 %v7498_v36  ;;  %s2680_s18 = smul.f32 %s2679_s17, %s2662_s21 }
0x144c   :  { %5672 = vmatpush3.msra.mxu1 %v7498_v36 }
0x144d   :  { %5673 = vmatprep.subr.mxu1 %v7505_v29  ;;  %s2681_s19 = smax.f32 %s2680_s18, %s7418_s20 }
0x144e   :  { %5674 = vmatpush3.msra.mxu1 %v7505_v29  ;;  %s2860_s2 = ssub.f32 1.0, %s2681_s19  ;;  %v2861_v41 = vstv %s2681_s19 }
0x144f   :  { %5675 = vmatprep.subr.mxu1 %v7512_v14  ;;  %v2862_v5 = vmul.f32 %v2861_v41, %v7435_v13 }
0x1450   :  { %5676 = vmatpush3.msra.mxu1 %v7512_v14  ;;  %v2866_v3 = vstv %s2860_s2 }
0x1451   :  { %5677 = vmatprep.subr.mxu1 %v7519_v26 }
0x1452   :  { %5678 = vmatpush3.msra.mxu1 %v7519_v26 }
0x1453   :  { %5679 = vmatprep.subr.mxu1 %v7526_v37 }
0x1454   :  { %5680 = vmatpush3.msra.mxu1 %v7526_v37 }
0x1455   :  { %5681 = vmatprep.subr.mxu1 %v7533_v38 }
0x1456   :  { %5682 = vmatpush3.msra.mxu1 %v7533_v38 }
0x1457   :  { %5683 = vmatprep.subr.mxu1 %v7540_v40 }
0x1458   :  { %5684 = vmatpush3.msra.mxu1 %v7540_v40 }
0x1459   :  { %5685 = vmatprep.subr.mxu1 %v7547_v62 }
0x145a   :  { %5686 = vmatpush3.msra.mxu1 %v7547_v62 }
0x145b   :  { %5687 = vmatprep.subr.mxu1 %v7554_v49 }
0x145c   :  { %5688 = vmatpush3.msra.mxu1 %v7554_v49 }
0x145d   :  { %5689 = vmatprep.subr.mxu1 %v7561_v54 }
0x145e   :  { %5690 = vmatpush3.msra.mxu1 %v7561_v54 }
0x145f   :  { %5691 = vmatprep.subr.mxu1 %v7568_v6 }
0x1460   :  { %5692 = vmatpush3.msra.mxu1 %v7568_v6 }
0x1501   :  { %v5657_v56 = vpop.f32.mrf.mxu1 }
0x1502   :  { %v2839_v61 = vadd.f32 %v7173_v39, %v5657_v56 }
0x1503   :  { %v2833_v63 = vpop.f32.mrf.mxu1 }
0x1504   :  { %v2853_v34 = vmax.f32 %v2839_v61, 0.0  ;;  %v2834_v57 = vadd.f32 %v7173_v39, %v2833_v63 }
0x1505   :  { %v5660_v59 = vpop.f32.mrf.mxu1 }
0x1506   :  { %v2857_v44 = vsub.f32 %v7118_v46, %v2853_v34  ;;  %v2852_v15 = vmax.f32 %v2834_v57, 0.0  ;;  %v2849_v0 = vadd.f32 %v7173_v39, %v5660_v59  ;;  %v2863_v46 = vmul.f32 %v2861_v41, %v7437_v58 }
0x1507   :  { %v2843_v43 = vpop.f32.mrf.mxu1 }
0x1508   :  { %v2856_v4 = vsub.f32 %v7115_v12, %v2852_v15  ;;  %v2855_v16 = vmax.f32 %v2849_v0, 0.0  ;;  %v2844_v8 = vadd.f32 %v7173_v39, %v2843_v43  ;;  %v2868_v55 = vmul.f32 %v2866_v3, %v2857_v44 }
0x1509   :  { %v2864_v12 = vmul.f32 %v2861_v41, %v7446_v11  ;;  %v2865_v39 = vmul.f32 %v2861_v41, %v7448_v53 }
0x150a   :  { %v2867_v10 = vmul.f32 %v2866_v3, %v2856_v4  ;;  %v2859_v60 = vsub.f32 %v7126_v19, %v2855_v16  ;;  %v2854_v50 = vmax.f32 %v2844_v8, 0.0  ;;  %v7587_v23 = vadd.f32 %v2868_v55, %v2863_v46 }
0x150c   :  { %v7584_v42 = vadd.f32 %v2867_v10, %v2862_v5  ;;  %v2858_v45 = vsub.f32 %v7124_v48, %v2854_v50  ;;  %v2870_v27 = vmul.f32 %v2866_v3, %v2859_v60  ;;  %v3075_v4 = vmul.f32 0.0, %v7587_v23 }
0x150e   :  { %v2869_v7 = vmul.f32 %v2866_v3, %v2858_v45  ;;  %5693 = vmatprep.mubr.f32.mxu1 %v7584_v42  ;;  %v7595_v13 = vadd.f32 %v2870_v27, %v2865_v39  ;;  %v3074_v3 = vmul.f32 0.0, %v7584_v42 }
0x150f   :  { %5694 = vmatmul.mubr.f32.vlgmr.msra.gmra.mxu1 %v7587_v23 }
0x1510   :  { %v7593_v19 = vadd.f32 %v2869_v7, %v2864_v12  ;;  %v3077_v12 = vmul.f32 0.0, %v7595_v13 }
0x1512   :  { %5696 = vmatprep.mubr.f32.mxu1 %v7593_v19  ;;  %v3076_v27 = vmul.f32 0.0, %v7593_v19 }
0x1513   :  { %5697 = vmatmul.mubr.f32.gmra.mxu1 %v7595_v13 }
0x1514   :  { %5759 = vmatprep.mubr.msk.f32.mxu1 %vm291_vm0, %v7358_v2 }
0x15cf   :  { %v5695_v48 = vpop.f32.mrf.mxu1 }
0x15d1   :  { %v2941_v58 = vpop.f32.mrf.mxu1 }
0x15d3   :  { %v5698_v11 = vpop.f32.mrf.mxu1 }
0x15d4   :  { %5699 = vmatprep.subr.mxu0 %v5698_v11 }
0x15d5   :  { %v2951_v21 = vpop.f32.mrf.mxu1  ;;  %5700 = vmatpush3.msra.mxu0 %v5698_v11 }
0x15d6   :  { %5701 = vmatprep.subr.mxu0 %v2951_v21 }
0x15d7   :  { %5702 = vmatpush3.msra.mxu0 %v2951_v21 }
0x15d8   :  { %5703 = vmatprep.subr.mxu0 %v5695_v48 }
0x15d9   :  { %5704 = vmatpush3.msra.mxu0 %v5695_v48 }
0x15da   :  { %5705 = vmatprep.subr.mxu0 %v2941_v58 }
0x15db   :  { %5706 = vmatpush3.msra.mxu0 %v2941_v58 }
0x15dc   :  { %5708 = vmatmul.mubr.msk.f32.vlgmr.msra.gmra.mxu0 %vm291_vm0, %v7365_v1  ;;  %5713 = vmatprep.subr.mxu0 %v7459_v33 }
0x15dd   :  { %5710 = vmatprep.mubr.msk.f32.mxu0 %vm291_vm0, %v7373_v47  ;;  %5714 = vmatpush3.msra.mxu0 %v7459_v33 }
0x15de   :  { %5715 = vmatprep.subr.mxu0 %v7468_v52 }
0x15df   :  { %5716 = vmatpush3.msra.mxu0 %v7468_v52 }
0x15e0   :  { %5711 = vmatmul.mubr.msk.f32.gmra.mxu0 %vm291_vm0, %v7383_v17  ;;  %5717 = vmatprep.subr.mxu0 %v7477_v28 }
0x15e1   :  { %5718 = vmatpush3.msra.mxu0 %v7477_v28 }
0x15e2   :  { %5719 = vmatprep.subr.mxu0 %v7484_v31 }
0x15e3   :  { %5720 = vmatpush3.msra.mxu0 %v7484_v31 }
0x15e4   :  { %5721 = vmatprep.subr.mxu0 %v7491_v30 }
0x15e5   :  { %5722 = vmatpush3.msra.mxu0 %v7491_v30 }
0x15e6   :  { %5723 = vmatprep.subr.mxu0 %v7498_v36 }
0x15e7   :  { %5724 = vmatpush3.msra.mxu0 %v7498_v36 }
0x15e8   :  { %5725 = vmatprep.subr.mxu0 %v7505_v29 }
0x15e9   :  { %5726 = vmatpush3.msra.mxu0 %v7505_v29 }
0x15ea   :  { %5727 = vmatprep.subr.mxu0 %v7512_v14 }
0x15eb   :  { %5728 = vmatpush3.msra.mxu0 %v7512_v14 }
0x15ec   :  { %5729 = vmatprep.subr.mxu0 %v7519_v26 }
0x15ed   :  { %5730 = vmatpush3.msra.mxu0 %v7519_v26 }
0x15ee   :  { %5731 = vmatprep.subr.mxu0 %v7526_v37 }
0x15ef   :  { %5732 = vmatpush3.msra.mxu0 %v7526_v37 }
0x15f0   :  { %5733 = vmatprep.subr.mxu0 %v7533_v38 }
0x15f1   :  { %5734 = vmatpush3.msra.mxu0 %v7533_v38 }
0x15f2   :  { %5735 = vmatprep.subr.mxu0 %v7540_v40 }
0x15f3   :  { %5736 = vmatpush3.msra.mxu0 %v7540_v40 }
0x15f4   :  { %5737 = vmatprep.subr.mxu0 %v7547_v62 }
0x15f5   :  { %5738 = vmatpush3.msra.mxu0 %v7547_v62 }
0x15f6   :  { %5739 = vmatprep.subr.mxu0 %v7554_v49 }
0x15f7   :  { %5740 = vmatpush3.msra.mxu0 %v7554_v49 }
0x15f8   :  { %5741 = vmatprep.subr.mxu0 %v7561_v54 }
0x15f9   :  { %5742 = vmatpush3.msra.mxu0 %v7561_v54 }
0x15fa   :  { %5743 = vmatprep.subr.mxu0 %v7568_v6 }
0x15fb   :  { %5744 = vmatpush3.msra.mxu0 %v7568_v6 }
0x169c   :  { %v5709_v53 = vpop.f32.mrf.mxu0 }
0x169d   :  { %v3032_v56 = vadd.f32 %v7642_v9, %v5709_v53 }
0x169e   :  { %v3026_v61 = vpop.f32.mrf.mxu0 }
0x169f   :  { %v3046_v63 = vmax.f32 %v3032_v56, 0.0  ;;  %v3027_v34 = vadd.f32 %v7642_v9, %v3026_v61 }
0x16a0   :  { %v5712_v57 = vpop.f32.mrf.mxu0 }
0x16a1   :  { %v3045_v59 = vmax.f32 %v3027_v34, 0.0  ;;  %v3042_v44 = vadd.f32 %v7642_v9, %v5712_v57  ;;  %v3050_v15 = vsub.f32 %v7587_v23, %v3046_v63 }
0x16a2   :  { %v3036_v0 = vpop.f32.mrf.mxu0 }
0x16a3   :  { %v3049_v41 = vsub.f32 %v7584_v42, %v3045_v59  ;;  %v3048_v43 = vmax.f32 %v3042_v44, 0.0  ;;  %v3037_v16 = vadd.f32 %v7642_v9, %v3036_v0  ;;  %v3054_v5 = vsub.f32 %v3050_v15, %v7587_v23 }
0x16a4   :  { %v7656_v10 = vadd.f32 %v3075_v4, %v3050_v15 }
0x16a5   :  { %v3053_v8 = vsub.f32 %v3049_v41, %v7584_v42  ;;  %v7653_v55 = vadd.f32 %v3074_v3, %v3049_v41  ;;  %v3052_v60 = vsub.f32 %v7595_v13, %v3048_v43  ;;  %v3047_v50 = vmax.f32 %v3037_v16, 0.0 }
0x16a6   :  { %v3058_v7 = vand.u32 2147483647, %v3054_v5 }
0x16a7   :  { %5745 = vmatprep.mubr.f32.mxu0 %v7653_v55  ;;  %v3057_v46 = vand.u32 2147483647, %v3053_v8  ;;  %v3051_v45 = vsub.f32 %v7593_v19, %v3047_v50  ;;  %v3056_v58 = vsub.f32 %v3052_v60, %v7595_v13  ;;  %v7668_v11 = vadd.f32 %v3077_v12, %v3052_v60 }
0x16a8   :  { %5746 = vmatmul.mubr.f32.vlgmr.msra.gmra.mxu0 %v7656_v10 }
0x16a9   :  { %v3055_v39 = vsub.f32 %v3051_v45, %v7593_v19  ;;  %v7665_v48 = vadd.f32 %v3076_v27, %v3051_v45  ;;  %v3061_v53 = vadd.f32 %v3058_v7, %v3057_v46  ;;  %v3060_v56 = vand.u32 2147483647, %v3056_v58 }
0x16ab   :  { %5748 = vmatprep.mubr.f32.mxu0 %v7665_v48  ;;  %v3059_v21 = vand.u32 2147483647, %v3055_v39 }
0x16ac   :  { %5749 = vmatmul.mubr.f32.gmra.mxu0 %v7668_v11 }
0x16ad   :  { %v3062_v61 = vadd.f32 %v3061_v53, %v3059_v21  ;;  %5811 = vmatprep.mubr.msk.f32.mxu0 %vm291_vm0, %v7358_v2 }
0x16af   :  { %v3063_v63 = vadd.f32 %v3062_v61, %v3060_v56 }
0x16b1   :  { %3064 = vadd.xlane.f32.xlu0 %v3063_v63 }
0x173a   :  { %v3065_v34 = vpop.xlane.xlu0 %3064 }
0x173b   :  { %v3066_v57 = vrot.slane %v3065_v34, 4 }
0x173d   :  { %v3067_v59 = vadd.f32 %v3066_v57, %v3065_v34 }
0x173f   :  { %v3068_v44 = vrot.slane %v3067_v59, 2 }
0x1741   :  { %v3069_v15 = vadd.f32 %v3068_v44, %v3067_v59 }
0x1743   :  { %v3070_v0 = vrot.slane %v3069_v15, 1 }
0x1745   :  { %v3071_v41 = vadd.f32 %v3070_v0, %v3069_v15 }
0x1747   :  { %6051 = vpush %v3071_v41 }
0x1768   :  { %v5747_v43 = vpop.f32.mrf.mxu0 }
0x176a   :  { %v3152_v3 = vpop.f32.mrf.mxu0 }
0x176c   :  { %v5750_v4 = vpop.f32.mrf.mxu0 }
0x176d   :  { %5751 = vmatprep.subr.mxu1 %v5750_v4 }
0x176e   :  { %v3162_v16 = vpop.f32.mrf.mxu0  ;;  %5752 = vmatpush3.msra.mxu1 %v5750_v4 }
0x176f   :  { %5753 = vmatprep.subr.mxu1 %v3162_v16 }
0x1770   :  { %5754 = vmatpush3.msra.mxu1 %v3162_v16 }
0x1771   :  { %5755 = vmatprep.subr.mxu1 %v5747_v43 }
0x1772   :  { %5756 = vmatpush3.msra.mxu1 %v5747_v43 }
0x1773   :  { %5757 = vmatprep.subr.mxu1 %v3152_v3 }
0x1774   :  { %5758 = vmatpush3.msra.mxu1 %v3152_v3 }
0x1775   :  { %5760 = vmatmul.mubr.msk.f32.vlgmr.msra.gmra.mxu1 %vm291_vm0, %v7365_v1  ;;  %5765 = vmatprep.subr.mxu1 %v7459_v33 }
0x1776   :  { %5762 = vmatprep.mubr.msk.f32.mxu1 %vm291_vm0, %v7373_v47  ;;  %5766 = vmatpush3.msra.mxu1 %v7459_v33 }
0x1777   :  { %5767 = vmatprep.subr.mxu1 %v7468_v52 }
0x1778   :  { %5768 = vmatpush3.msra.mxu1 %v7468_v52  ;;  %s6052_s21 = spop %6051 }
0x1779   :  { %5763 = vmatmul.mubr.msk.f32.gmra.mxu1 %vm291_vm0, %v7383_v17  ;;  %5769 = vmatprep.subr.mxu1 %v7477_v28  ;;  %s3073_s22 = smul.f32 0.0009765625, %s6052_s21 }
0x177a   :  { %5770 = vmatpush3.msra.mxu1 %v7477_v28 }
0x177b   :  { %5771 = vmatprep.subr.mxu1 %v7484_v31  ;;  %p3082_p8 = scmp.lt.f32.partialorder %s3073_s22, 1e-06 }
0x177c   :  { %5772 = vmatpush3.msra.mxu1 %v7484_v31 }
0x177d   :  { %5773 = vmatprep.subr.mxu1 %v7491_v30  ;;  %s3083_s25 = scalar_select %p3082_p8, 1, 0 }
0x177e   :  { %5774 = vmatpush3.msra.mxu1 %v7491_v30 }
0x177f   :  { %5775 = vmatprep.subr.mxu1 %v7498_v36  ;;  %s3084_s26 = scvt.s32.f32 %s3083_s25 }
0x1780   :  { %5776 = vmatpush3.msra.mxu1 %v7498_v36 }
0x1781   :  { %5777 = vmatprep.subr.mxu1 %v7505_v29  ;;  %s7713_s1 = smax.f32 %s6125_s16, %s3084_s26 }
0x1782   :  { %5778 = vmatpush3.msra.mxu1 %v7505_v29  ;;  %s3285_s27 = ssub.f32 1.0, %s7713_s1  ;;  %v3286_v39 = vstv %s7713_s1 }
0x1783   :  { %5779 = vmatprep.subr.mxu1 %v7512_v14  ;;  %v3287_v59 = vmul.f32 %v3286_v39, %v7653_v55  ;;  %v3288_v15 = vmul.f32 %v3286_v39, %v7656_v10 }
0x1784   :  { %5780 = vmatpush3.msra.mxu1 %v7512_v14  ;;  %v3291_v21 = vstv %s3285_s27 }
0x1785   :  { %5781 = vmatprep.subr.mxu1 %v7519_v26 }
0x1786   :  { %5782 = vmatpush3.msra.mxu1 %v7519_v26 }
0x1787   :  { %5783 = vmatprep.subr.mxu1 %v7526_v37 }
0x1788   :  { %5784 = vmatpush3.msra.mxu1 %v7526_v37 }
0x1789   :  { %5785 = vmatprep.subr.mxu1 %v7533_v38 }
0x178a   :  { %5786 = vmatpush3.msra.mxu1 %v7533_v38 }
0x178b   :  { %5787 = vmatprep.subr.mxu1 %v7540_v40 }
0x178c   :  { %5788 = vmatpush3.msra.mxu1 %v7540_v40 }
0x178d   :  { %5789 = vmatprep.subr.mxu1 %v7547_v62 }
0x178e   :  { %5790 = vmatpush3.msra.mxu1 %v7547_v62 }
0x178f   :  { %5791 = vmatprep.subr.mxu1 %v7554_v49 }
0x1790   :  { %5792 = vmatpush3.msra.mxu1 %v7554_v49 }
0x1791   :  { %5793 = vmatprep.subr.mxu1 %v7561_v54 }
0x1792   :  { %5794 = vmatpush3.msra.mxu1 %v7561_v54 }
0x1793   :  { %5795 = vmatprep.subr.mxu1 %v7568_v6 }
0x1794   :  { %5796 = vmatpush3.msra.mxu1 %v7568_v6 }
0x1835   :  { %v5761_v8 = vpop.f32.mrf.mxu1 }
0x1836   :  { %v3243_v5 = vadd.f32 %v7642_v9, %v5761_v8 }
0x1837   :  { %v3237_v60 = vpop.f32.mrf.mxu1 }
0x1838   :  { %v3257_v50 = vmax.f32 %v3243_v5, 0.0  ;;  %v3238_v46 = vadd.f32 %v7642_v9, %v3237_v60  ;;  %v3289_v5 = vmul.f32 %v3286_v39, %v7665_v48 }
0x1839   :  { %v5764_v45 = vpop.f32.mrf.mxu1 }
0x183a   :  { %v3261_v27 = vsub.f32 %v7587_v23, %v3257_v50  ;;  %v3256_v12 = vmax.f32 %v3238_v46, 0.0  ;;  %v3253_v7 = vadd.f32 %v7642_v9, %v5764_v45  ;;  %v3290_v46 = vmul.f32 %v3286_v39, %v7668_v11 }
0x183b   :  { %v3247_v58 = vpop.f32.mrf.mxu1 }
0x183c   :  { %v3260_v53 = vsub.f32 %v7584_v42, %v3256_v12  ;;  %v3259_v56 = vmax.f32 %v3253_v7, 0.0  ;;  %v3293_v61 = vmul.f32 %v3291_v21, %v3261_v27  ;;  %v3248_v63 = vadd.f32 %v7642_v9, %v3247_v58 }
0x183d   :  { %v3265_v44 = vsub.f32 %v3261_v27, %v7656_v10 }
0x183e   :  { %v3264_v34 = vsub.f32 %v3260_v53, %v7653_v55  ;;  %v3292_v57 = vmul.f32 %v3291_v21, %v3260_v53  ;;  %v3263_v0 = vsub.f32 %v7595_v13, %v3259_v56  ;;  %v3258_v41 = vmax.f32 %v3248_v63, 0.0 }
0x183f   :  { %v7732_v3 = vadd.f32 %v3293_v61, %v3288_v15  ;;  %v3269_v55 = vand.u32 2147483647, %v3265_v44 }
0x1840   :  { %v7730_v43 = vadd.f32 %v3292_v57, %v3287_v59  ;;  %v3268_v4 = vand.u32 2147483647, %v3264_v34  ;;  %v3262_v16 = vsub.f32 %v7593_v19, %v3258_v41  ;;  %v3295_v8 = vmul.f32 %v3291_v21, %v3263_v0 }
0x1841   :  { %v3267_v10 = vsub.f32 %v3263_v0, %v7668_v11 }
0x1842   :  { %5797 = vmatprep.mubr.f32.mxu1 %v7730_v43  ;;  %v3266_v60 = vsub.f32 %v3262_v16, %v7665_v48  ;;  %v3294_v50 = vmul.f32 %v3291_v21, %v3262_v16  ;;  %v3272_v12 = vadd.f32 %v3269_v55, %v3268_v4  ;;  %v7743_v7 = vadd.f32 %v3295_v8, %v3290_v46 }
0x1843   :  { %5798 = vmatmul.mubr.f32.vlgmr.msra.gmra.mxu1 %v7732_v3  ;;  %v3271_v58 = vand.u32 2147483647, %v3267_v10 }
0x1844   :  { %v7741_v45 = vadd.f32 %v3294_v50, %v3289_v5  ;;  %v3270_v27 = vand.u32 2147483647, %v3266_v60 }
0x1846   :  { %5800 = vmatprep.mubr.f32.mxu1 %v7741_v45  ;;  %v3273_v53 = vadd.f32 %v3272_v12, %v3270_v27 }
0x1847   :  { %5801 = vmatmul.mubr.f32.gmra.mxu1 %v7743_v7 }
0x1848   :  { %v3274_v48 = vadd.f32 %v3273_v53, %v3271_v58  ;;  %5863 = vmatprep.mubr.msk.f32.mxu1 %vm291_vm0, %v7358_v2 }
0x184a   :  { %3275 = vadd.xlane.f32.xlu1 %v3274_v48 }
0x18d3   :  { %v3276_v21 = vpop.xlane.xlu1 %3275 }
0x18d4   :  { %v3277_v56 = vrot.slane %v3276_v21, 4 }
0x18d6   :  { %v3278_v11 = vadd.f32 %v3277_v56, %v3276_v21 }
0x18d8   :  { %v3279_v39 = vrot.slane %v3278_v11, 2 }
0x18da   :  { %v3280_v61 = vadd.f32 %v3279_v39, %v3278_v11 }
0x18dc   :  { %v3281_v63 = vrot.slane %v3280_v61, 1 }
0x18de   :  { %v3282_v34 = vadd.f32 %v3281_v63, %v3280_v61 }
0x18e0   :  { %6053 = vpush %v3282_v34 }
0x1903   :  { %v5799_v57 = vpop.f32.mrf.mxu1 }
0x1905   :  { %v3371_v59 = vpop.f32.mrf.mxu1 }
0x1907   :  { %v5802_v44 = vpop.f32.mrf.mxu1 }
0x1908   :  { %5803 = vmatprep.subr.mxu0 %v5802_v44 }
0x1909   :  { %v3381_v15 = vpop.f32.mrf.mxu1  ;;  %5804 = vmatpush3.msra.mxu0 %v5802_v44 }
0x190a   :  { %5805 = vmatprep.subr.mxu0 %v3381_v15 }
0x190b   :  { %5806 = vmatpush3.msra.mxu0 %v3381_v15 }
0x190c   :  { %5807 = vmatprep.subr.mxu0 %v5799_v57 }
0x190d   :  { %5808 = vmatpush3.msra.mxu0 %v5799_v57 }
0x190e   :  { %5809 = vmatprep.subr.mxu0 %v3371_v59 }
0x190f   :  { %5810 = vmatpush3.msra.mxu0 %v3371_v59 }
0x1910   :  { %5812 = vmatmul.mubr.msk.f32.vlgmr.msra.gmra.mxu0 %vm291_vm0, %v7365_v1  ;;  %5817 = vmatprep.subr.mxu0 %v7459_v33 }
0x1911   :  { %5814 = vmatprep.mubr.msk.f32.mxu0 %vm291_vm0, %v7373_v47  ;;  %5818 = vmatpush3.msra.mxu0 %v7459_v33  ;;  %s6054_s16 = spop %6053 }
0x1912   :  { %5819 = vmatprep.subr.mxu0 %v7468_v52  ;;  %s3284_s28 = smul.f32 0.0009765625, %s6054_s16 }
0x1913   :  { %5820 = vmatpush3.msra.mxu0 %v7468_v52 }
0x1914   :  { %5815 = vmatmul.mubr.msk.f32.gmra.mxu0 %vm291_vm0, %v7383_v17  ;;  %5821 = vmatprep.subr.mxu0 %v7477_v28  ;;  %p3300_p9 = scmp.lt.f32.partialorder %s3284_s28, 1e-06 }
0x1915   :  { %5822 = vmatpush3.msra.mxu0 %v7477_v28 }
0x1916   :  { %5823 = vmatprep.subr.mxu0 %v7484_v31  ;;  %s3301_s29 = scalar_select %p3300_p9, 1, 0 }
0x1917   :  { %5824 = vmatpush3.msra.mxu0 %v7484_v31 }
0x1918   :  { %5825 = vmatprep.subr.mxu0 %v7491_v30  ;;  %s3302_s30 = scvt.s32.f32 %s3301_s29 }
0x1919   :  { %5826 = vmatpush3.msra.mxu0 %v7491_v30 }
0x191a   :  { %5827 = vmatprep.subr.mxu0 %v7498_v36  ;;  %s3303_s23 = smul.f32 %s3302_s30, %s3285_s27 }
0x191b   :  { %5828 = vmatpush3.msra.mxu0 %v7498_v36 }
0x191c   :  { %5829 = vmatprep.subr.mxu0 %v7505_v29  ;;  %s7790_s24 = smax.f32 %s3303_s23, %s7713_s1 }
0x191d   :  { %5830 = vmatpush3.msra.mxu0 %v7505_v29  ;;  %s3504_s13 = ssub.f32 1.0, %s7790_s24  ;;  %v3505_v5 = vstv %s7790_s24 }
0x191e   :  { %5831 = vmatprep.subr.mxu0 %v7512_v14  ;;  %v3506_v53 = vmul.f32 %v3505_v5, %v7730_v43  ;;  %v3507_v21 = vmul.f32 %v3505_v5, %v7732_v3  ;;  %v3508_v59 = vmul.f32 %v3505_v5, %v7741_v45 }
0x191f   :  { %5832 = vmatpush3.msra.mxu0 %v7512_v14  ;;  %v3510_v60 = vstv %s3504_s13 }
0x1920   :  { %5833 = vmatprep.subr.mxu0 %v7519_v26 }
0x1921   :  { %5834 = vmatpush3.msra.mxu0 %v7519_v26 }
0x1922   :  { %5835 = vmatprep.subr.mxu0 %v7526_v37 }
0x1923   :  { %5836 = vmatpush3.msra.mxu0 %v7526_v37 }
0x1924   :  { %5837 = vmatprep.subr.mxu0 %v7533_v38 }
0x1925   :  { %5838 = vmatpush3.msra.mxu0 %v7533_v38 }
0x1926   :  { %5839 = vmatprep.subr.mxu0 %v7540_v40 }
0x1927   :  { %5840 = vmatpush3.msra.mxu0 %v7540_v40 }
0x1928   :  { %5841 = vmatprep.subr.mxu0 %v7547_v62 }
0x1929   :  { %5842 = vmatpush3.msra.mxu0 %v7547_v62 }
0x192a   :  { %5843 = vmatprep.subr.mxu0 %v7554_v49 }
0x192b   :  { %5844 = vmatpush3.msra.mxu0 %v7554_v49 }
0x192c   :  { %5845 = vmatprep.subr.mxu0 %v7561_v54 }
0x192d   :  { %5846 = vmatpush3.msra.mxu0 %v7561_v54 }
0x192e   :  { %5847 = vmatprep.subr.mxu0 %v7568_v6 }
0x192f   :  { %5848 = vmatpush3.msra.mxu0 %v7568_v6 }
0x19d0   :  { %v5813_v2 = vpop.f32.mrf.mxu0 }
0x19d1   :  { %v3462_v1 = vadd.f32 %v7642_v9, %v5813_v2  ;;  %v3509_v2 = vmul.f32 %v3505_v5, %v7743_v7 }
0x19d2   :  { %v3456_v47 = vpop.f32.mrf.mxu0 }
0x19d3   :  { %v3476_v17 = vmax.f32 %v3462_v1, 0.0  ;;  %v3457_v0 = vadd.f32 %v7642_v9, %v3456_v47 }
0x19d4   :  { %v5816_v41 = vpop.f32.mrf.mxu0 }
0x19d5   :  { %v3480_v4 = vsub.f32 %v7587_v23, %v3476_v17  ;;  %v3475_v16 = vmax.f32 %v3457_v0, 0.0  ;;  %v3472_v8 = vadd.f32 %v7642_v9, %v5816_v41 }
0x19d6   :  { %v3466_v55 = vpop.f32.mrf.mxu0 }
0x19d7   :  { %v3479_v50 = vsub.f32 %v7584_v42, %v3475_v16  ;;  %v3478_v10 = vmax.f32 %v3472_v8, 0.0  ;;  %v3512_v46 = vmul.f32 %v3510_v60, %v3480_v4  ;;  %v3467_v27 = vadd.f32 %v7642_v9, %v3466_v55  ;;  %v6119_v16 = vld [vmem:[%s8121_s0] sm:$0xff] }
0x19d8   :  { %v3484_v48 = vsub.f32 %v3480_v4, %v7732_v3 }
0x19d9   :  { %v3483_v12 = vsub.f32 %v3479_v50, %v7730_v43  ;;  %v3511_v58 = vmul.f32 %v3510_v60, %v3479_v50  ;;  %v3482_v56 = vsub.f32 %v7595_v13, %v3478_v10  ;;  %v3477_v11 = vmax.f32 %v3467_v27, 0.0 }
0x19da   :  { %v7809_v61 = vadd.f32 %v3512_v46, %v3507_v21  ;;  %v3488_v43 = vand.u32 2147483647, %v3484_v48  ;;  %v7839_v48 = vld [vmem:[%s8121_s0 + $0x10] sm:$0xff]  ;;  %v7849_v21 = vld [vmem:[%s8121_s0 + $0x18] sm:$0xff] }
0x19db   :  { %v7807_v39 = vadd.f32 %v3511_v58, %v3506_v53  ;;  %v3487_v63 = vand.u32 2147483647, %v3483_v12  ;;  %v3481_v34 = vsub.f32 %v7593_v19, %v3477_v11  ;;  %v3514_v57 = vmul.f32 %v3510_v60, %v3482_v56  ;;  %v7831_v53 = vld [vmem:[%s8121_s0 + $0x8] sm:$0xff]  ;;  %v7902_v11 = vld [vmem:[%s8122_s5] ss:$0 sm:$0xff] }
0x19dc   :  { %v3486_v3 = vsub.f32 %v3482_v56, %v7743_v7 }
0x19dd   :  { %5849 = vmatprep.mubr.f32.mxu0 %v7807_v39  ;;  %v3485_v44 = vsub.f32 %v3481_v34, %v7741_v45  ;;  %v3513_v15 = vmul.f32 %v3510_v60, %v3481_v34  ;;  %v3491_v17 = vadd.f32 %v3488_v43, %v3487_v63  ;;  %v7820_v0 = vadd.f32 %v3514_v57, %v3509_v2 }
0x19de   :  { %5850 = vmatmul.mubr.f32.vlgmr.msra.gmra.mxu0 %v7809_v61  ;;  %v3490_v41 = vand.u32 2147483647, %v3486_v3  ;;  %v727_v63 = vadd.f32 %v7902_v11, %v6647_v20 }
0x19df   :  { %v7818_v1 = vadd.f32 %v3513_v15, %v3508_v59  ;;  %v3489_v47 = vand.u32 2147483647, %v3485_v44 }
0x19e0   :  { %v745_v20 = vmax.f32 %v727_v63, 0.0 }
0x19e1   :  { %5852 = vmatprep.mubr.f32.mxu0 %v7818_v1  ;;  %v3492_v4 = vadd.f32 %v3491_v17, %v3489_v47 }
0x19e2   :  { %5853 = vmatmul.mubr.f32.gmra.mxu0 %v7820_v0 }
0x19e3   :  { %v3493_v45 = vadd.f32 %v3492_v4, %v3490_v41  ;;  %5915 = vmatprep.mubr.msk.f32.mxu0 %vm291_vm0, %v6119_v16 }
0x19e5   :  { %3494 = vadd.xlane.f32.xlu0 %v3493_v45 }
0x1a6e   :  { %v3495_v7 = vpop.xlane.xlu0 %3494 }
0x1a6f   :  { %v3496_v8 = vrot.slane %v3495_v7, 4 }
0x1a71   :  { %v3497_v5 = vadd.f32 %v3496_v8, %v3495_v7  ;;  %v3949_v8 = vld [vmem:[%s8123_s6 + $0x68] sm:$0xff] }
0x1a73   :  { %v3498_v55 = vrot.slane %v3497_v5, 2 }
0x1a75   :  { %v3499_v60 = vadd.f32 %v3498_v55, %v3497_v5 }
0x1a77   :  { %v3500_v50 = vrot.slane %v3499_v60, 1 }
0x1a79   :  { %v3501_v10 = vadd.f32 %v3500_v50, %v3499_v60 }
0x1a7b   :  { %6055 = vpush %v3501_v10 }
0x1a9e   :  { %v5851_v46 = vpop.f32.mrf.mxu0 }
0x1aa0   :  { %v3590_v27 = vpop.f32.mrf.mxu0 }
0x1aa2   :  { %v5854_v12 = vpop.f32.mrf.mxu0 }
0x1aa3   :  { %5855 = vmatprep.subr.mxu1 %v5854_v12 }
0x1aa4   :  { %v3600_v58 = vpop.f32.mrf.mxu0  ;;  %5856 = vmatpush3.msra.mxu1 %v5854_v12 }
0x1aa5   :  { %5857 = vmatprep.subr.mxu1 %v3600_v58 }
0x1aa6   :  { %5858 = vmatpush3.msra.mxu1 %v3600_v58  ;;  %v3947_v58 = vld [vmem:[%s8123_s6 + $0x58] sm:$0xff] }
0x1aa7   :  { %5859 = vmatprep.subr.mxu1 %v5851_v46 }
0x1aa8   :  { %5860 = vmatpush3.msra.mxu1 %v5851_v46  ;;  %v3948_v46 = vld [vmem:[%s8123_s6 + $0x60] sm:$0xff] }
0x1aa9   :  { %5861 = vmatprep.subr.mxu1 %v3590_v27 }
0x1aaa   :  { %5862 = vmatpush3.msra.mxu1 %v3590_v27 }
0x1aab   :  { %5864 = vmatmul.mubr.msk.f32.vlgmr.msra.gmra.mxu1 %vm291_vm0, %v7831_v53  ;;  %5869 = vmatprep.subr.mxu1 %v7459_v33 }
0x1aac   :  { %5866 = vmatprep.mubr.msk.f32.mxu1 %vm291_vm0, %v7839_v48  ;;  %5870 = vmatpush3.msra.mxu1 %v7459_v33  ;;  %v3951_v33 = vld [vmem:[%s8123_s6 + $0x78] sm:$0xff]  ;;  %s6056_s20 = spop %6055 }
0x1aad   :  { %5871 = vmatprep.subr.mxu1 %v7468_v52  ;;  %s3503_s21 = smul.f32 0.0009765625, %s6056_s20 }
0x1aae   :  { %5872 = vmatpush3.msra.mxu1 %v7468_v52 }
0x1aaf   :  { %5867 = vmatmul.mubr.msk.f32.gmra.mxu1 %vm291_vm0, %v7849_v21  ;;  %5873 = vmatprep.subr.mxu1 %v7477_v28  ;;  %p3519_p10 = scmp.lt.f32.partialorder %s3503_s21, 1e-06 }
0x1ab0   :  { %5874 = vmatpush3.msra.mxu1 %v7477_v28 }
0x1ab1   :  { %5875 = vmatprep.subr.mxu1 %v7484_v31  ;;  %s3520_s22 = scalar_select %p3519_p10, 1, 0 }
0x1ab2   :  { %5876 = vmatpush3.msra.mxu1 %v7484_v31 }
0x1ab3   :  { %5877 = vmatprep.subr.mxu1 %v7491_v30  ;;  %s3521_s25 = scvt.s32.f32 %s3520_s22 }
0x1ab4   :  { %5878 = vmatpush3.msra.mxu1 %v7491_v30 }
0x1ab5   :  { %5879 = vmatprep.subr.mxu1 %v7498_v36  ;;  %s3522_s26 = smul.f32 %s3521_s25, %s3504_s13 }
0x1ab6   :  { %5880 = vmatpush3.msra.mxu1 %v7498_v36 }
0x1ab7   :  { %5881 = vmatprep.subr.mxu1 %v7505_v29  ;;  %s7887_s1 = smax.f32 %s3522_s26, %s7790_s24 }
0x1ab8   :  { %5882 = vmatpush3.msra.mxu1 %v7505_v29  ;;  %s3723_s27 = ssub.f32 1.0, %s7887_s1 }
0x1ab9   :  { %5883 = vmatprep.subr.mxu1 %v7512_v14 }
0x1aba   :  { %5884 = vmatpush3.msra.mxu1 %v7512_v14 }
0x1abb   :  { %5885 = vmatprep.subr.mxu1 %v7519_v26 }
0x1abc   :  { %5886 = vmatpush3.msra.mxu1 %v7519_v26 }
0x1abd   :  { %5887 = vmatprep.subr.mxu1 %v7526_v37 }
0x1abe   :  { %5888 = vmatpush3.msra.mxu1 %v7526_v37 }
0x1abf   :  { %5889 = vmatprep.subr.mxu1 %v7533_v38 }
0x1ac0   :  { %5890 = vmatpush3.msra.mxu1 %v7533_v38  ;;  %v3724_v38 = vstv %s7887_s1 }
0x1ac1   :  { %5891 = vmatprep.subr.mxu1 %v7540_v40  ;;  %v3725_v59 = vmul.f32 %v3724_v38, %v7807_v39  ;;  %v3726_v44 = vmul.f32 %v3724_v38, %v7809_v61  ;;  %v3728_v5 = vmul.f32 %v3724_v38, %v7820_v0 }
0x1ac2   :  { %5892 = vmatpush3.msra.mxu1 %v7540_v40 }
0x1ac3   :  { %5893 = vmatprep.subr.mxu1 %v7547_v62 }
0x1ac4   :  { %5894 = vmatpush3.msra.mxu1 %v7547_v62  ;;  %v3729_v62 = vstv %s3723_s27 }
0x1ac5   :  { %5895 = vmatprep.subr.mxu1 %v7554_v49 }
0x1ac6   :  { %5896 = vmatpush3.msra.mxu1 %v7554_v49 }
0x1ac7   :  { %5897 = vmatprep.subr.mxu1 %v7561_v54 }
0x1ac8   :  { %5898 = vmatpush3.msra.mxu1 %v7561_v54 }
0x1ac9   :  { %5899 = vmatprep.subr.mxu1 %v7568_v6 }
0x1aca   :  { %5900 = vmatpush3.msra.mxu1 %v7568_v6 }
0x1acb   :  { %5959 = vmatprep.subr.mxu1 %v3951_v33 }
0x1b6b   :  { %v5865_v52 = vpop.f32.mrf.mxu1 }
0x1b6c   :  { %v3681_v28 = vadd.f32 %v7642_v9, %v5865_v52  ;;  %v3944_v52 = vld [vmem:[%s8123_s6 + $0x40] sm:$0xff] }
0x1b6d   :  { %v3675_v31 = vpop.f32.mrf.mxu1 }
0x1b6e   :  { %v3695_v30 = vmax.f32 %v3681_v28, 0.0  ;;  %v3676_v36 = vadd.f32 %v7642_v9, %v3675_v31  ;;  %v3943_v28 = vld [vmem:[%s8123_s6 + $0x38] sm:$0xff]  ;;  %v3942_v31 = vld [vmem:[%s8123_s6 + $0x30] sm:$0xff] }
0x1b6f   :  { %v5868_v29 = vpop.f32.mrf.mxu1 }
0x1b70   :  { %v3699_v14 = vsub.f32 %v7587_v23, %v3695_v30  ;;  %v3694_v26 = vmax.f32 %v3676_v36, 0.0  ;;  %v3691_v37 = vadd.f32 %v7642_v9, %v5868_v29  ;;  %v3941_v30 = vld [vmem:[%s8123_s6 + $0x28] sm:$0xff]  ;;  %v3940_v36 = vld [vmem:[%s8123_s6 + $0x20] sm:$0xff]  ;;  %v3939_v29 = vld [vmem:[%s8123_s6 + $0x18] sm:$0xff] }
0x1b71   :  { %v3685_v40 = vpop.f32.mrf.mxu1 }
0x1b72   :  { %v3698_v49 = vsub.f32 %v7584_v42, %v3694_v26  ;;  %v3697_v54 = vmax.f32 %v3691_v37, 0.0  ;;  %v3731_v6 = vmul.f32 %v3729_v62, %v3699_v14  ;;  %v3686_v56 = vadd.f32 %v7642_v9, %v3685_v40  ;;  %v3938_v37 = vld [vmem:[%s8123_s6 + $0x10] sm:$0xff] }
0x1b73   :  { %v3703_v43 = vsub.f32 %v3699_v14, %v7809_v61  ;;  %v3727_v61 = vmul.f32 %v3724_v38, %v7818_v1  ;;  %v732_v14 = vadd.f32 %v7902_v11, %v6645_v18  ;;  %v737_v26 = vadd.f32 %v7902_v11, %v6651_v24  ;;  %v3937_v38 = vld [vmem:[%s8123_s6 + $0x8] sm:$0xff]  ;;  %v3936_v24 = vld [vmem:[%s8123_s6] sm:$0xff] }
0x1b74   :  { %v3702_v34 = vsub.f32 %v3698_v49, %v7807_v39  ;;  %v3730_v57 = vmul.f32 %v3729_v62, %v3698_v49  ;;  %v3701_v15 = vsub.f32 %v7595_v13, %v3697_v54  ;;  %v3696_v9 = vmax.f32 %v3686_v56, 0.0  ;;  %v3950_v39 = vld [vmem:[%s8123_s6 + $0x70] sm:$0xff] }
0x1b75   :  { %v7913_v2 = vadd.f32 %v3731_v6, %v3726_v44  ;;  %v3707_v4 = vand.u32 2147483647, %v3703_v43  ;;  %v746_v40 = vmax.f32 %v732_v14, 0.0  ;;  %v747_v18 = vmax.f32 %v737_v26, 0.0 }
0x1b76   :  { %v7911_v3 = vadd.f32 %v3730_v57, %v3725_v59  ;;  %v3706_v47 = vand.u32 2147483647, %v3702_v34  ;;  %v3700_v17 = vsub.f32 %v7593_v19, %v3696_v9  ;;  %v3733_v41 = vmul.f32 %v3729_v62, %v3701_v15 }
0x1b77   :  { %v3705_v7 = vsub.f32 %v3701_v15, %v7820_v0  ;;  %v750_v49 = vadd.f32 %v746_v40, %v6587_v32  ;;  %v751_v6 = vadd.f32 %v747_v18, %v6592_v35  ;;  %v3967_v35 = vld [vmem:[%s8124_s7 + $0x78] sm:$0xff] }
0x1b78   :  { %5901 = vmatprep.mubr.f32.mxu1 %v7911_v3  ;;  %v3704_v45 = vsub.f32 %v3700_v17, %v7818_v1  ;;  %v3732_v16 = vmul.f32 %v3729_v62, %v3700_v17  ;;  %v3710_v50 = vadd.f32 %v3707_v4, %v3706_v47  ;;  %v7930_v10 = vadd.f32 %v3733_v41, %v3728_v5  ;;  %v3965_v47 = vld [vmem:[%s8124_s7 + $0x68] sm:$0xff]  ;;  %v3964_v17 = vld [vmem:[%s8124_s7 + $0x60] sm:$0xff]  ;;  %v3959_v41 = vld [vmem:[%s8124_s7 + $0x38] sm:$0xff] }
0x1b79   :  { %5902 = vmatmul.mubr.f32.vlgmr.msra.gmra.mxu1 %v7913_v2  ;;  %v749_v1 = vadd.f32 %v745_v20, %v6583_v25  ;;  %v3709_v27 = vand.u32 2147483647, %v3705_v7  ;;  %v3946_v25 = vld [vmem:[%s8123_s6 + $0x50] sm:$0xff]  ;;  %v742_v62 = vadd.f32 %v7902_v11, %v6649_v22  ;;  %v3961_v20 = vld [vmem:[%s8124_s7 + $0x48] sm:$0xff]  ;;  %v3956_v4 = vld [vmem:[%s8124_s7 + $0x20] sm:$0xff] }
0x1b7a   :  { %5960 = vmatpush3.msra.mxu1 %v3951_v33  ;;  %v7928_v55 = vadd.f32 %v3732_v16, %v3727_v61  ;;  %v3708_v60 = vand.u32 2147483647, %v3704_v45  ;;  %v3945_v33 = vld [vmem:[%s8123_s6 + $0x48] sm:$0xff]  ;;  %v3955_v45 = vld [vmem:[%s8124_s7 + $0x18] sm:$0xff]  ;;  %v3954_v16 = vld [vmem:[%s8124_s7 + $0x10] sm:$0xff] }
0x1b7b   :  { %5961 = vmatprep.subr.mxu1 %v3950_v39  ;;  %v748_v54 = vmax.f32 %v742_v62, 0.0  ;;  %v3957_v61 = vld [vmem:[%s8124_s7 + $0x28] sm:$0xff]  ;;  %v4168_v5 = vld [vmem:[%s8125_s9 + $0x78] sm:$0xff] }
0x1b7c   :  { %5962 = vmatpush3.msra.mxu1 %v3950_v39  ;;  %5904 = vmatprep.mubr.f32.mxu1 %v7928_v55  ;;  %v3711_v12 = vadd.f32 %v3710_v50, %v3708_v60  ;;  %v3958_v39 = vld [vmem:[%s8124_s7 + $0x30] sm:$0xff]  ;;  %v3953_v7 = vld [vmem:[%s8124_s7 + $0x8] sm:$0xff]  ;;  %v6124_v50 = vld [vmem:[%s8122_s5 + $0x1] ss:$0 sm:$0xff] }
0x1b7d   :  { %5963 = vmatprep.subr.mxu1 %v3949_v8  ;;  %5905 = vmatmul.mubr.f32.gmra.mxu1 %v7930_v10  ;;  %v752_v22 = vadd.f32 %v748_v54, %v6595_v51  ;;  %v3966_v51 = vld [vmem:[%s8124_s7 + $0x70] sm:$0xff] }
0x1b7e   :  { %5964 = vmatpush3.msra.mxu1 %v3949_v8  ;;  %5991 = vmatprep.mubr.f32.mxu1 %v749_v1  ;;  %v3712_v0 = vadd.f32 %v3711_v12, %v3709_v27  ;;  %v3952_v8 = vld [vmem:[%s8124_s7] sm:$0xff] }
0x1b7f   :  { %5965 = vmatprep.subr.mxu1 %v3948_v46 }
0x1b80   :  { %5966 = vmatpush3.msra.mxu1 %v3948_v46  ;;  %3713 = vadd.xlane.f32.xlu1 %v3712_v0 }
0x1b81   :  { %5967 = vmatprep.subr.mxu1 %v3947_v58 }
0x1b82   :  { %5968 = vmatpush3.msra.mxu1 %v3947_v58 }
0x1b83   :  { %5969 = vmatprep.subr.mxu1 %v3946_v25 }
0x1b84   :  { %5970 = vmatpush3.msra.mxu1 %v3946_v25 }
0x1b85   :  { %5971 = vmatprep.subr.mxu1 %v3945_v33 }
0x1b86   :  { %5972 = vmatpush3.msra.mxu1 %v3945_v33 }
0x1b87   :  { %5973 = vmatprep.subr.mxu1 %v3944_v52 }
0x1b88   :  { %5974 = vmatpush3.msra.mxu1 %v3944_v52 }
0x1b89   :  { %5975 = vmatprep.subr.mxu1 %v3943_v28 }
0x1b8a   :  { %5976 = vmatpush3.msra.mxu1 %v3943_v28 }
0x1b8b   :  { %5977 = vmatprep.subr.mxu1 %v3942_v31 }
0x1b8c   :  { %5978 = vmatpush3.msra.mxu1 %v3942_v31 }
0x1b8d   :  { %5979 = vmatprep.subr.mxu1 %v3941_v30 }
0x1b8e   :  { %5980 = vmatpush3.msra.mxu1 %v3941_v30 }
0x1b8f   :  { %5981 = vmatprep.subr.mxu1 %v3940_v36 }
0x1b90   :  { %5982 = vmatpush3.msra.mxu1 %v3940_v36 }
0x1b91   :  { %5983 = vmatprep.subr.mxu1 %v3939_v29 }
0x1b92   :  { %5984 = vmatpush3.msra.mxu1 %v3939_v29 }
0x1b93   :  { %5985 = vmatprep.subr.mxu1 %v3938_v37 }
0x1b94   :  { %5986 = vmatpush3.msra.mxu1 %v3938_v37 }
0x1b95   :  { %5987 = vmatprep.subr.mxu1 %v3937_v38 }
0x1b96   :  { %5988 = vmatpush3.msra.mxu1 %v3937_v38 }
0x1b97   :  { %5989 = vmatprep.subr.mxu1 %v3936_v24 }
0x1b98   :  { %5990 = vmatpush3.msra.mxu1 %v3936_v24 }
0x1b99   :  { %5992 = vmatmul.mubr.f32.vlgmr.msra.gmra.mxu1 %v750_v49 }
0x1b9a   :  { %5994 = vmatprep.mubr.f32.mxu1 %v751_v6  ;;  %v4167_v6 = vld [vmem:[%s8125_s9 + $0x70] sm:$0xff] }
0x1b9d   :  { %5995 = vmatmul.mubr.f32.gmra.mxu1 %v752_v22 }
0x1c09   :  { %v3714_v56 = vpop.xlane.xlu1 %3713 }
0x1c0a   :  { %v3715_v11 = vrot.slane %v3714_v56, 4 }
0x1c0c   :  { %v3716_v63 = vadd.f32 %v3715_v11, %v3714_v56  ;;  %v4162_v56 = vld [vmem:[%s8125_s9 + $0x48] sm:$0xff]  ;;  %v4161_v11 = vld [vmem:[%s8125_s9 + $0x40] sm:$0xff] }
0x1c0e   :  { %v3717_v34 = vrot.slane %v3716_v63, 2 }
0x1c10   :  { %v3718_v57 = vadd.f32 %v3717_v34, %v3716_v63  ;;  %v4160_v63 = vld [vmem:[%s8125_s9 + $0x38] sm:$0xff]  ;;  %v4159_v34 = vld [vmem:[%s8125_s9 + $0x30] sm:$0xff] }
0x1c12   :  { %v3719_v59 = vrot.slane %v3718_v57, 1 }
0x1c14   :  { %v3720_v43 = vadd.f32 %v3719_v59, %v3718_v57  ;;  %v4158_v57 = vld [vmem:[%s8125_s9 + $0x28] sm:$0xff]  ;;  %v4157_v59 = vld [vmem:[%s8125_s9 + $0x20] sm:$0xff] }
0x1c16   :  { %6057 = vpush %v3720_v43  ;;  %v4156_v43 = vld [vmem:[%s8125_s9 + $0x18] sm:$0xff] }
0x1c39   :  { %v5903_v44 = vpop.f32.mrf.mxu1 }
0x1c3b   :  { %v3809_v32 = vpop.f32.mrf.mxu1 }
0x1c3d   :  { %v5906_v15 = vpop.f32.mrf.mxu1 }
0x1c3e   :  { %5907 = vmatprep.subr.mxu0 %v5906_v15 }
0x1c3f   :  { %v3819_v9 = vpop.f32.mrf.mxu1  ;;  %5908 = vmatpush3.msra.mxu0 %v5906_v15  ;;  %v4153_v15 = vld [vmem:[%s8125_s9] sm:$0xff] }
0x1c40   :  { %5909 = vmatprep.subr.mxu0 %v3819_v9 }
0x1c41   :  { %5910 = vmatpush3.msra.mxu0 %v3819_v9 }
0x1c42   :  { %5911 = vmatprep.subr.mxu0 %v5903_v44 }
0x1c43   :  { %5912 = vmatpush3.msra.mxu0 %v5903_v44  ;;  %v4155_v44 = vld [vmem:[%s8125_s9 + $0x10] sm:$0xff] }
0x1c44   :  { %5913 = vmatprep.subr.mxu0 %v3809_v32 }
0x1c45   :  { %5914 = vmatpush3.msra.mxu0 %v3809_v32  ;;  %v4154_v32 = vld [vmem:[%s8125_s9 + $0x8] sm:$0xff] }
0x1c46   :  { %5916 = vmatmul.mubr.msk.f32.vlgmr.msra.gmra.mxu0 %vm291_vm0, %v7831_v53  ;;  %5921 = vmatprep.subr.mxu0 %v3967_v35  ;;  %v3963_v53 = vld [vmem:[%s8124_s7 + $0x58] sm:$0xff] }
0x1c47   :  { %5918 = vmatprep.mubr.msk.f32.mxu0 %vm291_vm0, %v7839_v48  ;;  %5922 = vmatpush3.msra.mxu0 %v3967_v35  ;;  %v3962_v48 = vld [vmem:[%s8124_s7 + $0x50] sm:$0xff]  ;;  %s6058_s25 = spop %6057 }
0x1c48   :  { %5923 = vmatprep.subr.mxu0 %v3966_v51  ;;  %s3722_s26 = smul.f32 0.0009765625, %s6058_s25 }
0x1c49   :  { %5924 = vmatpush3.msra.mxu0 %v3966_v51 }
0x1c4a   :  { %5919 = vmatmul.mubr.msk.f32.gmra.mxu0 %vm291_vm0, %v7849_v21  ;;  %5925 = vmatprep.subr.mxu0 %v3965_v47  ;;  %v3960_v21 = vld [vmem:[%s8124_s7 + $0x40] sm:$0xff]  ;;  %p3738_p11 = scmp.lt.f32.partialorder %s3722_s26, 1e-06 }
0x1c4b   :  { %5926 = vmatpush3.msra.mxu0 %v3965_v47 }
0x1c4c   :  { %5927 = vmatprep.subr.mxu0 %v3964_v17  ;;  %s3739_s16 = scalar_select %p3738_p11, 1, 0 }
0x1c4d   :  { %5928 = vmatpush3.msra.mxu0 %v3964_v17  ;;  %v4361_v17 = vld [vmem:[%s8126_s8] ss:$0 sm:$0xff] }
0x1c4e   :  { %5929 = vmatprep.subr.mxu0 %v3963_v53  ;;  %s3740_s28 = scvt.s32.f32 %s3739_s16 }
0x1c4f   :  { %5930 = vmatpush3.msra.mxu0 %v3963_v53 }
0x1c50   :  { %5931 = vmatprep.subr.mxu0 %v3962_v48  ;;  %s3741_s29 = smul.f32 %s3740_s28, %s3723_s27 }
0x1c51   :  { %5932 = vmatpush3.msra.mxu0 %v3962_v48 }
0x1c52   :  { %5933 = vmatprep.subr.mxu0 %v3961_v20  ;;  %s3742_s30 = smax.f32 %s3741_s29, %s7887_s1 }
0x1c53   :  { %5934 = vmatpush3.msra.mxu0 %v3961_v20  ;;  %s3921_s7 = ssub.f32 1.0, %s3742_s30  ;;  %v3922_v52 = vstv %s3742_s30 }
0x1c54   :  { %5935 = vmatprep.subr.mxu0 %v3960_v21  ;;  %v3923_v40 = vmul.f32 %v3922_v52, %v7911_v3  ;;  %v3924_v62 = vmul.f32 %v3922_v52, %v7913_v2  ;;  %v4165_v2 = vld [vmem:[%s8125_s9 + $0x60] sm:$0xff] }
0x1c55   :  { %5936 = vmatpush3.msra.mxu0 %v3960_v21  ;;  %v3927_v31 = vstv %s3921_s7 }
0x1c56   :  { %5937 = vmatprep.subr.mxu0 %v3959_v41 }
0x1c57   :  { %5938 = vmatpush3.msra.mxu0 %v3959_v41 }
0x1c58   :  { %5939 = vmatprep.subr.mxu0 %v3958_v39 }
0x1c59   :  { %5940 = vmatpush3.msra.mxu0 %v3958_v39  ;;  %v5993_v9 = vpop.f32.mrf.mxu1 }
0x1c5a   :  { %5941 = vmatprep.subr.mxu0 %v3957_v61 }
0x1c5b   :  { %5942 = vmatpush3.msra.mxu0 %v3957_v61  ;;  %v4119_v35 = vpop.f32.mrf.mxu1 }
0x1c5c   :  { %5943 = vmatprep.subr.mxu0 %v3956_v4 }
0x1c5d   :  { %5944 = vmatpush3.msra.mxu0 %v3956_v4  ;;  %v5996_v53 = vpop.f32.mrf.mxu1 }
0x1c5e   :  { %5945 = vmatprep.subr.mxu0 %v3955_v45 }
0x1c5f   :  { %5946 = vmatpush3.msra.mxu0 %v3955_v45  ;;  %v4129_v4 = vpop.f32.mrf.mxu1 }
0x1c60   :  { %5947 = vmatprep.subr.mxu0 %v3954_v16 }
0x1c61   :  { %5948 = vmatpush3.msra.mxu0 %v3954_v16 }
0x1c62   :  { %5949 = vmatprep.subr.mxu0 %v3953_v7 }
0x1c63   :  { %5950 = vmatpush3.msra.mxu0 %v3953_v7 }
0x1c64   :  { %5951 = vmatprep.subr.mxu0 %v3952_v8 }
0x1c65   :  { %5952 = vmatpush3.msra.mxu0 %v3952_v8 }
0x1c66   :  { %5997 = vmatprep.subr.mxu0 %v4168_v5 }
0x1d06   :  { %v5917_v60 = vpop.f32.mrf.mxu0 }
0x1d07   :  { %v3900_v1 = vadd.f32 %v6124_v50, %v5917_v60 }
0x1d08   :  { %v3894_v46 = vpop.f32.mrf.mxu0 }
0x1d09   :  { %v3914_v27 = vmax.f32 %v3900_v1, 0.0  ;;  %v3895_v12 = vadd.f32 %v6124_v50, %v3894_v46  ;;  %v4362_v46 = vld [vmem:[%s8127_s10] ss:$0 sm:$0xff] }
0x1d0a   :  { %v5920_v0 = vpop.f32.mrf.mxu0 }
0x1d0b   :  { %v3918_v58 = vsub.f32 %v7587_v23, %v3914_v27  ;;  %v3913_v25 = vmax.f32 %v3895_v12, 0.0  ;;  %v3910_v33 = vadd.f32 %v6124_v50, %v5920_v0 }
0x1d0c   :  { %v3904_v28 = vpop.f32.mrf.mxu0 }
0x1d0d   :  { %v3917_v30 = vsub.f32 %v7584_v42, %v3913_v25  ;;  %v3916_v36 = vmax.f32 %v3910_v33, 0.0  ;;  %v3905_v29 = vadd.f32 %v6124_v50, %v3904_v28  ;;  %v3929_v14 = vmul.f32 %v3927_v31, %v3918_v58 }
0x1d0e   :  { %v3925_v42 = vmul.f32 %v3922_v52, %v7928_v55  ;;  %v4164_v55 = vld [vmem:[%s8125_s9 + $0x58] sm:$0xff] }
0x1d0f   :  { %v3928_v26 = vmul.f32 %v3927_v31, %v3917_v30  ;;  %v3920_v37 = vsub.f32 %v7595_v13, %v3916_v36  ;;  %v3915_v38 = vmax.f32 %v3905_v29, 0.0  ;;  %v3933_v24 = vadd.f32 %v3929_v14, %v3924_v62 }
0x1d10   :  { %v3926_v13 = vmul.f32 %v3922_v52, %v7930_v10  ;;  %v4163_v10 = vld [vmem:[%s8125_s9 + $0x50] sm:$0xff] }
0x1d11   :  { %v3919_v23 = vsub.f32 %v7593_v19, %v3915_v38  ;;  %v3932_v18 = vadd.f32 %v3928_v26, %v3923_v40  ;;  %v3931_v49 = vmul.f32 %v3927_v31, %v3920_v37  ;;  %v4166_v19 = vld [vmem:[%s8125_s9 + $0x68] sm:$0xff] }
0x1d13   :  { %v3930_v54 = vmul.f32 %v3927_v31, %v3919_v23  ;;  %5953 = vmatprep.mubr.f32.mxu0 %v3932_v18  ;;  %v3935_v3 = vadd.f32 %v3931_v49, %v3926_v13 }
0x1d14   :  { %5954 = vmatmul.mubr.f32.vlgmr.msra.gmra.mxu0 %v3933_v24 }
0x1d15   :  { %v3934_v22 = vadd.f32 %v3930_v54, %v3925_v42  ;;  %5998 = vmatpush3.msra.mxu0 %v4168_v5 }
0x1d16   :  { %5999 = vmatprep.subr.mxu0 %v4167_v6 }
0x1d17   :  { %5956 = vmatprep.mubr.f32.mxu0 %v3934_v22  ;;  %6000 = vmatpush3.msra.mxu0 %v4167_v6 }
0x1d18   :  { %5957 = vmatmul.mubr.f32.gmra.mxu0 %v3935_v3  ;;  %6001 = vmatprep.subr.mxu0 %v4166_v19 }
0x1d19   :  { %6002 = vmatpush3.msra.mxu0 %v4166_v19 }
0x1d1a   :  { %6003 = vmatprep.subr.mxu0 %v4165_v2 }
0x1d1b   :  { %6004 = vmatpush3.msra.mxu0 %v4165_v2 }
0x1d1c   :  { %6005 = vmatprep.subr.mxu0 %v4164_v55 }
0x1d1d   :  { %6006 = vmatpush3.msra.mxu0 %v4164_v55 }
0x1d1e   :  { %6007 = vmatprep.subr.mxu0 %v4163_v10 }
0x1d1f   :  { %6008 = vmatpush3.msra.mxu0 %v4163_v10 }
0x1d20   :  { %6009 = vmatprep.subr.mxu0 %v4162_v56 }
0x1d21   :  { %6010 = vmatpush3.msra.mxu0 %v4162_v56 }
0x1d22   :  { %6011 = vmatprep.subr.mxu0 %v4161_v11 }
0x1d23   :  { %6012 = vmatpush3.msra.mxu0 %v4161_v11 }
0x1d24   :  { %6013 = vmatprep.subr.mxu0 %v4160_v63 }
0x1d25   :  { %6014 = vmatpush3.msra.mxu0 %v4160_v63 }
0x1d26   :  { %6015 = vmatprep.subr.mxu0 %v4159_v34 }
0x1d27   :  { %6016 = vmatpush3.msra.mxu0 %v4159_v34 }
0x1d28   :  { %6017 = vmatprep.subr.mxu0 %v4158_v57 }
0x1d29   :  { %6018 = vmatpush3.msra.mxu0 %v4158_v57 }
0x1d2a   :  { %6019 = vmatprep.subr.mxu0 %v4157_v59 }
0x1d2b   :  { %6020 = vmatpush3.msra.mxu0 %v4157_v59 }
0x1d2c   :  { %6021 = vmatprep.subr.mxu0 %v4156_v43 }
0x1d2d   :  { %6022 = vmatpush3.msra.mxu0 %v4156_v43 }
0x1d2e   :  { %6023 = vmatprep.subr.mxu0 %v4155_v44 }
0x1d2f   :  { %6024 = vmatpush3.msra.mxu0 %v4155_v44 }
0x1d30   :  { %6025 = vmatprep.subr.mxu0 %v4154_v32 }
0x1d31   :  { %6026 = vmatpush3.msra.mxu0 %v4154_v32 }
0x1d32   :  { %6027 = vmatprep.subr.mxu0 %v4153_v15 }
0x1d33   :  { %6028 = vmatpush3.msra.mxu0 %v4153_v15 }
0x1dd4   :  { %v5955_v51 = vpop.f32.mrf.mxu0 }
0x1dd5   :  { %v4125_v47 = vadd.f32 %v5993_v9, %v5955_v51 }
0x1dd6   :  { %v4034_v48 = vpop.f32.mrf.mxu0 }
0x1dd7   :  { %v4120_v20 = vadd.f32 %v4119_v35, %v4034_v48  ;;  %v4146_v21 = vadd.f32 %v4361_v17, %v4125_v47 }
0x1dd8   :  { %v5958_v41 = vpop.f32.mrf.mxu0 }
0x1dd9   :  { %v4145_v39 = vadd.f32 %v4361_v17, %v4120_v20  ;;  %v4135_v61 = vadd.f32 %v5996_v53, %v5958_v41  ;;  %v4150_v8 = vmax.f32 %v4146_v21, 0.0 }
0x1dda   :  { %v4044_v45 = vpop.f32.mrf.mxu0 }
0x1ddb   :  { %v4149_v16 = vmax.f32 %v4145_v39, 0.0  ;;  %v4130_v7 = vadd.f32 %v4129_v4, %v4044_v45  ;;  %v4148_v5 = vadd.f32 %v4361_v17, %v4135_v61 }
0x1ddd   :  { %v4147_v60 = vadd.f32 %v4361_v17, %v4130_v7  ;;  %6029 = vmatprep.mubr.f32.mxu0 %v4149_v16  ;;  %v4152_v1 = vmax.f32 %v4148_v5, 0.0 }
0x1dde   :  { %6030 = vmatmul.mubr.f32.vlgmr.msra.gmra.mxu0 %v4150_v8 }
0x1ddf   :  { %v4151_v50 = vmax.f32 %v4147_v60, 0.0 }
0x1de1   :  { %6032 = vmatprep.mubr.f32.mxu0 %v4151_v50 }
0x1de2   :  { %6033 = vmatmul.mubr.f32.gmra.mxu0 %v4152_v1 }
0x1e9e   :  { %v6031_v27 = vpop.f32.mrf.mxu0 }
0x1e9f   :  { %v4248_v12 = vadd.f32 %v6031_v27, %v4362_v46 }
0x1ea0   :  { %v4242_v0 = vpop.f32.mrf.mxu0 }
0x1ea1   :  { %4262 = vst [vmem:[%s8128_s11 + $0x8] sm:$0xff] %v4248_v12  ;;  %v4243_v58 = vadd.f32 %v4362_v46, %v4242_v0 }
0x1ea2   :  { %v6034_v25 = vpop.f32.mrf.mxu0 }
0x1ea3   :  { %4261 = vst [vmem:[%s8128_s11] sm:$0xff] %v4243_v58  ;;  %v4258_v33 = vadd.f32 %v6034_v25, %v4362_v46 }
0x1ea4   :  { %v4252_v52 = vpop.f32.mrf.mxu0 }
0x1ea5   :  { %4264 = vst [vmem:[%s8128_s11 + $0x18] sm:$0xff] %v4258_v33  ;;  %v4253_v28 = vadd.f32 %v4362_v46, %v4252_v52 }
0x1ea7   :  { %4263 = vst [vmem:[%s8128_s11 + $0x10] sm:$0xff] %v4253_v28 }

</bundles_post_ra>
